<compile_context>
chip_gen: v6e
topology: v6e:2x2x1
jax: 0.10.0
libtpu: 0.0.40
codegen_flags: <defaults>
</compile_context>

<pallas_src>
import jax
import jax.numpy as jnp
from jax.experimental import pallas as pl
from jax.experimental.pallas import tpu as pltpu

# ---------------- small BERT config ----------------
VOCAB = 100
HIDDEN = 32
NUM_LAYERS = 2
NUM_HEADS = 4
HEAD_DIM = HIDDEN // NUM_HEADS
INTERMEDIATE = 64
MAX_POS = 16
NUM_CLASSES = 2
BATCH = 2
SEQ = 8
LN_EPS = 1e-12
ATTN_SCALE = 1.0 / (HEAD_DIM ** 0.5)


def _layernorm(x, g, b):
    mean = jnp.mean(x, axis=-1, keepdims=True)
    var = jnp.mean(jnp.square(x - mean), axis=-1, keepdims=True)
    return (x - mean) * jax.lax.rsqrt(var + LN_EPS) * g + b


# ---------------- the single fused Pallas kernel ----------------
def _bert_forward_kernel(
    emb_ref, mask_ref, emb_g_ref, emb_b_ref,
    wqkv_ref, bqkv_ref, wo_ref, bo_ref, ln1g_ref, ln1b_ref,
    wi_ref, bi_ref, wf_ref, bf_ref, ln2g_ref, ln2b_ref,
    pool_w_ref, pool_b_ref, fc_w_ref, fc_b_ref,
    logits_ref,
    qkv_scr, attn_scr,
):
    # ---- embedding LayerNorm (embedding dropout = identity in eval mode) ----
    h = _layernorm(emb_ref[...], emb_g_ref[...], emb_b_ref[...])          # (B*S, H)

    # ---- encoder layers, fully unrolled inside one kernel ----
    for l in range(NUM_LAYERS):
        # fused QKV projection: one (B*S, H) x (H, 3H) matmul into VMEM scratch
        qkv_scr[...] = (
            jnp.dot(h, wqkv_ref[l], preferred_element_type=jnp.float32) + bqkv_ref[l]
        )
        wo = wo_ref[l]                                                    # (H, H)

        # multi-head attention + output projection, per (batch, head), static slices only
        for b in range(BATCH):
            r0 = b * SEQ
            mask_b = mask_ref[b:b + 1, :]                                 # (1, S) additive
            out_b = jnp.zeros((SEQ, HIDDEN), jnp.float32)
            for hh in range(NUM_HEADS):
                c0 = hh * HEAD_DIM
                q = qkv_scr[r0:r0 + SEQ, c0:c0 + HEAD_DIM]                # (S, D)
                k = qkv_scr[r0:r0 + SEQ, HIDDEN + c0:HIDDEN + c0 + HEAD_DIM]
                v = qkv_scr[r0:r0 + SEQ, 2 * HIDDEN + c0:2 * HIDDEN + c0 + HEAD_DIM]
                # q @ k.T without materializing a transpose (contract last dims)
                s = jax.lax.dot_general(
                    q, k, (((1,), (1,)), ((), ())),
                    preferred_element_type=jnp.float32) * ATTN_SCALE + mask_b
                s = s - jnp.max(s, axis=-1, keepdims=True)
                p = jnp.exp(s)
                p = p * pl.reciprocal(jnp.sum(p, axis=-1, keepdims=True), approx=True)
                ctx = jnp.dot(p, v, preferred_element_type=jnp.float32)   # (S, D)
                # fold the output projection in per head: ctx @ wo[head rows]
                out_b = out_b + jnp.dot(
                    ctx, wo[c0:c0 + HEAD_DIM, :], preferred_element_type=jnp.float32)
            attn_scr[r0:r0 + SEQ, :] = out_b
        attn_out = attn_scr[...] + bo_ref[l]

        # residual + LayerNorm 1 (attention-output dropout = identity in eval mode)
        h = _layernorm(attn_out + h, ln1g_ref[l], ln1b_ref[l])

        # FFN: gelu(h @ wi + bi) @ wf + bf
        # TODO(synk): HF bert-base uses exact (erf) GELU; tanh-approx kept for safe Mosaic lowering.
        inter = jax.nn.gelu(
            jnp.dot(h, wi_ref[l], preferred_element_type=jnp.float32) + bi_ref[l])
        ffn = jnp.dot(inter, wf_ref[l], preferred_element_type=jnp.float32) + bf_ref[l]

        # residual + LayerNorm 2
        h = _layernorm(ffn + h, ln2g_ref[l], ln2b_ref[l])

    # ---- pooler: tanh(W . h[:,0] + b); classifier: dropout(identity) + Linear(H, 2) ----
    pool_w = pool_w_ref[...]
    pool_b = pool_b_ref[...]
    fc_w = fc_w_ref[...]
    fc_b = fc_b_ref[...]
    for b in range(BATCH):
        cls = h[b * SEQ:b * SEQ + 1, :]                                   # (1, H) CLS token
        pooled = jnp.tanh(
            jnp.dot(cls, pool_w, preferred_element_type=jnp.float32) + pool_b)
        logits_ref[b:b + 1, :] = (
            jnp.dot(pooled, fc_w, preferred_element_type=jnp.float32) + fc_b)


# ---------------- parameter init (deterministic, synthetic) ----------------
def init_params(key):
    def normal(k, shape):
        return 0.02 * jax.random.normal(k, shape, dtype=jnp.float32)

    ks = jax.random.split(key, 9)
    L, H, I = NUM_LAYERS, HIDDEN, INTERMEDIATE
    return {
        "word_emb": normal(ks[0], (VOCAB, H)),
        "pos_emb": normal(ks[1], (MAX_POS, H)),
        "tok_emb": normal(ks[2], (2, H)),
        "emb_ln_g": jnp.ones((1, H), jnp.float32),
        "emb_ln_b": jnp.zeros((1, H), jnp.float32),
        # per-layer weights stacked on a leading layer axis; q/k/v concatenated along N
        "wqkv": normal(ks[3], (L, H, 3 * H)),
        "bqkv": jnp.zeros((L, 1, 3 * H), jnp.float32),
        "wo": normal(ks[4], (L, H, H)),
        "bo": jnp.zeros((L, 1, H), jnp.float32),
        "ln1_g": jnp.ones((L, 1, H), jnp.float32),
        "ln1_b": jnp.zeros((L, 1, H), jnp.float32),
        "wi": normal(ks[5], (L, H, I)),
        "bi": jnp.zeros((L, 1, I), jnp.float32),
        "wf": normal(ks[6], (L, I, H)),
        "bf": jnp.zeros((L, 1, H), jnp.float32),
        "ln2_g": jnp.ones((L, 1, H), jnp.float32),
        "ln2_b": jnp.zeros((L, 1, H), jnp.float32),
        "pool_w": normal(ks[7], (H, H)),
        "pool_b": jnp.zeros((1, H), jnp.float32),
        "fc_w": normal(ks[8], (H, NUM_CLASSES)),
        "fc_b": jnp.zeros((1, NUM_CLASSES), jnp.float32),
    }


# ---------------- forward pass (BERTClassifier.forward) ----------------
def bert_classifier_forward(params, input_ids, attention_mask):
    B, S = input_ids.shape

    # embeddings (table gather is glue, done in plain JAX); token_type_ids = 0
    emb = (params["word_emb"][input_ids]
           + params["pos_emb"][jnp.arange(S)][None, :, :]
           + params["tok_emb"][0][None, None, :])
    emb = emb.reshape(B * S, HIDDEN).astype(jnp.float32)

    # extended additive attention mask, BERT convention: (B, S)
    ext_mask = (1.0 - attention_mask.astype(jnp.float32)) * -10000.0

    return pl.pallas_call(
        _bert_forward_kernel,
        out_shape=jax.ShapeDtypeStruct((B, NUM_CLASSES), jnp.float32),
        scratch_shapes=[
            pltpu.VMEM((B * S, 3 * HIDDEN), jnp.float32),   # fused QKV activations
            pltpu.VMEM((B * S, HIDDEN), jnp.float32),       # attention output slab
        ],
    )(emb, ext_mask,
      params["emb_ln_g"], params["emb_ln_b"],
      params["wqkv"], params["bqkv"], params["wo"], params["bo"],
      params["ln1_g"], params["ln1_b"],
      params["wi"], params["bi"], params["wf"], params["bf"],
      params["ln2_g"], params["ln2_b"],
      params["pool_w"], params["pool_b"], params["fc_w"], params["fc_b"])


if __name__ == "__main__":
    key = jax.random.PRNGKey(0)
    pkey, idkey = jax.random.split(key)
    params = init_params(pkey)

    input_ids = jax.random.randint(idkey, (BATCH, SEQ), 0, VOCAB, dtype=jnp.int32)
    attention_mask = jnp.ones((BATCH, SEQ), dtype=jnp.int32)
    attention_mask = attention_mask.at[1, 6:].set(0)       # pad tail of second example

    fwd = jax.jit(bert_classifier_forward)
    logits = fwd(params, input_ids, attention_mask)
    jax.block_until_ready(logits)
    assert logits.shape == (BATCH, NUM_CLASSES)
    print("KERNEL_OK")
</pallas_src>

<mosaic_0001>
module attributes {stable_mosaic.version = 11 : i64} {
  func.func @_bert_forward_kernel(%arg0: memref<16x32xf32, #tpu.memory_space<vmem>>, %arg1: memref<2x8xf32, #tpu.memory_space<vmem>>, %arg2: memref<1x32xf32, #tpu.memory_space<vmem>>, %arg3: memref<1x32xf32, #tpu.memory_space<vmem>>, %arg4: memref<2x32x96xf32, #tpu.memory_space<vmem>>, %arg5: memref<2x1x96xf32, #tpu.memory_space<vmem>>, %arg6: memref<2x32x32xf32, #tpu.memory_space<vmem>>, %arg7: memref<2x1x32xf32, #tpu.memory_space<vmem>>, %arg8: memref<2x1x32xf32, #tpu.memory_space<vmem>>, %arg9: memref<2x1x32xf32, #tpu.memory_space<vmem>>, %arg10: memref<2x32x64xf32, #tpu.memory_space<vmem>>, %arg11: memref<2x1x64xf32, #tpu.memory_space<vmem>>, %arg12: memref<2x64x32xf32, #tpu.memory_space<vmem>>, %arg13: memref<2x1x32xf32, #tpu.memory_space<vmem>>, %arg14: memref<2x1x32xf32, #tpu.memory_space<vmem>>, %arg15: memref<2x1x32xf32, #tpu.memory_space<vmem>>, %arg16: memref<32x32xf32, #tpu.memory_space<vmem>>, %arg17: memref<1x32xf32, #tpu.memory_space<vmem>>, %arg18: memref<32x2xf32, #tpu.memory_space<vmem>>, %arg19: memref<1x2xf32, #tpu.memory_space<vmem>>, %arg20: memref<2x2xf32, #tpu.memory_space<vmem>>, %arg21: memref<16x96xf32, #tpu.memory_space<vmem>>, %arg22: memref<16x32xf32, #tpu.memory_space<vmem>>) attributes {dimension_semantics = [], scalar_prefetch = 0 : i64, scratch_operands = 2 : i64, tpu.core_type = #tpu.core_type<tc>} {
    %c0 = arith.constant 0 : index
    %c0_0 = arith.constant 0 : index
    %0 = vector.load %arg0[%c0, %c0_0] : memref<16x32xf32, #tpu.memory_space<vmem>>, vector<16x32xf32>
    %c0_1 = arith.constant 0 : index
    %c0_2 = arith.constant 0 : index
    %1 = vector.load %arg2[%c0_1, %c0_2] : memref<1x32xf32, #tpu.memory_space<vmem>>, vector<1x32xf32>
    %c0_3 = arith.constant 0 : index
    %c0_4 = arith.constant 0 : index
    %2 = vector.load %arg3[%c0_3, %c0_4] : memref<1x32xf32, #tpu.memory_space<vmem>>, vector<1x32xf32>
    %cst = arith.constant dense<0.000000e+00> : vector<16xf32>
    %3 = vector.multi_reduction <add>, %0, %cst [1] : vector<16x32xf32> to vector<16xf32>
    %4 = vector.shape_cast %3 : vector<16xf32> to vector<16x1xf32>
    %cst_5 = arith.constant 3.200000e+01 : f32
    %5 = vector.broadcast %cst_5 : f32 to vector<16x1xf32>
    %6 = arith.divf %4, %5 : vector<16x1xf32>
    %7 = vector.broadcast %6 : vector<16x1xf32> to vector<16x32xf32>
    %8 = arith.subf %0, %7 : vector<16x32xf32>
    %9 = arith.mulf %8, %8 : vector<16x32xf32>
    %cst_6 = arith.constant dense<0.000000e+00> : vector<16xf32>
    %10 = vector.multi_reduction <add>, %9, %cst_6 [1] : vector<16x32xf32> to vector<16xf32>
    %11 = vector.shape_cast %10 : vector<16xf32> to vector<16x1xf32>
    %cst_7 = arith.constant 3.200000e+01 : f32
    %12 = vector.broadcast %cst_7 : f32 to vector<16x1xf32>
    %13 = arith.divf %11, %12 : vector<16x1xf32>
    %14 = vector.broadcast %6 : vector<16x1xf32> to vector<16x32xf32>
    %15 = arith.subf %0, %14 : vector<16x32xf32>
    %cst_8 = arith.constant 9.99999996E-13 : f32
    %16 = vector.broadcast %cst_8 : f32 to vector<16x1xf32>
    %17 = arith.addf %13, %16 : vector<16x1xf32>
    %18 = math.rsqrt %17 : vector<16x1xf32>
    %19 = vector.broadcast %18 : vector<16x1xf32> to vector<16x32xf32>
    %20 = arith.mulf %15, %19 : vector<16x32xf32>
    %21 = vector.broadcast %1 : vector<1x32xf32> to vector<16x32xf32>
    %22 = arith.mulf %20, %21 : vector<16x32xf32>
    %23 = vector.broadcast %2 : vector<1x32xf32> to vector<16x32xf32>
    %24 = arith.addf %22, %23 : vector<16x32xf32>
    %c0_9 = arith.constant 0 : index
    %c0_10 = arith.constant 0 : index
    %c0_11 = arith.constant 0 : index
    %25 = vector.load %arg4[%c0_9, %c0_10, %c0_11] : memref<2x32x96xf32, #tpu.memory_space<vmem>>, vector<1x32x96xf32>
    %26 = vector.shape_cast %25 : vector<1x32x96xf32> to vector<32x96xf32>
    %cst_12 = arith.constant dense<0.000000e+00> : vector<16x96xf32>
    %27 = tpu.matmul %24, %26, %cst_12 {dimension_numbers = #tpu.dot_dimension_numbers<[1], [0], [0], [1], [0, 0, 1, 1], [], []>} : vector<16x32xf32>, vector<32x96xf32>, vector<16x96xf32> -> vector<16x96xf32>
    %c0_13 = arith.constant 0 : index
    %c0_14 = arith.constant 0 : index
    %c0_15 = arith.constant 0 : index
    %28 = vector.load %arg5[%c0_13, %c0_14, %c0_15] : memref<2x1x96xf32, #tpu.memory_space<vmem>>, vector<1x1x96xf32>
    %29 = vector.shape_cast %28 : vector<1x1x96xf32> to vector<1x96xf32>
    %30 = vector.broadcast %29 : vector<1x96xf32> to vector<16x96xf32>
    %31 = arith.addf %27, %30 : vector<16x96xf32>
    %c0_16 = arith.constant 0 : index
    %c0_17 = arith.constant 0 : index
    %32 = vector.load %arg21[%c0_16, %c0_17] : memref<16x96xf32, #tpu.memory_space<vmem>>, vector<16x96xf32>
    tpu.vector_store %arg21[%c0_16, %c0_17], %31 {strides = array<i32>} : memref<16x96xf32, #tpu.memory_space<vmem>>, vector<16x96xf32>,
    %c0_18 = arith.constant 0 : index
    %c0_19 = arith.constant 0 : index
    %c0_20 = arith.constant 0 : index
    %33 = vector.load %arg6[%c0_18, %c0_19, %c0_20] : memref<2x32x32xf32, #tpu.memory_space<vmem>>, vector<1x32x32xf32>
    %34 = vector.shape_cast %33 : vector<1x32x32xf32> to vector<32x32xf32>
    %c0_21 = arith.constant 0 : index
    %c0_22 = arith.constant 0 : index
    %35 = vector.load %arg1[%c0_21, %c0_22] : memref<2x8xf32, #tpu.memory_space<vmem>>, vector<1x8xf32>
    %cst_23 = arith.constant 0.000000e+00 : f32
    %36 = vector.broadcast %cst_23 : f32 to vector<8x32xf32>
    %c0_24 = arith.constant 0 : index
    %c0_25 = arith.constant 0 : index
    %37 = vector.load %arg21[%c0_24, %c0_25] : memref<16x96xf32, #tpu.memory_space<vmem>>, vector<8x8xf32>
    %c0_26 = arith.constant 0 : index
    %c32 = arith.constant 32 : index
    %38 = vector.load %arg21[%c0_26, %c32] : memref<16x96xf32, #tpu.memory_space<vmem>>, vector<8x8xf32>
    %c0_27 = arith.constant 0 : index
    %c64 = arith.constant 64 : index
    %39 = vector.load %arg21[%c0_27, %c64] : memref<16x96xf32, #tpu.memory_space<vmem>>, vector<8x8xf32>
    %cst_28 = arith.constant dense<0.000000e+00> : vector<8x8xf32>
    %40 = tpu.matmul %37, %38, %cst_28 {dimension_numbers = #tpu.dot_dimension_numbers<[1], [1], [0], [0], [0, 0, 1, 0], [], []>} : vector<8x8xf32>, vector<8x8xf32>, vector<8x8xf32> -> vector<8x8xf32>
    %cst_29 = arith.constant 0.353553385 : f32
    %41 = vector.broadcast %cst_29 : f32 to vector<8x8xf32>
    %42 = arith.mulf %40, %41 : vector<8x8xf32>
    %43 = vector.broadcast %35 : vector<1x8xf32> to vector<8x8xf32>
    %44 = arith.addf %42, %43 : vector<8x8xf32>
    %cst_30 = arith.constant dense<0xFF800000> : vector<8xf32>
    %45 = vector.multi_reduction <maximumf>, %44, %cst_30 [1] : vector<8x8xf32> to vector<8xf32>
    %46 = vector.shape_cast %45 : vector<8xf32> to vector<8x1xf32>
    %47 = vector.broadcast %46 : vector<8x1xf32> to vector<8x8xf32>
    %48 = arith.subf %44, %47 : vector<8x8xf32>
    %49 = math.exp %48 : vector<8x8xf32>
    %cst_31 = arith.constant dense<0.000000e+00> : vector<8xf32>
    %50 = vector.multi_reduction <add>, %49, %cst_31 [1] : vector<8x8xf32> to vector<8xf32>
    %51 = vector.shape_cast %50 : vector<8xf32> to vector<8x1xf32>
    %52 = tpu.reciprocal %51 {approx = true} : vector<8x1xf32> -> vector<8x1xf32>
    %53 = vector.broadcast %52 : vector<8x1xf32> to vector<8x8xf32>
    %54 = arith.mulf %49, %53 : vector<8x8xf32>
    %cst_32 = arith.constant dense<0.000000e+00> : vector<8x8xf32>
    %55 = tpu.matmul %54, %39, %cst_32 {dimension_numbers = #tpu.dot_dimension_numbers<[1], [0], [0], [1], [0, 0, 1, 1], [], []>} : vector<8x8xf32>, vector<8x8xf32>, vector<8x8xf32> -> vector<8x8xf32>
    %56 = vector.extract_strided_slice %34 {offsets = [0, 0], sizes = [8, 32], strides = [1, 1]} : vector<32x32xf32> to vector<8x32xf32>
    %cst_33 = arith.constant dense<0.000000e+00> : vector<8x32xf32>
    %57 = tpu.matmul %55, %56, %cst_33 {dimension_numbers = #tpu.dot_dimension_numbers<[1], [0], [0], [1], [0, 0, 1, 1], [], []>} : vector<8x8xf32>, vector<8x32xf32>, vector<8x32xf32> -> vector<8x32xf32>
    %58 = arith.addf %36, %57 : vector<8x32xf32>
    %c0_34 = arith.constant 0 : index
    %c8 = arith.constant 8 : index
    %59 = vector.load %arg21[%c0_34, %c8] : memref<16x96xf32, #tpu.memory_space<vmem>>, vector<8x8xf32>
    %c0_35 = arith.constant 0 : index
    %c40 = arith.constant 40 : index
    %60 = vector.load %arg21[%c0_35, %c40] : memref<16x96xf32, #tpu.memory_space<vmem>>, vector<8x8xf32>
    %c0_36 = arith.constant 0 : index
    %c72 = arith.constant 72 : index
    %61 = vector.load %arg21[%c0_36, %c72] : memref<16x96xf32, #tpu.memory_space<vmem>>, vector<8x8xf32>
    %cst_37 = arith.constant dense<0.000000e+00> : vector<8x8xf32>
    %62 = tpu.matmul %59, %60, %cst_37 {dimension_numbers = #tpu.dot_dimension_numbers<[1], [1], [0], [0], [0, 0, 1, 0], [], []>} : vector<8x8xf32>, vector<8x8xf32>, vector<8x8xf32> -> vector<8x8xf32>
    %cst_38 = arith.constant 0.353553385 : f32
    %63 = vector.broadcast %cst_38 : f32 to vector<8x8xf32>
    %64 = arith.mulf %62, %63 : vector<8x8xf32>
    %65 = vector.broadcast %35 : vector<1x8xf32> to vector<8x8xf32>
    %66 = arith.addf %64, %65 : vector<8x8xf32>
    %cst_39 = arith.constant dense<0xFF800000> : vector<8xf32>
    %67 = vector.multi_reduction <maximumf>, %66, %cst_39 [1] : vector<8x8xf32> to vector<8xf32>
    %68 = vector.shape_cast %67 : vector<8xf32> to vector<8x1xf32>
    %69 = vector.broadcast %68 : vector<8x1xf32> to vector<8x8xf32>
    %70 = arith.subf %66, %69 : vector<8x8xf32>
    %71 = math.exp %70 : vector<8x8xf32>
    %cst_40 = arith.constant dense<0.000000e+00> : vector<8xf32>
    %72 = vector.multi_reduction <add>, %71, %cst_40 [1] : vector<8x8xf32> to vector<8xf32>
    %73 = vector.shape_cast %72 : vector<8xf32> to vector<8x1xf32>
    %74 = tpu.reciprocal %73 {approx = true} : vector<8x1xf32> -> vector<8x1xf32>
    %75 = vector.broadcast %74 : vector<8x1xf32> to vector<8x8xf32>
    %76 = arith.mulf %71, %75 : vector<8x8xf32>
    %cst_41 = arith.constant dense<0.000000e+00> : vector<8x8xf32>
    %77 = tpu.matmul %76, %61, %cst_41 {dimension_numbers = #tpu.dot_dimension_numbers<[1], [0], [0], [1], [0, 0, 1, 1], [], []>} : vector<8x8xf32>, vector<8x8xf32>, vector<8x8xf32> -> vector<8x8xf32>
    %78 = vector.extract_strided_slice %34 {offsets = [8, 0], sizes = [8, 32], strides = [1, 1]} : vector<32x32xf32> to vector<8x32xf32>
    %cst_42 = arith.constant dense<0.000000e+00> : vector<8x32xf32>
    %79 = tpu.matmul %77, %78, %cst_42 {dimension_numbers = #tpu.dot_dimension_numbers<[1], [0], [0], [1], [0, 0, 1, 1], [], []>} : vector<8x8xf32>, vector<8x32xf32>, vector<8x32xf32> -> vector<8x32xf32>
    %80 = arith.addf %58, %79 : vector<8x32xf32>
    %c0_43 = arith.constant 0 : index
    %c16 = arith.constant 16 : index
    %81 = vector.load %arg21[%c0_43, %c16] : memref<16x96xf32, #tpu.memory_space<vmem>>, vector<8x8xf32>
    %c0_44 = arith.constant 0 : index
    %c48 = arith.constant 48 : index
    %82 = vector.load %arg21[%c0_44, %c48] : memref<16x96xf32, #tpu.memory_space<vmem>>, vector<8x8xf32>
    %c0_45 = arith.constant 0 : index
    %c80 = arith.constant 80 : index
    %83 = vector.load %arg21[%c0_45, %c80] : memref<16x96xf32, #tpu.memory_space<vmem>>, vector<8x8xf32>
    %cst_46 = arith.constant dense<0.000000e+00> : vector<8x8xf32>
    %84 = tpu.matmul %81, %82, %cst_46 {dimension_numbers = #tpu.dot_dimension_numbers<[1], [1], [0], [0], [0, 0, 1, 0], [], []>} : vector<8x8xf32>, vector<8x8xf32>, vector<8x8xf32> -> vector<8x8xf32>
    %cst_47 = arith.constant 0.353553385 : f32
    %85 = vector.broadcast %cst_47 : f32 to vector<8x8xf32>
    %86 = arith.mulf %84, %85 : vector<8x8xf32>
    %87 = vector.broadcast %35 : vector<1x8xf32> to vector<8x8xf32>
    %88 = arith.addf %86, %87 : vector<8x8xf32>
    %cst_48 = arith.constant dense<0xFF800000> : vector<8xf32>
    %89 = vector.multi_reduction <maximumf>, %88, %cst_48 [1] : vector<8x8xf32> to vector<8xf32>
    %90 = vector.shape_cast %89 : vector<8xf32> to vector<8x1xf32>
    %91 = vector.broadcast %90 : vector<8x1xf32> to vector<8x8xf32>
    %92 = arith.subf %88, %91 : vector<8x8xf32>
    %93 = math.exp %92 : vector<8x8xf32>
    %cst_49 = arith.constant dense<0.000000e+00> : vector<8xf32>
    %94 = vector.multi_reduction <add>, %93, %cst_49 [1] : vector<8x8xf32> to vector<8xf32>
    %95 = vector.shape_cast %94 : vector<8xf32> to vector<8x1xf32>
    %96 = tpu.reciprocal %95 {approx = true} : vector<8x1xf32> -> vector<8x1xf32>
    %97 = vector.broadcast %96 : vector<8x1xf32> to vector<8x8xf32>
    %98 = arith.mulf %93, %97 : vector<8x8xf32>
    %cst_50 = arith.constant dense<0.000000e+00> : vector<8x8xf32>
    %99 = tpu.matmul %98, %83, %cst_50 {dimension_numbers = #tpu.dot_dimension_numbers<[1], [0], [0], [1], [0, 0, 1, 1], [], []>} : vector<8x8xf32>, vector<8x8xf32>, vector<8x8xf32> -> vector<8x8xf32>
    %100 = vector.extract_strided_slice %34 {offsets = [16, 0], sizes = [8, 32], strides = [1, 1]} : vector<32x32xf32> to vector<8x32xf32>
    %cst_51 = arith.constant dense<0.000000e+00> : vector<8x32xf32>
    %101 = tpu.matmul %99, %100, %cst_51 {dimension_numbers = #tpu.dot_dimension_numbers<[1], [0], [0], [1], [0, 0, 1, 1], [], []>} : vector<8x8xf32>, vector<8x32xf32>, vector<8x32xf32> -> vector<8x32xf32>
    %102 = arith.addf %80, %101 : vector<8x32xf32>
    %c0_52 = arith.constant 0 : index
    %c24 = arith.constant 24 : index
    %103 = vector.load %arg21[%c0_52, %c24] : memref<16x96xf32, #tpu.memory_space<vmem>>, vector<8x8xf32>
    %c0_53 = arith.constant 0 : index
    %c56 = arith.constant 56 : index
    %104 = vector.load %arg21[%c0_53, %c56] : memref<16x96xf32, #tpu.memory_space<vmem>>, vector<8x8xf32>
    %c0_54 = arith.constant 0 : index
    %c88 = arith.constant 88 : index
    %105 = vector.load %arg21[%c0_54, %c88] : memref<16x96xf32, #tpu.memory_space<vmem>>, vector<8x8xf32>
    %cst_55 = arith.constant dense<0.000000e+00> : vector<8x8xf32>
    %106 = tpu.matmul %103, %104, %cst_55 {dimension_numbers = #tpu.dot_dimension_numbers<[1], [1], [0], [0], [0, 0, 1, 0], [], []>} : vector<8x8xf32>, vector<8x8xf32>, vector<8x8xf32> -> vector<8x8xf32>
    %cst_56 = arith.constant 0.353553385 : f32
    %107 = vector.broadcast %cst_56 : f32 to vector<8x8xf32>
    %108 = arith.mulf %106, %107 : vector<8x8xf32>
    %109 = vector.broadcast %35 : vector<1x8xf32> to vector<8x8xf32>
    %110 = arith.addf %108, %109 : vector<8x8xf32>
    %cst_57 = arith.constant dense<0xFF800000> : vector<8xf32>
    %111 = vector.multi_reduction <maximumf>, %110, %cst_57 [1] : vector<8x8xf32> to vector<8xf32>
    %112 = vector.shape_cast %111 : vector<8xf32> to vector<8x1xf32>
    %113 = vector.broadcast %112 : vector<8x1xf32> to vector<8x8xf32>
    %114 = arith.subf %110, %113 : vector<8x8xf32>
    %115 = math.exp %114 : vector<8x8xf32>
    %cst_58 = arith.constant dense<0.000000e+00> : vector<8xf32>
    %116 = vector.multi_reduction <add>, %115, %cst_58 [1] : vector<8x8xf32> to vector<8xf32>
    %117 = vector.shape_cast %116 : vector<8xf32> to vector<8x1xf32>
    %118 = tpu.reciprocal %117 {approx = true} : vector<8x1xf32> -> vector<8x1xf32>
    %119 = vector.broadcast %118 : vector<8x1xf32> to vector<8x8xf32>
    %120 = arith.mulf %115, %119 : vector<8x8xf32>
    %cst_59 = arith.constant dense<0.000000e+00> : vector<8x8xf32>
    %121 = tpu.matmul %120, %105, %cst_59 {dimension_numbers = #tpu.dot_dimension_numbers<[1], [0], [0], [1], [0, 0, 1, 1], [], []>} : vector<8x8xf32>, vector<8x8xf32>, vector<8x8xf32> -> vector<8x8xf32>
    %122 = vector.extract_strided_slice %34 {offsets = [24, 0], sizes = [8, 32], strides = [1, 1]} : vector<32x32xf32> to vector<8x32xf32>
    %cst_60 = arith.constant dense<0.000000e+00> : vector<8x32xf32>
    %123 = tpu.matmul %121, %122, %cst_60 {dimension_numbers = #tpu.dot_dimension_numbers<[1], [0], [0], [1], [0, 0, 1, 1], [], []>} : vector<8x8xf32>, vector<8x32xf32>, vector<8x32xf32> -> vector<8x32xf32>
    %124 = arith.addf %102, %123 : vector<8x32xf32>
    %c0_61 = arith.constant 0 : index
    %c0_62 = arith.constant 0 : index
    %125 = vector.load %arg22[%c0_61, %c0_62] : memref<16x32xf32, #tpu.memory_space<vmem>>, vector<8x32xf32>
    tpu.vector_store %arg22[%c0_61, %c0_62], %124 {strides = array<i32>} : memref<16x32xf32, #tpu.memory_space<vmem>>, vector<8x32xf32>,
    %c1 = arith.constant 1 : index
    %c0_63 = arith.constant 0 : index
    %126 = vector.load %arg1[%c1, %c0_63] : memref<2x8xf32, #tpu.memory_space<vmem>>, vector<1x8xf32>
    %cst_64 = arith.constant 0.000000e+00 : f32
    %127 = vector.broadcast %cst_64 : f32 to vector<8x32xf32>
    %c8_65 = arith.constant 8 : index
    %c0_66 = arith.constant 0 : index
    %128 = vector.load %arg21[%c8_65, %c0_66] : memref<16x96xf32, #tpu.memory_space<vmem>>, vector<8x8xf32>
    %c8_67 = arith.constant 8 : index
    %c32_68 = arith.constant 32 : index
    %129 = vector.load %arg21[%c8_67, %c32_68] : memref<16x96xf32, #tpu.memory_space<vmem>>, vector<8x8xf32>
    %c8_69 = arith.constant 8 : index
    %c64_70 = arith.constant 64 : index
    %130 = vector.load %arg21[%c8_69, %c64_70] : memref<16x96xf32, #tpu.memory_space<vmem>>, vector<8x8xf32>
    %cst_71 = arith.constant dense<0.000000e+00> : vector<8x8xf32>
    %131 = tpu.matmul %128, %129, %cst_71 {dimension_numbers = #tpu.dot_dimension_numbers<[1], [1], [0], [0], [0, 0, 1, 0], [], []>} : vector<8x8xf32>, vector<8x8xf32>, vector<8x8xf32> -> vector<8x8xf32>
    %cst_72 = arith.constant 0.353553385 : f32
    %132 = vector.broadcast %cst_72 : f32 to vector<8x8xf32>
    %133 = arith.mulf %131, %132 : vector<8x8xf32>
    %134 = vector.broadcast %126 : vector<1x8xf32> to vector<8x8xf32>
    %135 = arith.addf %133, %134 : vector<8x8xf32>
    %cst_73 = arith.constant dense<0xFF800000> : vector<8xf32>
    %136 = vector.multi_reduction <maximumf>, %135, %cst_73 [1] : vector<8x8xf32> to vector<8xf32>
    %137 = vector.shape_cast %136 : vector<8xf32> to vector<8x1xf32>
    %138 = vector.broadcast %137 : vector<8x1xf32> to vector<8x8xf32>
    %139 = arith.subf %135, %138 : vector<8x8xf32>
    %140 = math.exp %139 : vector<8x8xf32>
    %cst_74 = arith.constant dense<0.000000e+00> : vector<8xf32>
    %141 = vector.multi_reduction <add>, %140, %cst_74 [1] : vector<8x8xf32> to vector<8xf32>
    %142 = vector.shape_cast %141 : vector<8xf32> to vector<8x1xf32>
    %143 = tpu.reciprocal %142 {approx = true} : vector<8x1xf32> -> vector<8x1xf32>
    %144 = vector.broadcast %143 : vector<8x1xf32> to vector<8x8xf32>
    %145 = arith.mulf %140, %144 : vector<8x8xf32>
    %cst_75 = arith.constant dense<0.000000e+00> : vector<8x8xf32>
    %146 = tpu.matmul %145, %130, %cst_75 {dimension_numbers = #tpu.dot_dimension_numbers<[1], [0], [0], [1], [0, 0, 1, 1], [], []>} : vector<8x8xf32>, vector<8x8xf32>, vector<8x8xf32> -> vector<8x8xf32>
    %147 = vector.extract_strided_slice %34 {offsets = [0, 0], sizes = [8, 32], strides = [1, 1]} : vector<32x32xf32> to vector<8x32xf32>
    %cst_76 = arith.constant dense<0.000000e+00> : vector<8x32xf32>
    %148 = tpu.matmul %146, %147, %cst_76 {dimension_numbers = #tpu.dot_dimension_numbers<[1], [0], [0], [1], [0, 0, 1, 1], [], []>} : vector<8x8xf32>, vector<8x32xf32>, vector<8x32xf32> -> vector<8x32xf32>
    %149 = arith.addf %127, %148 : vector<8x32xf32>
    %c8_77 = arith.constant 8 : index
    %c8_78 = arith.constant 8 : index
    %150 = vector.load %arg21[%c8_77, %c8_78] : memref<16x96xf32, #tpu.memory_space<vmem>>, vector<8x8xf32>
    %c8_79 = arith.constant 8 : index
    %c40_80 = arith.constant 40 : index
    %151 = vector.load %arg21[%c8_79, %c40_80] : memref<16x96xf32, #tpu.memory_space<vmem>>, vector<8x8xf32>
    %c8_81 = arith.constant 8 : index
    %c72_82 = arith.constant 72 : index
    %152 = vector.load %arg21[%c8_81, %c72_82] : memref<16x96xf32, #tpu.memory_space<vmem>>, vector<8x8xf32>
    %cst_83 = arith.constant dense<0.000000e+00> : vector<8x8xf32>
    %153 = tpu.matmul %150, %151, %cst_83 {dimension_numbers = #tpu.dot_dimension_numbers<[1], [1], [0], [0], [0, 0, 1, 0], [], []>} : vector<8x8xf32>, vector<8x8xf32>, vector<8x8xf32> -> vector<8x8xf32>
    %cst_84 = arith.constant 0.353553385 : f32
    %154 = vector.broadcast %cst_84 : f32 to vector<8x8xf32>
    %155 = arith.mulf %153, %154 : vector<8x8xf32>
    %156 = vector.broadcast %126 : vector<1x8xf32> to vector<8x8xf32>
    %157 = arith.addf %155, %156 : vector<8x8xf32>
    %cst_85 = arith.constant dense<0xFF800000> : vector<8xf32>
    %158 = vector.multi_reduction <maximumf>, %157, %cst_85 [1] : vector<8x8xf32> to vector<8xf32>
    %159 = vector.shape_cast %158 : vector<8xf32> to vector<8x1xf32>
    %160 = vector.broadcast %159 : vector<8x1xf32> to vector<8x8xf32>
    %161 = arith.subf %157, %160 : vector<8x8xf32>
    %162 = math.exp %161 : vector<8x8xf32>
    %cst_86 = arith.constant dense<0.000000e+00> : vector<8xf32>
    %163 = vector.multi_reduction <add>, %162, %cst_86 [1] : vector<8x8xf32> to vector<8xf32>
    %164 = vector.shape_cast %163 : vector<8xf32> to vector<8x1xf32>
    %165 = tpu.reciprocal %164 {approx = true} : vector<8x1xf32> -> vector<8x1xf32>
    %166 = vector.broadcast %165 : vector<8x1xf32> to vector<8x8xf32>
    %167 = arith.mulf %162, %166 : vector<8x8xf32>
    %cst_87 = arith.constant dense<0.000000e+00> : vector<8x8xf32>
    %168 = tpu.matmul %167, %152, %cst_87 {dimension_numbers = #tpu.dot_dimension_numbers<[1], [0], [0], [1], [0, 0, 1, 1], [], []>} : vector<8x8xf32>, vector<8x8xf32>, vector<8x8xf32> -> vector<8x8xf32>
    %169 = vector.extract_strided_slice %34 {offsets = [8, 0], sizes = [8, 32], strides = [1, 1]} : vector<32x32xf32> to vector<8x32xf32>
    %cst_88 = arith.constant dense<0.000000e+00> : vector<8x32xf32>
    %170 = tpu.matmul %168, %169, %cst_88 {dimension_numbers = #tpu.dot_dimension_numbers<[1], [0], [0], [1], [0, 0, 1, 1], [], []>} : vector<8x8xf32>, vector<8x32xf32>, vector<8x32xf32> -> vector<8x32xf32>
    %171 = arith.addf %149, %170 : vector<8x32xf32>
    %c8_89 = arith.constant 8 : index
    %c16_90 = arith.constant 16 : index
    %172 = vector.load %arg21[%c8_89, %c16_90] : memref<16x96xf32, #tpu.memory_space<vmem>>, vector<8x8xf32>
    %c8_91 = arith.constant 8 : index
    %c48_92 = arith.constant 48 : index
    %173 = vector.load %arg21[%c8_91, %c48_92] : memref<16x96xf32, #tpu.memory_space<vmem>>, vector<8x8xf32>
    %c8_93 = arith.constant 8 : index
    %c80_94 = arith.constant 80 : index
    %174 = vector.load %arg21[%c8_93, %c80_94] : memref<16x96xf32, #tpu.memory_space<vmem>>, vector<8x8xf32>
    %cst_95 = arith.constant dense<0.000000e+00> : vector<8x8xf32>
    %175 = tpu.matmul %172, %173, %cst_95 {dimension_numbers = #tpu.dot_dimension_numbers<[1], [1], [0], [0], [0, 0, 1, 0], [], []>} : vector<8x8xf32>, vector<8x8xf32>, vector<8x8xf32> -> vector<8x8xf32>
    %cst_96 = arith.constant 0.353553385 : f32
    %176 = vector.broadcast %cst_96 : f32 to vector<8x8xf32>
    %177 = arith.mulf %175, %176 : vector<8x8xf32>
    %178 = vector.broadcast %126 : vector<1x8xf32> to vector<8x8xf32>
    %179 = arith.addf %177, %178 : vector<8x8xf32>
    %cst_97 = arith.constant dense<0xFF800000> : vector<8xf32>
    %180 = vector.multi_reduction <maximumf>, %179, %cst_97 [1] : vector<8x8xf32> to vector<8xf32>
    %181 = vector.shape_cast %180 : vector<8xf32> to vector<8x1xf32>
    %182 = vector.broadcast %181 : vector<8x1xf32> to vector<8x8xf32>
    %183 = arith.subf %179, %182 : vector<8x8xf32>
    %184 = math.exp %183 : vector<8x8xf32>
    %cst_98 = arith.constant dense<0.000000e+00> : vector<8xf32>
    %185 = vector.multi_reduction <add>, %184, %cst_98 [1] : vector<8x8xf32> to vector<8xf32>
    %186 = vector.shape_cast %185 : vector<8xf32> to vector<8x1xf32>
    %187 = tpu.reciprocal %186 {approx = true} : vector<8x1xf32> -> vector<8x1xf32>
    %188 = vector.broadcast %187 : vector<8x1xf32> to vector<8x8xf32>
    %189 = arith.mulf %184, %188 : vector<8x8xf32>
    %cst_99 = arith.constant dense<0.000000e+00> : vector<8x8xf32>
    %190 = tpu.matmul %189, %174, %cst_99 {dimension_numbers = #tpu.dot_dimension_numbers<[1], [0], [0], [1], [0, 0, 1, 1], [], []>} : vector<8x8xf32>, vector<8x8xf32>, vector<8x8xf32> -> vector<8x8xf32>
    %191 = vector.extract_strided_slice %34 {offsets = [16, 0], sizes = [8, 32], strides = [1, 1]} : vector<32x32xf32> to vector<8x32xf32>
    %cst_100 = arith.constant dense<0.000000e+00> : vector<8x32xf32>
    %192 = tpu.matmul %190, %191, %cst_100 {dimension_numbers = #tpu.dot_dimension_numbers<[1], [0], [0], [1], [0, 0, 1, 1], [], []>} : vector<8x8xf32>, vector<8x32xf32>, vector<8x32xf32> -> vector<8x32xf32>
    %193 = arith.addf %171, %192 : vector<8x32xf32>
    %c8_101 = arith.constant 8 : index
    %c24_102 = arith.constant 24 : index
    %194 = vector.load %arg21[%c8_101, %c24_102] : memref<16x96xf32, #tpu.memory_space<vmem>>, vector<8x8xf32>
    %c8_103 = arith.constant 8 : index
    %c56_104 = arith.constant 56 : index
    %195 = vector.load %arg21[%c8_103, %c56_104] : memref<16x96xf32, #tpu.memory_space<vmem>>, vector<8x8xf32>
    %c8_105 = arith.constant 8 : index
    %c88_106 = arith.constant 88 : index
    %196 = vector.load %arg21[%c8_105, %c88_106] : memref<16x96xf32, #tpu.memory_space<vmem>>, vector<8x8xf32>
    %cst_107 = arith.constant dense<0.000000e+00> : vector<8x8xf32>
    %197 = tpu.matmul %194, %195, %cst_107 {dimension_numbers = #tpu.dot_dimension_numbers<[1], [1], [0], [0], [0, 0, 1, 0], [], []>} : vector<8x8xf32>, vector<8x8xf32>, vector<8x8xf32> -> vector<8x8xf32>
    %cst_108 = arith.constant 0.353553385 : f32
    %198 = vector.broadcast %cst_108 : f32 to vector<8x8xf32>
    %199 = arith.mulf %197, %198 : vector<8x8xf32>
    %200 = vector.broadcast %126 : vector<1x8xf32> to vector<8x8xf32>
    %201 = arith.addf %199, %200 : vector<8x8xf32>
    %cst_109 = arith.constant dense<0xFF800000> : vector<8xf32>
    %202 = vector.multi_reduction <maximumf>, %201, %cst_109 [1] : vector<8x8xf32> to vector<8xf32>
    %203 = vector.shape_cast %202 : vector<8xf32> to vector<8x1xf32>
    %204 = vector.broadcast %203 : vector<8x1xf32> to vector<8x8xf32>
    %205 = arith.subf %201, %204 : vector<8x8xf32>
    %206 = math.exp %205 : vector<8x8xf32>
    %cst_110 = arith.constant dense<0.000000e+00> : vector<8xf32>
    %207 = vector.multi_reduction <add>, %206, %cst_110 [1] : vector<8x8xf32> to vector<8xf32>
    %208 = vector.shape_cast %207 : vector<8xf32> to vector<8x1xf32>
    %209 = tpu.reciprocal %208 {approx = true} : vector<8x1xf32> -> vector<8x1xf32>
    %210 = vector.broadcast %209 : vector<8x1xf32> to vector<8x8xf32>
    %211 = arith.mulf %206, %210 : vector<8x8xf32>
    %cst_111 = arith.constant dense<0.000000e+00> : vector<8x8xf32>
    %212 = tpu.matmul %211, %196, %cst_111 {dimension_numbers = #tpu.dot_dimension_numbers<[1], [0], [0], [1], [0, 0, 1, 1], [], []>} : vector<8x8xf32>, vector<8x8xf32>, vector<8x8xf32> -> vector<8x8xf32>
    %213 = vector.extract_strided_slice %34 {offsets = [24, 0], sizes = [8, 32], strides = [1, 1]} : vector<32x32xf32> to vector<8x32xf32>
    %cst_112 = arith.constant dense<0.000000e+00> : vector<8x32xf32>
    %214 = tpu.matmul %212, %213, %cst_112 {dimension_numbers = #tpu.dot_dimension_numbers<[1], [0], [0], [1], [0, 0, 1, 1], [], []>} : vector<8x8xf32>, vector<8x32xf32>, vector<8x32xf32> -> vector<8x32xf32>
    %215 = arith.addf %193, %214 : vector<8x32xf32>
    %c8_113 = arith.constant 8 : index
    %c0_114 = arith.constant 0 : index
    %216 = vector.load %arg22[%c8_113, %c0_114] : memref<16x32xf32, #tpu.memory_space<vmem>>, vector<8x32xf32>
    tpu.vector_store %arg22[%c8_113, %c0_114], %215 {strides = array<i32>} : memref<16x32xf32, #tpu.memory_space<vmem>>, vector<8x32xf32>,
    %c0_115 = arith.constant 0 : index
    %c0_116 = arith.constant 0 : index
    %217 = vector.load %arg22[%c0_115, %c0_116] : memref<16x32xf32, #tpu.memory_space<vmem>>, vector<16x32xf32>
    %c0_117 = arith.constant 0 : index
    %c0_118 = arith.constant 0 : index
    %c0_119 = arith.constant 0 : index
    %218 = vector.load %arg7[%c0_117, %c0_118, %c0_119] : memref<2x1x32xf32, #tpu.memory_space<vmem>>, vector<1x1x32xf32>
    %219 = vector.shape_cast %218 : vector<1x1x32xf32> to vector<1x32xf32>
    %220 = vector.broadcast %219 : vector<1x32xf32> to vector<16x32xf32>
    %221 = arith.addf %217, %220 : vector<16x32xf32>
    %222 = arith.addf %221, %24 : vector<16x32xf32>
    %c0_120 = arith.constant 0 : index
    %c0_121 = arith.constant 0 : index
    %c0_122 = arith.constant 0 : index
    %223 = vector.load %arg8[%c0_120, %c0_121, %c0_122] : memref<2x1x32xf32, #tpu.memory_space<vmem>>, vector<1x1x32xf32>
    %224 = vector.shape_cast %223 : vector<1x1x32xf32> to vector<1x32xf32>
    %c0_123 = arith.constant 0 : index
    %c0_124 = arith.constant 0 : index
    %c0_125 = arith.constant 0 : index
    %225 = vector.load %arg9[%c0_123, %c0_124, %c0_125] : memref<2x1x32xf32, #tpu.memory_space<vmem>>, vector<1x1x32xf32>
    %226 = vector.shape_cast %225 : vector<1x1x32xf32> to vector<1x32xf32>
    %cst_126 = arith.constant dense<0.000000e+00> : vector<16xf32>
    %227 = vector.multi_reduction <add>, %222, %cst_126 [1] : vector<16x32xf32> to vector<16xf32>
    %228 = vector.shape_cast %227 : vector<16xf32> to vector<16x1xf32>
    %cst_127 = arith.constant 3.200000e+01 : f32
    %229 = vector.broadcast %cst_127 : f32 to vector<16x1xf32>
    %230 = arith.divf %228, %229 : vector<16x1xf32>
    %231 = vector.broadcast %230 : vector<16x1xf32> to vector<16x32xf32>
    %232 = arith.subf %222, %231 : vector<16x32xf32>
    %233 = arith.mulf %232, %232 : vector<16x32xf32>
    %cst_128 = arith.constant dense<0.000000e+00> : vector<16xf32>
    %234 = vector.multi_reduction <add>, %233, %cst_128 [1] : vector<16x32xf32> to vector<16xf32>
    %235 = vector.shape_cast %234 : vector<16xf32> to vector<16x1xf32>
    %cst_129 = arith.constant 3.200000e+01 : f32
    %236 = vector.broadcast %cst_129 : f32 to vector<16x1xf32>
    %237 = arith.divf %235, %236 : vector<16x1xf32>
    %238 = vector.broadcast %230 : vector<16x1xf32> to vector<16x32xf32>
    %239 = arith.subf %222, %238 : vector<16x32xf32>
    %cst_130 = arith.constant 9.99999996E-13 : f32
    %240 = vector.broadcast %cst_130 : f32 to vector<16x1xf32>
    %241 = arith.addf %237, %240 : vector<16x1xf32>
    %242 = math.rsqrt %241 : vector<16x1xf32>
    %243 = vector.broadcast %242 : vector<16x1xf32> to vector<16x32xf32>
    %244 = arith.mulf %239, %243 : vector<16x32xf32>
    %245 = vector.broadcast %224 : vector<1x32xf32> to vector<16x32xf32>
    %246 = arith.mulf %244, %245 : vector<16x32xf32>
    %247 = vector.broadcast %226 : vector<1x32xf32> to vector<16x32xf32>
    %248 = arith.addf %246, %247 : vector<16x32xf32>
    %c0_131 = arith.constant 0 : index
    %c0_132 = arith.constant 0 : index
    %c0_133 = arith.constant 0 : index
    %249 = vector.load %arg10[%c0_131, %c0_132, %c0_133] : memref<2x32x64xf32, #tpu.memory_space<vmem>>, vector<1x32x64xf32>
    %250 = vector.shape_cast %249 : vector<1x32x64xf32> to vector<32x64xf32>
    %cst_134 = arith.constant dense<0.000000e+00> : vector<16x64xf32>
    %251 = tpu.matmul %248, %250, %cst_134 {dimension_numbers = #tpu.dot_dimension_numbers<[1], [0], [0], [1], [0, 0, 1, 1], [], []>} : vector<16x32xf32>, vector<32x64xf32>, vector<16x64xf32> -> vector<16x64xf32>
    %c0_135 = arith.constant 0 : index
    %c0_136 = arith.constant 0 : index
    %c0_137 = arith.constant 0 : index
    %252 = vector.load %arg11[%c0_135, %c0_136, %c0_137] : memref<2x1x64xf32, #tpu.memory_space<vmem>>, vector<1x1x64xf32>
    %253 = vector.shape_cast %252 : vector<1x1x64xf32> to vector<1x64xf32>
    %254 = vector.broadcast %253 : vector<1x64xf32> to vector<16x64xf32>
    %255 = arith.addf %251, %254 : vector<16x64xf32>
    %256 = arith.mulf %255, %255 : vector<16x64xf32>
    %257 = arith.mulf %255, %256 : vector<16x64xf32>
    %cst_138 = arith.constant 4.471500e-02 : f32
    %258 = vector.broadcast %cst_138 : f32 to vector<16x64xf32>
    %259 = arith.mulf %258, %257 : vector<16x64xf32>
    %260 = arith.addf %255, %259 : vector<16x64xf32>
    %cst_139 = arith.constant 0.797884583 : f32
    %261 = vector.broadcast %cst_139 : f32 to vector<16x64xf32>
    %262 = arith.mulf %261, %260 : vector<16x64xf32>
    %263 = math.tanh %262 : vector<16x64xf32>
    %cst_140 = arith.constant 1.000000e+00 : f32
    %264 = vector.broadcast %cst_140 : f32 to vector<16x64xf32>
    %265 = arith.addf %264, %263 : vector<16x64xf32>
    %cst_141 = arith.constant 5.000000e-01 : f32
    %266 = vector.broadcast %cst_141 : f32 to vector<16x64xf32>
    %267 = arith.mulf %266, %265 : vector<16x64xf32>
    %268 = arith.mulf %255, %267 : vector<16x64xf32>
    %c0_142 = arith.constant 0 : index
    %c0_143 = arith.constant 0 : index
    %c0_144 = arith.constant 0 : index
    %269 = vector.load %arg12[%c0_142, %c0_143, %c0_144] : memref<2x64x32xf32, #tpu.memory_space<vmem>>, vector<1x64x32xf32>
    %270 = vector.shape_cast %269 : vector<1x64x32xf32> to vector<64x32xf32>
    %cst_145 = arith.constant dense<0.000000e+00> : vector<16x32xf32>
    %271 = tpu.matmul %268, %270, %cst_145 {dimension_numbers = #tpu.dot_dimension_numbers<[1], [0], [0], [1], [0, 0, 1, 1], [], []>} : vector<16x64xf32>, vector<64x32xf32>, vector<16x32xf32> -> vector<16x32xf32>
    %c0_146 = arith.constant 0 : index
    %c0_147 = arith.constant 0 : index
    %c0_148 = arith.constant 0 : index
    %272 = vector.load %arg13[%c0_146, %c0_147, %c0_148] : memref<2x1x32xf32, #tpu.memory_space<vmem>>, vector<1x1x32xf32>
    %273 = vector.shape_cast %272 : vector<1x1x32xf32> to vector<1x32xf32>
    %274 = vector.broadcast %273 : vector<1x32xf32> to vector<16x32xf32>
    %275 = arith.addf %271, %274 : vector<16x32xf32>
    %276 = arith.addf %275, %248 : vector<16x32xf32>
    %c0_149 = arith.constant 0 : index
    %c0_150 = arith.constant 0 : index
    %c0_151 = arith.constant 0 : index
    %277 = vector.load %arg14[%c0_149, %c0_150, %c0_151] : memref<2x1x32xf32, #tpu.memory_space<vmem>>, vector<1x1x32xf32>
    %278 = vector.shape_cast %277 : vector<1x1x32xf32> to vector<1x32xf32>
    %c0_152 = arith.constant 0 : index
    %c0_153 = arith.constant 0 : index
    %c0_154 = arith.constant 0 : index
    %279 = vector.load %arg15[%c0_152, %c0_153, %c0_154] : memref<2x1x32xf32, #tpu.memory_space<vmem>>, vector<1x1x32xf32>
    %280 = vector.shape_cast %279 : vector<1x1x32xf32> to vector<1x32xf32>
    %cst_155 = arith.constant dense<0.000000e+00> : vector<16xf32>
    %281 = vector.multi_reduction <add>, %276, %cst_155 [1] : vector<16x32xf32> to vector<16xf32>
    %282 = vector.shape_cast %281 : vector<16xf32> to vector<16x1xf32>
    %cst_156 = arith.constant 3.200000e+01 : f32
    %283 = vector.broadcast %cst_156 : f32 to vector<16x1xf32>
    %284 = arith.divf %282, %283 : vector<16x1xf32>
    %285 = vector.broadcast %284 : vector<16x1xf32> to vector<16x32xf32>
    %286 = arith.subf %276, %285 : vector<16x32xf32>
    %287 = arith.mulf %286, %286 : vector<16x32xf32>
    %cst_157 = arith.constant dense<0.000000e+00> : vector<16xf32>
    %288 = vector.multi_reduction <add>, %287, %cst_157 [1] : vector<16x32xf32> to vector<16xf32>
    %289 = vector.shape_cast %288 : vector<16xf32> to vector<16x1xf32>
    %cst_158 = arith.constant 3.200000e+01 : f32
    %290 = vector.broadcast %cst_158 : f32 to vector<16x1xf32>
    %291 = arith.divf %289, %290 : vector<16x1xf32>
    %292 = vector.broadcast %284 : vector<16x1xf32> to vector<16x32xf32>
    %293 = arith.subf %276, %292 : vector<16x32xf32>
    %cst_159 = arith.constant 9.99999996E-13 : f32
    %294 = vector.broadcast %cst_159 : f32 to vector<16x1xf32>
    %295 = arith.addf %291, %294 : vector<16x1xf32>
    %296 = math.rsqrt %295 : vector<16x1xf32>
    %297 = vector.broadcast %296 : vector<16x1xf32> to vector<16x32xf32>
    %298 = arith.mulf %293, %297 : vector<16x32xf32>
    %299 = vector.broadcast %278 : vector<1x32xf32> to vector<16x32xf32>
    %300 = arith.mulf %298, %299 : vector<16x32xf32>
    %301 = vector.broadcast %280 : vector<1x32xf32> to vector<16x32xf32>
    %302 = arith.addf %300, %301 : vector<16x32xf32>
    %c1_160 = arith.constant 1 : index
    %c0_161 = arith.constant 0 : index
    %c0_162 = arith.constant 0 : index
    %303 = vector.load %arg4[%c1_160, %c0_161, %c0_162] : memref<2x32x96xf32, #tpu.memory_space<vmem>>, vector<1x32x96xf32>
    %304 = vector.shape_cast %303 : vector<1x32x96xf32> to vector<32x96xf32>
    %cst_163 = arith.constant dense<0.000000e+00> : vector<16x96xf32>
    %305 = tpu.matmul %302, %304, %cst_163 {dimension_numbers = #tpu.dot_dimension_numbers<[1], [0], [0], [1], [0, 0, 1, 1], [], []>} : vector<16x32xf32>, vector<32x96xf32>, vector<16x96xf32> -> vector<16x96xf32>
    %c1_164 = arith.constant 1 : index
    %c0_165 = arith.constant 0 : index
    %c0_166 = arith.constant 0 : index
    %306 = vector.load %arg5[%c1_164, %c0_165, %c0_166] : memref<2x1x96xf32, #tpu.memory_space<vmem>>, vector<1x1x96xf32>
    %307 = vector.shape_cast %306 : vector<1x1x96xf32> to vector<1x96xf32>
    %308 = vector.broadcast %307 : vector<1x96xf32> to vector<16x96xf32>
    %309 = arith.addf %305, %308 : vector<16x96xf32>
    %c0_167 = arith.constant 0 : index
    %c0_168 = arith.constant 0 : index
    %310 = vector.load %arg21[%c0_167, %c0_168] : memref<16x96xf32, #tpu.memory_space<vmem>>, vector<16x96xf32>
    tpu.vector_store %arg21[%c0_167, %c0_168], %309 {strides = array<i32>} : memref<16x96xf32, #tpu.memory_space<vmem>>, vector<16x96xf32>,
    %c1_169 = arith.constant 1 : index
    %c0_170 = arith.constant 0 : index
    %c0_171 = arith.constant 0 : index
    %311 = vector.load %arg6[%c1_169, %c0_170, %c0_171] : memref<2x32x32xf32, #tpu.memory_space<vmem>>, vector<1x32x32xf32>
    %312 = vector.shape_cast %311 : vector<1x32x32xf32> to vector<32x32xf32>
    %c0_172 = arith.constant 0 : index
    %c0_173 = arith.constant 0 : index
    %313 = vector.load %arg1[%c0_172, %c0_173] : memref<2x8xf32, #tpu.memory_space<vmem>>, vector<1x8xf32>
    %cst_174 = arith.constant 0.000000e+00 : f32
    %314 = vector.broadcast %cst_174 : f32 to vector<8x32xf32>
    %c0_175 = arith.constant 0 : index
    %c0_176 = arith.constant 0 : index
    %315 = vector.load %arg21[%c0_175, %c0_176] : memref<16x96xf32, #tpu.memory_space<vmem>>, vector<8x8xf32>
    %c0_177 = arith.constant 0 : index
    %c32_178 = arith.constant 32 : index
    %316 = vector.load %arg21[%c0_177, %c32_178] : memref<16x96xf32, #tpu.memory_space<vmem>>, vector<8x8xf32>
    %c0_179 = arith.constant 0 : index
    %c64_180 = arith.constant 64 : index
    %317 = vector.load %arg21[%c0_179, %c64_180] : memref<16x96xf32, #tpu.memory_space<vmem>>, vector<8x8xf32>
    %cst_181 = arith.constant dense<0.000000e+00> : vector<8x8xf32>
    %318 = tpu.matmul %315, %316, %cst_181 {dimension_numbers = #tpu.dot_dimension_numbers<[1], [1], [0], [0], [0, 0, 1, 0], [], []>} : vector<8x8xf32>, vector<8x8xf32>, vector<8x8xf32> -> vector<8x8xf32>
    %cst_182 = arith.constant 0.353553385 : f32
    %319 = vector.broadcast %cst_182 : f32 to vector<8x8xf32>
    %320 = arith.mulf %318, %319 : vector<8x8xf32>
    %321 = vector.broadcast %313 : vector<1x8xf32> to vector<8x8xf32>
    %322 = arith.addf %320, %321 : vector<8x8xf32>
    %cst_183 = arith.constant dense<0xFF800000> : vector<8xf32>
    %323 = vector.multi_reduction <maximumf>, %322, %cst_183 [1] : vector<8x8xf32> to vector<8xf32>
    %324 = vector.shape_cast %323 : vector<8xf32> to vector<8x1xf32>
    %325 = vector.broadcast %324 : vector<8x1xf32> to vector<8x8xf32>
    %326 = arith.subf %322, %325 : vector<8x8xf32>
    %327 = math.exp %326 : vector<8x8xf32>
    %cst_184 = arith.constant dense<0.000000e+00> : vector<8xf32>
    %328 = vector.multi_reduction <add>, %327, %cst_184 [1] : vector<8x8xf32> to vector<8xf32>
    %329 = vector.shape_cast %328 : vector<8xf32> to vector<8x1xf32>
    %330 = tpu.reciprocal %329 {approx = true} : vector<8x1xf32> -> vector<8x1xf32>
    %331 = vector.broadcast %330 : vector<8x1xf32> to vector<8x8xf32>
    %332 = arith.mulf %327, %331 : vector<8x8xf32>
    %cst_185 = arith.constant dense<0.000000e+00> : vector<8x8xf32>
    %333 = tpu.matmul %332, %317, %cst_185 {dimension_numbers = #tpu.dot_dimension_numbers<[1], [0], [0], [1], [0, 0, 1, 1], [], []>} : vector<8x8xf32>, vector<8x8xf32>, vector<8x8xf32> -> vector<8x8xf32>
    %334 = vector.extract_strided_slice %312 {offsets = [0, 0], sizes = [8, 32], strides = [1, 1]} : vector<32x32xf32> to vector<8x32xf32>
    %cst_186 = arith.constant dense<0.000000e+00> : vector<8x32xf32>
    %335 = tpu.matmul %333, %334, %cst_186 {dimension_numbers = #tpu.dot_dimension_numbers<[1], [0], [0], [1], [0, 0, 1, 1], [], []>} : vector<8x8xf32>, vector<8x32xf32>, vector<8x32xf32> -> vector<8x32xf32>
    %336 = arith.addf %314, %335 : vector<8x32xf32>
    %c0_187 = arith.constant 0 : index
    %c8_188 = arith.constant 8 : index
    %337 = vector.load %arg21[%c0_187, %c8_188] : memref<16x96xf32, #tpu.memory_space<vmem>>, vector<8x8xf32>
    %c0_189 = arith.constant 0 : index
    %c40_190 = arith.constant 40 : index
    %338 = vector.load %arg21[%c0_189, %c40_190] : memref<16x96xf32, #tpu.memory_space<vmem>>, vector<8x8xf32>
    %c0_191 = arith.constant 0 : index
    %c72_192 = arith.constant 72 : index
    %339 = vector.load %arg21[%c0_191, %c72_192] : memref<16x96xf32, #tpu.memory_space<vmem>>, vector<8x8xf32>
    %cst_193 = arith.constant dense<0.000000e+00> : vector<8x8xf32>
    %340 = tpu.matmul %337, %338, %cst_193 {dimension_numbers = #tpu.dot_dimension_numbers<[1], [1], [0], [0], [0, 0, 1, 0], [], []>} : vector<8x8xf32>, vector<8x8xf32>, vector<8x8xf32> -> vector<8x8xf32>
    %cst_194 = arith.constant 0.353553385 : f32
    %341 = vector.broadcast %cst_194 : f32 to vector<8x8xf32>
    %342 = arith.mulf %340, %341 : vector<8x8xf32>
    %343 = vector.broadcast %313 : vector<1x8xf32> to vector<8x8xf32>
    %344 = arith.addf %342, %343 : vector<8x8xf32>
    %cst_195 = arith.constant dense<0xFF800000> : vector<8xf32>
    %345 = vector.multi_reduction <maximumf>, %344, %cst_195 [1] : vector<8x8xf32> to vector<8xf32>
    %346 = vector.shape_cast %345 : vector<8xf32> to vector<8x1xf32>
    %347 = vector.broadcast %346 : vector<8x1xf32> to vector<8x8xf32>
    %348 = arith.subf %344, %347 : vector<8x8xf32>
    %349 = math.exp %348 : vector<8x8xf32>
    %cst_196 = arith.constant dense<0.000000e+00> : vector<8xf32>
    %350 = vector.multi_reduction <add>, %349, %cst_196 [1] : vector<8x8xf32> to vector<8xf32>
    %351 = vector.shape_cast %350 : vector<8xf32> to vector<8x1xf32>
    %352 = tpu.reciprocal %351 {approx = true} : vector<8x1xf32> -> vector<8x1xf32>
    %353 = vector.broadcast %352 : vector<8x1xf32> to vector<8x8xf32>
    %354 = arith.mulf %349, %353 : vector<8x8xf32>
    %cst_197 = arith.constant dense<0.000000e+00> : vector<8x8xf32>
    %355 = tpu.matmul %354, %339, %cst_197 {dimension_numbers = #tpu.dot_dimension_numbers<[1], [0], [0], [1], [0, 0, 1, 1], [], []>} : vector<8x8xf32>, vector<8x8xf32>, vector<8x8xf32> -> vector<8x8xf32>
    %356 = vector.extract_strided_slice %312 {offsets = [8, 0], sizes = [8, 32], strides = [1, 1]} : vector<32x32xf32> to vector<8x32xf32>
    %cst_198 = arith.constant dense<0.000000e+00> : vector<8x32xf32>
    %357 = tpu.matmul %355, %356, %cst_198 {dimension_numbers = #tpu.dot_dimension_numbers<[1], [0], [0], [1], [0, 0, 1, 1], [], []>} : vector<8x8xf32>, vector<8x32xf32>, vector<8x32xf32> -> vector<8x32xf32>
    %358 = arith.addf %336, %357 : vector<8x32xf32>
    %c0_199 = arith.constant 0 : index
    %c16_200 = arith.constant 16 : index
    %359 = vector.load %arg21[%c0_199, %c16_200] : memref<16x96xf32, #tpu.memory_space<vmem>>, vector<8x8xf32>
    %c0_201 = arith.constant 0 : index
    %c48_202 = arith.constant 48 : index
    %360 = vector.load %arg21[%c0_201, %c48_202] : memref<16x96xf32, #tpu.memory_space<vmem>>, vector<8x8xf32>
    %c0_203 = arith.constant 0 : index
    %c80_204 = arith.constant 80 : index
    %361 = vector.load %arg21[%c0_203, %c80_204] : memref<16x96xf32, #tpu.memory_space<vmem>>, vector<8x8xf32>
    %cst_205 = arith.constant dense<0.000000e+00> : vector<8x8xf32>
    %362 = tpu.matmul %359, %360, %cst_205 {dimension_numbers = #tpu.dot_dimension_numbers<[1], [1], [0], [0], [0, 0, 1, 0], [], []>} : vector<8x8xf32>, vector<8x8xf32>, vector<8x8xf32> -> vector<8x8xf32>
    %cst_206 = arith.constant 0.353553385 : f32
    %363 = vector.broadcast %cst_206 : f32 to vector<8x8xf32>
    %364 = arith.mulf %362, %363 : vector<8x8xf32>
    %365 = vector.broadcast %313 : vector<1x8xf32> to vector<8x8xf32>
    %366 = arith.addf %364, %365 : vector<8x8xf32>
    %cst_207 = arith.constant dense<0xFF800000> : vector<8xf32>
    %367 = vector.multi_reduction <maximumf>, %366, %cst_207 [1] : vector<8x8xf32> to vector<8xf32>
    %368 = vector.shape_cast %367 : vector<8xf32> to vector<8x1xf32>
    %369 = vector.broadcast %368 : vector<8x1xf32> to vector<8x8xf32>
    %370 = arith.subf %366, %369 : vector<8x8xf32>
    %371 = math.exp %370 : vector<8x8xf32>
    %cst_208 = arith.constant dense<0.000000e+00> : vector<8xf32>
    %372 = vector.multi_reduction <add>, %371, %cst_208 [1] : vector<8x8xf32> to vector<8xf32>
    %373 = vector.shape_cast %372 : vector<8xf32> to vector<8x1xf32>
    %374 = tpu.reciprocal %373 {approx = true} : vector<8x1xf32> -> vector<8x1xf32>
    %375 = vector.broadcast %374 : vector<8x1xf32> to vector<8x8xf32>
    %376 = arith.mulf %371, %375 : vector<8x8xf32>
    %cst_209 = arith.constant dense<0.000000e+00> : vector<8x8xf32>
    %377 = tpu.matmul %376, %361, %cst_209 {dimension_numbers = #tpu.dot_dimension_numbers<[1], [0], [0], [1], [0, 0, 1, 1], [], []>} : vector<8x8xf32>, vector<8x8xf32>, vector<8x8xf32> -> vector<8x8xf32>
    %378 = vector.extract_strided_slice %312 {offsets = [16, 0], sizes = [8, 32], strides = [1, 1]} : vector<32x32xf32> to vector<8x32xf32>
    %cst_210 = arith.constant dense<0.000000e+00> : vector<8x32xf32>
    %379 = tpu.matmul %377, %378, %cst_210 {dimension_numbers = #tpu.dot_dimension_numbers<[1], [0], [0], [1], [0, 0, 1, 1], [], []>} : vector<8x8xf32>, vector<8x32xf32>, vector<8x32xf32> -> vector<8x32xf32>
    %380 = arith.addf %358, %379 : vector<8x32xf32>
    %c0_211 = arith.constant 0 : index
    %c24_212 = arith.constant 24 : index
    %381 = vector.load %arg21[%c0_211, %c24_212] : memref<16x96xf32, #tpu.memory_space<vmem>>, vector<8x8xf32>
    %c0_213 = arith.constant 0 : index
    %c56_214 = arith.constant 56 : index
    %382 = vector.load %arg21[%c0_213, %c56_214] : memref<16x96xf32, #tpu.memory_space<vmem>>, vector<8x8xf32>
    %c0_215 = arith.constant 0 : index
    %c88_216 = arith.constant 88 : index
    %383 = vector.load %arg21[%c0_215, %c88_216] : memref<16x96xf32, #tpu.memory_space<vmem>>, vector<8x8xf32>
    %cst_217 = arith.constant dense<0.000000e+00> : vector<8x8xf32>
    %384 = tpu.matmul %381, %382, %cst_217 {dimension_numbers = #tpu.dot_dimension_numbers<[1], [1], [0], [0], [0, 0, 1, 0], [], []>} : vector<8x8xf32>, vector<8x8xf32>, vector<8x8xf32> -> vector<8x8xf32>
    %cst_218 = arith.constant 0.353553385 : f32
    %385 = vector.broadcast %cst_218 : f32 to vector<8x8xf32>
    %386 = arith.mulf %384, %385 : vector<8x8xf32>
    %387 = vector.broadcast %313 : vector<1x8xf32> to vector<8x8xf32>
    %388 = arith.addf %386, %387 : vector<8x8xf32>
    %cst_219 = arith.constant dense<0xFF800000> : vector<8xf32>
    %389 = vector.multi_reduction <maximumf>, %388, %cst_219 [1] : vector<8x8xf32> to vector<8xf32>
    %390 = vector.shape_cast %389 : vector<8xf32> to vector<8x1xf32>
    %391 = vector.broadcast %390 : vector<8x1xf32> to vector<8x8xf32>
    %392 = arith.subf %388, %391 : vector<8x8xf32>
    %393 = math.exp %392 : vector<8x8xf32>
    %cst_220 = arith.constant dense<0.000000e+00> : vector<8xf32>
    %394 = vector.multi_reduction <add>, %393, %cst_220 [1] : vector<8x8xf32> to vector<8xf32>
    %395 = vector.shape_cast %394 : vector<8xf32> to vector<8x1xf32>
    %396 = tpu.reciprocal %395 {approx = true} : vector<8x1xf32> -> vector<8x1xf32>
    %397 = vector.broadcast %396 : vector<8x1xf32> to vector<8x8xf32>
    %398 = arith.mulf %393, %397 : vector<8x8xf32>
    %cst_221 = arith.constant dense<0.000000e+00> : vector<8x8xf32>
    %399 = tpu.matmul %398, %383, %cst_221 {dimension_numbers = #tpu.dot_dimension_numbers<[1], [0], [0], [1], [0, 0, 1, 1], [], []>} : vector<8x8xf32>, vector<8x8xf32>, vector<8x8xf32> -> vector<8x8xf32>
    %400 = vector.extract_strided_slice %312 {offsets = [24, 0], sizes = [8, 32], strides = [1, 1]} : vector<32x32xf32> to vector<8x32xf32>
    %cst_222 = arith.constant dense<0.000000e+00> : vector<8x32xf32>
    %401 = tpu.matmul %399, %400, %cst_222 {dimension_numbers = #tpu.dot_dimension_numbers<[1], [0], [0], [1], [0, 0, 1, 1], [], []>} : vector<8x8xf32>, vector<8x32xf32>, vector<8x32xf32> -> vector<8x32xf32>
    %402 = arith.addf %380, %401 : vector<8x32xf32>
    %c0_223 = arith.constant 0 : index
    %c0_224 = arith.constant 0 : index
    %403 = vector.load %arg22[%c0_223, %c0_224] : memref<16x32xf32, #tpu.memory_space<vmem>>, vector<8x32xf32>
    tpu.vector_store %arg22[%c0_223, %c0_224], %402 {strides = array<i32>} : memref<16x32xf32, #tpu.memory_space<vmem>>, vector<8x32xf32>,
    %c1_225 = arith.constant 1 : index
    %c0_226 = arith.constant 0 : index
    %404 = vector.load %arg1[%c1_225, %c0_226] : memref<2x8xf32, #tpu.memory_space<vmem>>, vector<1x8xf32>
    %cst_227 = arith.constant 0.000000e+00 : f32
    %405 = vector.broadcast %cst_227 : f32 to vector<8x32xf32>
    %c8_228 = arith.constant 8 : index
    %c0_229 = arith.constant 0 : index
    %406 = vector.load %arg21[%c8_228, %c0_229] : memref<16x96xf32, #tpu.memory_space<vmem>>, vector<8x8xf32>
    %c8_230 = arith.constant 8 : index
    %c32_231 = arith.constant 32 : index
    %407 = vector.load %arg21[%c8_230, %c32_231] : memref<16x96xf32, #tpu.memory_space<vmem>>, vector<8x8xf32>
    %c8_232 = arith.constant 8 : index
    %c64_233 = arith.constant 64 : index
    %408 = vector.load %arg21[%c8_232, %c64_233] : memref<16x96xf32, #tpu.memory_space<vmem>>, vector<8x8xf32>
    %cst_234 = arith.constant dense<0.000000e+00> : vector<8x8xf32>
    %409 = tpu.matmul %406, %407, %cst_234 {dimension_numbers = #tpu.dot_dimension_numbers<[1], [1], [0], [0], [0, 0, 1, 0], [], []>} : vector<8x8xf32>, vector<8x8xf32>, vector<8x8xf32> -> vector<8x8xf32>
    %cst_235 = arith.constant 0.353553385 : f32
    %410 = vector.broadcast %cst_235 : f32 to vector<8x8xf32>
    %411 = arith.mulf %409, %410 : vector<8x8xf32>
    %412 = vector.broadcast %404 : vector<1x8xf32> to vector<8x8xf32>
    %413 = arith.addf %411, %412 : vector<8x8xf32>
    %cst_236 = arith.constant dense<0xFF800000> : vector<8xf32>
    %414 = vector.multi_reduction <maximumf>, %413, %cst_236 [1] : vector<8x8xf32> to vector<8xf32>
    %415 = vector.shape_cast %414 : vector<8xf32> to vector<8x1xf32>
    %416 = vector.broadcast %415 : vector<8x1xf32> to vector<8x8xf32>
    %417 = arith.subf %413, %416 : vector<8x8xf32>
    %418 = math.exp %417 : vector<8x8xf32>
    %cst_237 = arith.constant dense<0.000000e+00> : vector<8xf32>
    %419 = vector.multi_reduction <add>, %418, %cst_237 [1] : vector<8x8xf32> to vector<8xf32>
    %420 = vector.shape_cast %419 : vector<8xf32> to vector<8x1xf32>
    %421 = tpu.reciprocal %420 {approx = true} : vector<8x1xf32> -> vector<8x1xf32>
    %422 = vector.broadcast %421 : vector<8x1xf32> to vector<8x8xf32>
    %423 = arith.mulf %418, %422 : vector<8x8xf32>
    %cst_238 = arith.constant dense<0.000000e+00> : vector<8x8xf32>
    %424 = tpu.matmul %423, %408, %cst_238 {dimension_numbers = #tpu.dot_dimension_numbers<[1], [0], [0], [1], [0, 0, 1, 1], [], []>} : vector<8x8xf32>, vector<8x8xf32>, vector<8x8xf32> -> vector<8x8xf32>
    %425 = vector.extract_strided_slice %312 {offsets = [0, 0], sizes = [8, 32], strides = [1, 1]} : vector<32x32xf32> to vector<8x32xf32>
    %cst_239 = arith.constant dense<0.000000e+00> : vector<8x32xf32>
    %426 = tpu.matmul %424, %425, %cst_239 {dimension_numbers = #tpu.dot_dimension_numbers<[1], [0], [0], [1], [0, 0, 1, 1], [], []>} : vector<8x8xf32>, vector<8x32xf32>, vector<8x32xf32> -> vector<8x32xf32>
    %427 = arith.addf %405, %426 : vector<8x32xf32>
    %c8_240 = arith.constant 8 : index
    %c8_241 = arith.constant 8 : index
    %428 = vector.load %arg21[%c8_240, %c8_241] : memref<16x96xf32, #tpu.memory_space<vmem>>, vector<8x8xf32>
    %c8_242 = arith.constant 8 : index
    %c40_243 = arith.constant 40 : index
    %429 = vector.load %arg21[%c8_242, %c40_243] : memref<16x96xf32, #tpu.memory_space<vmem>>, vector<8x8xf32>
    %c8_244 = arith.constant 8 : index
    %c72_245 = arith.constant 72 : index
    %430 = vector.load %arg21[%c8_244, %c72_245] : memref<16x96xf32, #tpu.memory_space<vmem>>, vector<8x8xf32>
    %cst_246 = arith.constant dense<0.000000e+00> : vector<8x8xf32>
    %431 = tpu.matmul %428, %429, %cst_246 {dimension_numbers = #tpu.dot_dimension_numbers<[1], [1], [0], [0], [0, 0, 1, 0], [], []>} : vector<8x8xf32>, vector<8x8xf32>, vector<8x8xf32> -> vector<8x8xf32>
    %cst_247 = arith.constant 0.353553385 : f32
    %432 = vector.broadcast %cst_247 : f32 to vector<8x8xf32>
    %433 = arith.mulf %431, %432 : vector<8x8xf32>
    %434 = vector.broadcast %404 : vector<1x8xf32> to vector<8x8xf32>
    %435 = arith.addf %433, %434 : vector<8x8xf32>
    %cst_248 = arith.constant dense<0xFF800000> : vector<8xf32>
    %436 = vector.multi_reduction <maximumf>, %435, %cst_248 [1] : vector<8x8xf32> to vector<8xf32>
    %437 = vector.shape_cast %436 : vector<8xf32> to vector<8x1xf32>
    %438 = vector.broadcast %437 : vector<8x1xf32> to vector<8x8xf32>
    %439 = arith.subf %435, %438 : vector<8x8xf32>
    %440 = math.exp %439 : vector<8x8xf32>
    %cst_249 = arith.constant dense<0.000000e+00> : vector<8xf32>
    %441 = vector.multi_reduction <add>, %440, %cst_249 [1] : vector<8x8xf32> to vector<8xf32>
    %442 = vector.shape_cast %441 : vector<8xf32> to vector<8x1xf32>
    %443 = tpu.reciprocal %442 {approx = true} : vector<8x1xf32> -> vector<8x1xf32>
    %444 = vector.broadcast %443 : vector<8x1xf32> to vector<8x8xf32>
    %445 = arith.mulf %440, %444 : vector<8x8xf32>
    %cst_250 = arith.constant dense<0.000000e+00> : vector<8x8xf32>
    %446 = tpu.matmul %445, %430, %cst_250 {dimension_numbers = #tpu.dot_dimension_numbers<[1], [0], [0], [1], [0, 0, 1, 1], [], []>} : vector<8x8xf32>, vector<8x8xf32>, vector<8x8xf32> -> vector<8x8xf32>
    %447 = vector.extract_strided_slice %312 {offsets = [8, 0], sizes = [8, 32], strides = [1, 1]} : vector<32x32xf32> to vector<8x32xf32>
    %cst_251 = arith.constant dense<0.000000e+00> : vector<8x32xf32>
    %448 = tpu.matmul %446, %447, %cst_251 {dimension_numbers = #tpu.dot_dimension_numbers<[1], [0], [0], [1], [0, 0, 1, 1], [], []>} : vector<8x8xf32>, vector<8x32xf32>, vector<8x32xf32> -> vector<8x32xf32>
    %449 = arith.addf %427, %448 : vector<8x32xf32>
    %c8_252 = arith.constant 8 : index
    %c16_253 = arith.constant 16 : index
    %450 = vector.load %arg21[%c8_252, %c16_253] : memref<16x96xf32, #tpu.memory_space<vmem>>, vector<8x8xf32>
    %c8_254 = arith.constant 8 : index
    %c48_255 = arith.constant 48 : index
    %451 = vector.load %arg21[%c8_254, %c48_255] : memref<16x96xf32, #tpu.memory_space<vmem>>, vector<8x8xf32>
    %c8_256 = arith.constant 8 : index
    %c80_257 = arith.constant 80 : index
    %452 = vector.load %arg21[%c8_256, %c80_257] : memref<16x96xf32, #tpu.memory_space<vmem>>, vector<8x8xf32>
    %cst_258 = arith.constant dense<0.000000e+00> : vector<8x8xf32>
    %453 = tpu.matmul %450, %451, %cst_258 {dimension_numbers = #tpu.dot_dimension_numbers<[1], [1], [0], [0], [0, 0, 1, 0], [], []>} : vector<8x8xf32>, vector<8x8xf32>, vector<8x8xf32> -> vector<8x8xf32>
    %cst_259 = arith.constant 0.353553385 : f32
    %454 = vector.broadcast %cst_259 : f32 to vector<8x8xf32>
    %455 = arith.mulf %453, %454 : vector<8x8xf32>
    %456 = vector.broadcast %404 : vector<1x8xf32> to vector<8x8xf32>
    %457 = arith.addf %455, %456 : vector<8x8xf32>
    %cst_260 = arith.constant dense<0xFF800000> : vector<8xf32>
    %458 = vector.multi_reduction <maximumf>, %457, %cst_260 [1] : vector<8x8xf32> to vector<8xf32>
    %459 = vector.shape_cast %458 : vector<8xf32> to vector<8x1xf32>
    %460 = vector.broadcast %459 : vector<8x1xf32> to vector<8x8xf32>
    %461 = arith.subf %457, %460 : vector<8x8xf32>
    %462 = math.exp %461 : vector<8x8xf32>
    %cst_261 = arith.constant dense<0.000000e+00> : vector<8xf32>
    %463 = vector.multi_reduction <add>, %462, %cst_261 [1] : vector<8x8xf32> to vector<8xf32>
    %464 = vector.shape_cast %463 : vector<8xf32> to vector<8x1xf32>
    %465 = tpu.reciprocal %464 {approx = true} : vector<8x1xf32> -> vector<8x1xf32>
    %466 = vector.broadcast %465 : vector<8x1xf32> to vector<8x8xf32>
    %467 = arith.mulf %462, %466 : vector<8x8xf32>
    %cst_262 = arith.constant dense<0.000000e+00> : vector<8x8xf32>
    %468 = tpu.matmul %467, %452, %cst_262 {dimension_numbers = #tpu.dot_dimension_numbers<[1], [0], [0], [1], [0, 0, 1, 1], [], []>} : vector<8x8xf32>, vector<8x8xf32>, vector<8x8xf32> -> vector<8x8xf32>
    %469 = vector.extract_strided_slice %312 {offsets = [16, 0], sizes = [8, 32], strides = [1, 1]} : vector<32x32xf32> to vector<8x32xf32>
    %cst_263 = arith.constant dense<0.000000e+00> : vector<8x32xf32>
    %470 = tpu.matmul %468, %469, %cst_263 {dimension_numbers = #tpu.dot_dimension_numbers<[1], [0], [0], [1], [0, 0, 1, 1], [], []>} : vector<8x8xf32>, vector<8x32xf32>, vector<8x32xf32> -> vector<8x32xf32>
    %471 = arith.addf %449, %470 : vector<8x32xf32>
    %c8_264 = arith.constant 8 : index
    %c24_265 = arith.constant 24 : index
    %472 = vector.load %arg21[%c8_264, %c24_265] : memref<16x96xf32, #tpu.memory_space<vmem>>, vector<8x8xf32>
    %c8_266 = arith.constant 8 : index
    %c56_267 = arith.constant 56 : index
    %473 = vector.load %arg21[%c8_266, %c56_267] : memref<16x96xf32, #tpu.memory_space<vmem>>, vector<8x8xf32>
    %c8_268 = arith.constant 8 : index
    %c88_269 = arith.constant 88 : index
    %474 = vector.load %arg21[%c8_268, %c88_269] : memref<16x96xf32, #tpu.memory_space<vmem>>, vector<8x8xf32>
    %cst_270 = arith.constant dense<0.000000e+00> : vector<8x8xf32>
    %475 = tpu.matmul %472, %473, %cst_270 {dimension_numbers = #tpu.dot_dimension_numbers<[1], [1], [0], [0], [0, 0, 1, 0], [], []>} : vector<8x8xf32>, vector<8x8xf32>, vector<8x8xf32> -> vector<8x8xf32>
    %cst_271 = arith.constant 0.353553385 : f32
    %476 = vector.broadcast %cst_271 : f32 to vector<8x8xf32>
    %477 = arith.mulf %475, %476 : vector<8x8xf32>
    %478 = vector.broadcast %404 : vector<1x8xf32> to vector<8x8xf32>
    %479 = arith.addf %477, %478 : vector<8x8xf32>
    %cst_272 = arith.constant dense<0xFF800000> : vector<8xf32>
    %480 = vector.multi_reduction <maximumf>, %479, %cst_272 [1] : vector<8x8xf32> to vector<8xf32>
    %481 = vector.shape_cast %480 : vector<8xf32> to vector<8x1xf32>
    %482 = vector.broadcast %481 : vector<8x1xf32> to vector<8x8xf32>
    %483 = arith.subf %479, %482 : vector<8x8xf32>
    %484 = math.exp %483 : vector<8x8xf32>
    %cst_273 = arith.constant dense<0.000000e+00> : vector<8xf32>
    %485 = vector.multi_reduction <add>, %484, %cst_273 [1] : vector<8x8xf32> to vector<8xf32>
    %486 = vector.shape_cast %485 : vector<8xf32> to vector<8x1xf32>
    %487 = tpu.reciprocal %486 {approx = true} : vector<8x1xf32> -> vector<8x1xf32>
    %488 = vector.broadcast %487 : vector<8x1xf32> to vector<8x8xf32>
    %489 = arith.mulf %484, %488 : vector<8x8xf32>
    %cst_274 = arith.constant dense<0.000000e+00> : vector<8x8xf32>
    %490 = tpu.matmul %489, %474, %cst_274 {dimension_numbers = #tpu.dot_dimension_numbers<[1], [0], [0], [1], [0, 0, 1, 1], [], []>} : vector<8x8xf32>, vector<8x8xf32>, vector<8x8xf32> -> vector<8x8xf32>
    %491 = vector.extract_strided_slice %312 {offsets = [24, 0], sizes = [8, 32], strides = [1, 1]} : vector<32x32xf32> to vector<8x32xf32>
    %cst_275 = arith.constant dense<0.000000e+00> : vector<8x32xf32>
    %492 = tpu.matmul %490, %491, %cst_275 {dimension_numbers = #tpu.dot_dimension_numbers<[1], [0], [0], [1], [0, 0, 1, 1], [], []>} : vector<8x8xf32>, vector<8x32xf32>, vector<8x32xf32> -> vector<8x32xf32>
    %493 = arith.addf %471, %492 : vector<8x32xf32>
    %c8_276 = arith.constant 8 : index
    %c0_277 = arith.constant 0 : index
    %494 = vector.load %arg22[%c8_276, %c0_277] : memref<16x32xf32, #tpu.memory_space<vmem>>, vector<8x32xf32>
    tpu.vector_store %arg22[%c8_276, %c0_277], %493 {strides = array<i32>} : memref<16x32xf32, #tpu.memory_space<vmem>>, vector<8x32xf32>,
    %c0_278 = arith.constant 0 : index
    %c0_279 = arith.constant 0 : index
    %495 = vector.load %arg22[%c0_278, %c0_279] : memref<16x32xf32, #tpu.memory_space<vmem>>, vector<16x32xf32>
    %c1_280 = arith.constant 1 : index
    %c0_281 = arith.constant 0 : index
    %c0_282 = arith.constant 0 : index
    %496 = vector.load %arg7[%c1_280, %c0_281, %c0_282] : memref<2x1x32xf32, #tpu.memory_space<vmem>>, vector<1x1x32xf32>
    %497 = vector.shape_cast %496 : vector<1x1x32xf32> to vector<1x32xf32>
    %498 = vector.broadcast %497 : vector<1x32xf32> to vector<16x32xf32>
    %499 = arith.addf %495, %498 : vector<16x32xf32>
    %500 = arith.addf %499, %302 : vector<16x32xf32>
    %c1_283 = arith.constant 1 : index
    %c0_284 = arith.constant 0 : index
    %c0_285 = arith.constant 0 : index
    %501 = vector.load %arg8[%c1_283, %c0_284, %c0_285] : memref<2x1x32xf32, #tpu.memory_space<vmem>>, vector<1x1x32xf32>
    %502 = vector.shape_cast %501 : vector<1x1x32xf32> to vector<1x32xf32>
    %c1_286 = arith.constant 1 : index
    %c0_287 = arith.constant 0 : index
    %c0_288 = arith.constant 0 : index
    %503 = vector.load %arg9[%c1_286, %c0_287, %c0_288] : memref<2x1x32xf32, #tpu.memory_space<vmem>>, vector<1x1x32xf32>
    %504 = vector.shape_cast %503 : vector<1x1x32xf32> to vector<1x32xf32>
    %cst_289 = arith.constant dense<0.000000e+00> : vector<16xf32>
    %505 = vector.multi_reduction <add>, %500, %cst_289 [1] : vector<16x32xf32> to vector<16xf32>
    %506 = vector.shape_cast %505 : vector<16xf32> to vector<16x1xf32>
    %cst_290 = arith.constant 3.200000e+01 : f32
    %507 = vector.broadcast %cst_290 : f32 to vector<16x1xf32>
    %508 = arith.divf %506, %507 : vector<16x1xf32>
    %509 = vector.broadcast %508 : vector<16x1xf32> to vector<16x32xf32>
    %510 = arith.subf %500, %509 : vector<16x32xf32>
    %511 = arith.mulf %510, %510 : vector<16x32xf32>
    %cst_291 = arith.constant dense<0.000000e+00> : vector<16xf32>
    %512 = vector.multi_reduction <add>, %511, %cst_291 [1] : vector<16x32xf32> to vector<16xf32>
    %513 = vector.shape_cast %512 : vector<16xf32> to vector<16x1xf32>
    %cst_292 = arith.constant 3.200000e+01 : f32
    %514 = vector.broadcast %cst_292 : f32 to vector<16x1xf32>
    %515 = arith.divf %513, %514 : vector<16x1xf32>
    %516 = vector.broadcast %508 : vector<16x1xf32> to vector<16x32xf32>
    %517 = arith.subf %500, %516 : vector<16x32xf32>
    %cst_293 = arith.constant 9.99999996E-13 : f32
    %518 = vector.broadcast %cst_293 : f32 to vector<16x1xf32>
    %519 = arith.addf %515, %518 : vector<16x1xf32>
    %520 = math.rsqrt %519 : vector<16x1xf32>
    %521 = vector.broadcast %520 : vector<16x1xf32> to vector<16x32xf32>
    %522 = arith.mulf %517, %521 : vector<16x32xf32>
    %523 = vector.broadcast %502 : vector<1x32xf32> to vector<16x32xf32>
    %524 = arith.mulf %522, %523 : vector<16x32xf32>
    %525 = vector.broadcast %504 : vector<1x32xf32> to vector<16x32xf32>
    %526 = arith.addf %524, %525 : vector<16x32xf32>
    %c1_294 = arith.constant 1 : index
    %c0_295 = arith.constant 0 : index
    %c0_296 = arith.constant 0 : index
    %527 = vector.load %arg10[%c1_294, %c0_295, %c0_296] : memref<2x32x64xf32, #tpu.memory_space<vmem>>, vector<1x32x64xf32>
    %528 = vector.shape_cast %527 : vector<1x32x64xf32> to vector<32x64xf32>
    %cst_297 = arith.constant dense<0.000000e+00> : vector<16x64xf32>
    %529 = tpu.matmul %526, %528, %cst_297 {dimension_numbers = #tpu.dot_dimension_numbers<[1], [0], [0], [1], [0, 0, 1, 1], [], []>} : vector<16x32xf32>, vector<32x64xf32>, vector<16x64xf32> -> vector<16x64xf32>
    %c1_298 = arith.constant 1 : index
    %c0_299 = arith.constant 0 : index
    %c0_300 = arith.constant 0 : index
    %530 = vector.load %arg11[%c1_298, %c0_299, %c0_300] : memref<2x1x64xf32, #tpu.memory_space<vmem>>, vector<1x1x64xf32>
    %531 = vector.shape_cast %530 : vector<1x1x64xf32> to vector<1x64xf32>
    %532 = vector.broadcast %531 : vector<1x64xf32> to vector<16x64xf32>
    %533 = arith.addf %529, %532 : vector<16x64xf32>
    %534 = arith.mulf %533, %533 : vector<16x64xf32>
    %535 = arith.mulf %533, %534 : vector<16x64xf32>
    %cst_301 = arith.constant 4.471500e-02 : f32
    %536 = vector.broadcast %cst_301 : f32 to vector<16x64xf32>
    %537 = arith.mulf %536, %535 : vector<16x64xf32>
    %538 = arith.addf %533, %537 : vector<16x64xf32>
    %cst_302 = arith.constant 0.797884583 : f32
    %539 = vector.broadcast %cst_302 : f32 to vector<16x64xf32>
    %540 = arith.mulf %539, %538 : vector<16x64xf32>
    %541 = math.tanh %540 : vector<16x64xf32>
    %cst_303 = arith.constant 1.000000e+00 : f32
    %542 = vector.broadcast %cst_303 : f32 to vector<16x64xf32>
    %543 = arith.addf %542, %541 : vector<16x64xf32>
    %cst_304 = arith.constant 5.000000e-01 : f32
    %544 = vector.broadcast %cst_304 : f32 to vector<16x64xf32>
    %545 = arith.mulf %544, %543 : vector<16x64xf32>
    %546 = arith.mulf %533, %545 : vector<16x64xf32>
    %c1_305 = arith.constant 1 : index
    %c0_306 = arith.constant 0 : index
    %c0_307 = arith.constant 0 : index
    %547 = vector.load %arg12[%c1_305, %c0_306, %c0_307] : memref<2x64x32xf32, #tpu.memory_space<vmem>>, vector<1x64x32xf32>
    %548 = vector.shape_cast %547 : vector<1x64x32xf32> to vector<64x32xf32>
    %cst_308 = arith.constant dense<0.000000e+00> : vector<16x32xf32>
    %549 = tpu.matmul %546, %548, %cst_308 {dimension_numbers = #tpu.dot_dimension_numbers<[1], [0], [0], [1], [0, 0, 1, 1], [], []>} : vector<16x64xf32>, vector<64x32xf32>, vector<16x32xf32> -> vector<16x32xf32>
    %c1_309 = arith.constant 1 : index
    %c0_310 = arith.constant 0 : index
    %c0_311 = arith.constant 0 : index
    %550 = vector.load %arg13[%c1_309, %c0_310, %c0_311] : memref<2x1x32xf32, #tpu.memory_space<vmem>>, vector<1x1x32xf32>
    %551 = vector.shape_cast %550 : vector<1x1x32xf32> to vector<1x32xf32>
    %552 = vector.broadcast %551 : vector<1x32xf32> to vector<16x32xf32>
    %553 = arith.addf %549, %552 : vector<16x32xf32>
    %554 = arith.addf %553, %526 : vector<16x32xf32>
    %c1_312 = arith.constant 1 : index
    %c0_313 = arith.constant 0 : index
    %c0_314 = arith.constant 0 : index
    %555 = vector.load %arg14[%c1_312, %c0_313, %c0_314] : memref<2x1x32xf32, #tpu.memory_space<vmem>>, vector<1x1x32xf32>
    %556 = vector.shape_cast %555 : vector<1x1x32xf32> to vector<1x32xf32>
    %c1_315 = arith.constant 1 : index
    %c0_316 = arith.constant 0 : index
    %c0_317 = arith.constant 0 : index
    %557 = vector.load %arg15[%c1_315, %c0_316, %c0_317] : memref<2x1x32xf32, #tpu.memory_space<vmem>>, vector<1x1x32xf32>
    %558 = vector.shape_cast %557 : vector<1x1x32xf32> to vector<1x32xf32>
    %cst_318 = arith.constant dense<0.000000e+00> : vector<16xf32>
    %559 = vector.multi_reduction <add>, %554, %cst_318 [1] : vector<16x32xf32> to vector<16xf32>
    %560 = vector.shape_cast %559 : vector<16xf32> to vector<16x1xf32>
    %cst_319 = arith.constant 3.200000e+01 : f32
    %561 = vector.broadcast %cst_319 : f32 to vector<16x1xf32>
    %562 = arith.divf %560, %561 : vector<16x1xf32>
    %563 = vector.broadcast %562 : vector<16x1xf32> to vector<16x32xf32>
    %564 = arith.subf %554, %563 : vector<16x32xf32>
    %565 = arith.mulf %564, %564 : vector<16x32xf32>
    %cst_320 = arith.constant dense<0.000000e+00> : vector<16xf32>
    %566 = vector.multi_reduction <add>, %565, %cst_320 [1] : vector<16x32xf32> to vector<16xf32>
    %567 = vector.shape_cast %566 : vector<16xf32> to vector<16x1xf32>
    %cst_321 = arith.constant 3.200000e+01 : f32
    %568 = vector.broadcast %cst_321 : f32 to vector<16x1xf32>
    %569 = arith.divf %567, %568 : vector<16x1xf32>
    %570 = vector.broadcast %562 : vector<16x1xf32> to vector<16x32xf32>
    %571 = arith.subf %554, %570 : vector<16x32xf32>
    %cst_322 = arith.constant 9.99999996E-13 : f32
    %572 = vector.broadcast %cst_322 : f32 to vector<16x1xf32>
    %573 = arith.addf %569, %572 : vector<16x1xf32>
    %574 = math.rsqrt %573 : vector<16x1xf32>
    %575 = vector.broadcast %574 : vector<16x1xf32> to vector<16x32xf32>
    %576 = arith.mulf %571, %575 : vector<16x32xf32>
    %577 = vector.broadcast %556 : vector<1x32xf32> to vector<16x32xf32>
    %578 = arith.mulf %576, %577 : vector<16x32xf32>
    %579 = vector.broadcast %558 : vector<1x32xf32> to vector<16x32xf32>
    %580 = arith.addf %578, %579 : vector<16x32xf32>
    %c0_323 = arith.constant 0 : index
    %c0_324 = arith.constant 0 : index
    %581 = vector.load %arg16[%c0_323, %c0_324] : memref<32x32xf32, #tpu.memory_space<vmem>>, vector<32x32xf32>
    %c0_325 = arith.constant 0 : index
    %c0_326 = arith.constant 0 : index
    %582 = vector.load %arg17[%c0_325, %c0_326] : memref<1x32xf32, #tpu.memory_space<vmem>>, vector<1x32xf32>
    %c0_327 = arith.constant 0 : index
    %c0_328 = arith.constant 0 : index
    %583 = vector.load %arg18[%c0_327, %c0_328] : memref<32x2xf32, #tpu.memory_space<vmem>>, vector<32x2xf32>
    %c0_329 = arith.constant 0 : index
    %c0_330 = arith.constant 0 : index
    %584 = vector.load %arg19[%c0_329, %c0_330] : memref<1x2xf32, #tpu.memory_space<vmem>>, vector<1x2xf32>
    %585 = vector.extract_strided_slice %580 {offsets = [0, 0], sizes = [1, 32], strides = [1, 1]} : vector<16x32xf32> to vector<1x32xf32>
    %cst_331 = arith.constant dense<0.000000e+00> : vector<1x32xf32>
    %586 = tpu.matmul %585, %581, %cst_331 {dimension_numbers = #tpu.dot_dimension_numbers<[1], [0], [0], [1], [0, 0, 1, 1], [], []>} : vector<1x32xf32>, vector<32x32xf32>, vector<1x32xf32> -> vector<1x32xf32>
    %587 = arith.addf %586, %582 : vector<1x32xf32>
    %588 = math.tanh %587 : vector<1x32xf32>
    %cst_332 = arith.constant dense<0.000000e+00> : vector<1x2xf32>
    %589 = tpu.matmul %588, %583, %cst_332 {dimension_numbers = #tpu.dot_dimension_numbers<[1], [0], [0], [1], [0, 0, 1, 1], [], []>} : vector<1x32xf32>, vector<32x2xf32>, vector<1x2xf32> -> vector<1x2xf32>
    %590 = arith.addf %589, %584 : vector<1x2xf32>
    %c0_333 = arith.constant 0 : index
    %c0_334 = arith.constant 0 : index
    %591 = vector.load %arg20[%c0_333, %c0_334] : memref<2x2xf32, #tpu.memory_space<vmem>>, vector<1x2xf32>
    tpu.vector_store %arg20[%c0_333, %c0_334], %590 {strides = array<i32>} : memref<2x2xf32, #tpu.memory_space<vmem>>, vector<1x2xf32>,
    %592 = vector.extract_strided_slice %580 {offsets = [8, 0], sizes = [1, 32], strides = [1, 1]} : vector<16x32xf32> to vector<1x32xf32>
    %cst_335 = arith.constant dense<0.000000e+00> : vector<1x32xf32>
    %593 = tpu.matmul %592, %581, %cst_335 {dimension_numbers = #tpu.dot_dimension_numbers<[1], [0], [0], [1], [0, 0, 1, 1], [], []>} : vector<1x32xf32>, vector<32x32xf32>, vector<1x32xf32> -> vector<1x32xf32>
    %594 = arith.addf %593, %582 : vector<1x32xf32>
    %595 = math.tanh %594 : vector<1x32xf32>
    %cst_336 = arith.constant dense<0.000000e+00> : vector<1x2xf32>
    %596 = tpu.matmul %595, %583, %cst_336 {dimension_numbers = #tpu.dot_dimension_numbers<[1], [0], [0], [1], [0, 0, 1, 1], [], []>} : vector<1x32xf32>, vector<32x2xf32>, vector<1x2xf32> -> vector<1x2xf32>
    %597 = arith.addf %596, %584 : vector<1x2xf32>
    %c1_337 = arith.constant 1 : index
    %c0_338 = arith.constant 0 : index
    %598 = vector.load %arg20[%c1_337, %c0_338] : memref<2x2xf32, #tpu.memory_space<vmem>>, vector<1x2xf32>
    tpu.vector_store %arg20[%c1_337, %c0_338], %597 {strides = array<i32>} : memref<2x2xf32, #tpu.memory_space<vmem>>, vector<1x2xf32>,
    return
  }
}

</mosaic_0001>

<bundles_post_ra>
// kernel: bert_classifier_forward.1
= control target key start
LH: loop header
LB: loop body
LE: loop exit
PB: predicated region body
PF: predicated region fallthrough
CT: control target
= control target key end

     0   :  { %s6760_s0 = inlined_call_operand.vmem [shape: f32[16,32], index: 0, kind: input, shape index: {}]   ;;  %s6761_s1 = inlined_call_operand.vmem [shape: f32[2,8], index: 1, kind: input, shape index: {}]   ;;  %s6762_s2 = inlined_call_operand.vmem [shape: f32[1,32], index: 2, kind: input, shape index: {}]   ;;  %s6763_s3 = inlined_call_operand.vmem [shape: f32[1,32], index: 3, kind: input, shape index: {}]   ;;  %s6764_s4 = inlined_call_operand.vmem [shape: f32[2,32,96], index: 4, kind: input, shape index: {}]   ;;  %s6765_s5 = inlined_call_operand.vmem [shape: f32[2,1,96], index: 5, kind: input, shape index: {}]   ;;  %s6766_s6 = inlined_call_operand.vmem [shape: f32[2,32,32], index: 6, kind: input, shape index: {}]   ;;  %s6767_s7 = inlined_call_operand.vmem [shape: f32[2,1,32], index: 7, kind: input, shape index: {}]   ;;  %s6768_s8 = inlined_call_operand.vmem [shape: f32[2,1,32], index: 8, kind: input, shape index: {}]   ;;  %s6769_s9 = inlined_call_operand.vmem [shape: f32[2,1,32], index: 9, kind: input, shape index: {}]   ;;  %s6770_s10 = inlined_call_operand.vmem [shape: f32[2,32,64], index: 10, kind: input, shape index: {}]   ;;  %s6771_s11 = inlined_call_operand.vmem [shape: f32[2,1,64], index: 11, kind: input, shape index: {}]   ;;  %s6772_s12 = inlined_call_operand.vmem [shape: f32[2,64,32], index: 12, kind: input, shape index: {}]   ;;  %s6773_s13 = inlined_call_operand.vmem [shape: f32[2,1,32], index: 13, kind: input, shape index: {}]   ;;  %s6774_s14 = inlined_call_operand.vmem [shape: f32[2,1,32], index: 14, kind: input, shape index: {}]   ;;  %s6775_s15 = inlined_call_operand.vmem [shape: f32[2,1,32], index: 15, kind: input, shape index: {}]   ;;  %s6776_s16 = inlined_call_operand.vmem [shape: f32[32,32], index: 16, kind: input, shape index: {}]   ;;  %s6777_s17 = inlined_call_operand.vmem [shape: f32[1,32], index: 17, kind: input, shape index: {}]   ;;  %s6778_s18 = inlined_call_operand.vmem [shape: f32[32,2], index: 18, kind: input, shape index: {}]   ;;  %s6779_s19 = inlined_call_operand.vmem [shape: f32[1,2], index: 19, kind: input, shape index: {}]   ;;  %s6780_s20 = inlined_call_operand.hbm [shape: f32[2,2], index: 20, kind: output, shape index: {}]  }
   0x1   :  { %6796 = sst [smem:[#allocation7_spill]] %s6760_s0 }
   0x2   :  { %6797 = sst [smem:[#allocation8_spill]] %s6761_s1 }
   0x3   :  { %6798 = sst [smem:[#allocation9_spill]] %s6762_s2 }
   0x4   :  { %6799 = sst [smem:[#allocation10_spill]] %s6763_s3 }
   0x5   :  { %6800 = sst [smem:[#allocation11_spill]] %s6764_s4 }
   0x6   :  { %s6801_s23 = sld [smem:[#allocation7_spill]]  ;;  %vm70_vm0 = vcmask 261120  }
   0xc   :  { %v66_v0 = vld [vmem:[%s6801_s23] sm:$0xff]  ;;  %v67_v1 = vld [vmem:[%s6801_s23 + $0x8] sm:$0xff] }
   0xd   :  { %25 = vsyncpa [#allocation5], 0  ;;  %v71_v2 = vsel %vm70_vm0, %v66_v0, 0.0  ;;  %v74_v3 = vsel %vm70_vm0, %v67_v1, 0.0  ;;  %s6802_s26 = sld [smem:[#allocation11_spill]]  ;;  %v5926_v34 = vmov 0.0  }
   0xe   :  { %72 = vadd.xlane.f32.xlu0 %v71_v2  ;;  %s6803_s22 = sld [smem:[#allocation9_spill]]  ;;  %5437 = vmatprep.subr.mxu1 %v5926_v34  ;;  %v5138_v35 = vld [vmem:[%s6765_s5] ss:$0 sm:$0xff]  ;;  %vm206_vm1 = vcmask 785408   ;;  %vm5927_vm2 = vmmov 0   ;;  %s6786_s27 = smov 96  }
   0xf   :  { %s6804_s2 = sld [smem:[#allocation10_spill]]  ;;  %5439 = vmatprep.mubr.msk.f32.mxu1 %vm5927_vm2, %v5926_v34  ;;  %s6784_s28 = smov 88   ;;  %vm218_vm3 = vcmask 64512   ;;  %vm2332_vm4 = vcmask 523264   ;;  %vm4972_vm5 = vcmask 8192  }
  0x10   :  { %s6805_s30 = sld [smem:[#allocation8_spill]]  ;;  %s5930_s0 = smov 64  }
  0x11   :  { %s5931_s21 = smov 120   ;;  %s5932_s1 = smov 56  }
  0x12   :  { %75 = vadd.xlane.f32.xlu0 %v74_v3  ;;  %s5934_s23 = smov 80   ;;  %s6790_s4 = smov 72  }
  0x13   :  { %v117_v14 = vld [vmem:[%s6802_s26 + $0x18] sm:$0xff]  ;;  %v116_v15 = vld [vmem:[%s6802_s26 + $0x10] sm:$0xff]  ;;  %v115_v16 = vld [vmem:[%s6802_s26 + $0x8] sm:$0xff]  ;;  %s6792_s29 = smov 104   ;;  %s6794_s24 = smov 48  }
  0x14   :  { %5426 = vmatprep.subr.mxu0 %v117_v14  ;;  %v114_v17 = vld [vmem:[%s6802_s26] sm:$0xff]  ;;  %s6788_s3 = smov 40   ;;  %s6811_s25 = smov 40  }
  0x15   :  { %5427 = vmatpush3.msra.mxu0 %v117_v14  ;;  %v5136_v25 = vld [vmem:[%s6803_s22] ss:$0 sm:$0xff]  ;;  %s5933_s22 = smov 112  }
  0x16   :  { %5428 = vmatprep.subr.mxu0 %v116_v15  ;;  %v5137_v27 = vld [vmem:[%s6804_s2] ss:$0 sm:$0xff] }
  0x17   :  { %5429 = vmatpush3.msra.mxu0 %v116_v15  ;;  %v6107_v43 = vld [vmem:[%s6805_s30] ss:$0 sm:$0xff] }
  0x18   :  { %5430 = vmatprep.subr.mxu0 %v115_v16 }
  0x19   :  { %5431 = vmatpush3.msra.mxu0 %v115_v16 }
  0x1a   :  { %5432 = vmatprep.subr.mxu0 %v114_v17 }
  0x1b   :  { %5433 = vmatpush3.msra.mxu0 %v114_v17 }
  0x1c   :  { %5457 = vmatprep.subr.mxu0 %v5926_v34 }
  0x97   :  { %v73_v4 = vpop.xlane.xlu0 %72 }
  0x98   :  { %v78_v5 = vmul.f32 0.03125, %v73_v4 }
  0x9a   :  { %v80_v6 = vsub.f32 %v66_v0, %v78_v5 }
  0x9b   :  { %v76_v7 = vpop.xlane.xlu0 %75 }
  0x9c   :  { %v79_v8 = vmul.f32 0.03125, %v76_v7  ;;  %v82_v9 = vmul.f32 %v80_v6, %v80_v6 }
  0x9e   :  { %v81_v10 = vsub.f32 %v67_v1, %v79_v8  ;;  %v84_v11 = vsel %vm70_vm0, %v82_v9, 0.0  ;;  %v6138_v8 = vld [vmem:[%s6766_s6 + $0x8] sm:$0xff] }
  0x9f   :  { %85 = vadd.xlane.f32.xlu1 %v84_v11 }
  0xa0   :  { %v83_v12 = vmul.f32 %v81_v10, %v81_v10 }
  0xa2   :  { %v87_v13 = vsel %vm70_vm0, %v83_v12, 0.0  ;;  %v6145_v12 = vld [vmem:[%s6766_s6] sm:$0xff] }
  0xa3   :  { %88 = vadd.xlane.f32.xlu1 %v87_v13 }
 0x128   :  { %v86_v18 = vpop.xlane.xlu1 %85 }
 0x129   :  { %v90_v19 = vmul.f32 0.03125, %v86_v18 }
 0x12b   :  { %v92_v20 = vadd.f32 1e-12, %v90_v19 }
 0x12c   :  { %v89_v21 = vpop.xlane.xlu1 %88 }
 0x12d   :  { %5806 = vrsqrt.f32 %v92_v20  ;;  %v91_v22 = vmul.f32 0.03125, %v89_v21 }
 0x12f   :  { %v93_v23 = vadd.f32 1e-12, %v91_v22 }
 0x131   :  { %5808 = vrsqrt.f32 %v93_v23 }
 0x13a   :  { %v5807_v24 = vpop.eup %5806 }
 0x13b   :  { %v96_v26 = vmul.f32 %v5807_v24, %v80_v6 }
 0x13d   :  { %v104_v28 = vmul.f32 %v5136_v25, %v96_v26 }
 0x13e   :  { %v5809_v29 = vpop.eup %5808 }
 0x13f   :  { %v97_v30 = vmul.f32 %v5809_v29, %v81_v10  ;;  %v6073_v31 = vadd.f32 %v5137_v27, %v104_v28 }
 0x141   :  { %v105_v32 = vmul.f32 %v5136_v25, %v97_v30  ;;  %5434 = vmatprep.mubr.msk.f32.mxu0 %vm70_vm0, %v6073_v31 }
 0x143   :  { %v6077_v33 = vadd.f32 %v5137_v27, %v105_v32 }
 0x145   :  { %5435 = vmatmul.mubr.msk.f32.vlgmr.msra.gmra.mxu0 %vm70_vm0, %v6077_v33 }
 0x146   :  { %5459 = vmatprep.mubr.msk.f32.mxu0 %vm5927_vm2, %v5926_v34  ;;  %5458 = vmatpush3.msra.mxu0 %v6138_v8 }
 0x147   :  { %5467 = vmatprep.subr.mxu0 %v5926_v34 }
 0x205   :  { %v5436_v36 = vpop.f32.mrf.mxu0 }
 0x206   :  { %v203_v37 = vadd.f32 %v5436_v36, %v5138_v35 }
 0x207   :  { %v197_v38 = vpop.f32.mrf.mxu0 }
 0x208   :  { %208 = vst.msk [vmem:[#allocation2 + $0x8] sm:$0xff] %vm206_vm1, %v203_v37  ;;  %v198_v39 = vadd.f32 %v5138_v35, %v197_v38 }
 0x20a   :  { %207 = vst.msk [vmem:[#allocation2] sm:$0xff] %vm206_vm1, %v198_v39 }
 0x20f   :  { %v6173_v26 = vld [vmem:[#allocation2 + $0x8] sm:$0xff] }
 0x211   :  { %v6092_v40 = vld [vmem:[#allocation2] sm:$0xff] }
 0x212   :  { %216 = vrot.lane.b32.xlu0 %v6092_v40, %s6786_s27 }
 0x216   :  { %388 = vrot.lane.b32.xlu0 %v6092_v40, %s6784_s28 }
 0x284   :  { %v217_v41 = vpop.permute.xlu0 %216 }
 0x285   :  { %5438 = vmatpush3.xpose.msk.msra.mxu1 %vm218_vm3, %v217_v41 }
 0x286   :  { %5442 = vmatprep.subr.mxu1 %v5926_v34 }
 0x288   :  { %5440 = vmatmul.mubr.msk.f32.vlgmr.msra.gmra.mxu1 %vm218_vm3, %v6092_v40  ;;  %v389_v57 = vpop.permute.xlu0 %388 }
 0x289   :  { %5444 = vmatprep.mubr.msk.f32.mxu1 %vm5927_vm2, %v5926_v34 }
 0x348   :  { %v289_v42 = vpop.f32.mrf.mxu1 }
 0x349   :  { %v293_v44 = vmul.f32 0.35355338, %v289_v42  ;;  %v6192_v42 = vld [vmem:[%s6766_s6 + $0x10] sm:$0xff] }
 0x34a   :  { %v5441_v45 = vpop.f32.mrf.mxu1 }
 0x34b   :  { %v298_v46 = vadd.f32 %v6107_v43, %v293_v44 }
 0x34d   :  { %v299_v47 = vsel %vm218_vm3, %v298_v46, -inf }
 0x34e   :  { %300 = vmax.xlane.f32.xlu1 %v299_v47 }
 0x35f   :  { %310 = vrot.lane.b32.xlu1 %v6092_v40, %s5930_s0 }
 0x3d7   :  { %v301_v48 = vpop.xlane.xlu1 %300 }
 0x3d8   :  { %v302_v49 = vsub.f32 %v298_v46, %v301_v48 }
 0x3da   :  { %v303_v50 = vmul.f32 1.442695, %v302_v49 }
 0x3db   :  { %v311_v51 = vpop.permute.xlu1 %310 }
 0x3dc   :  { %5810 = vpow2.f32 %v303_v50  ;;  %5443 = vmatpush3.msra.mxu1 %v311_v51 }
 0x3dd   :  { %5447 = vmatprep.subr.mxu1 %v5926_v34 }
 0x3e9   :  { %v5811_v52 = vpop.eup %5810 }
 0x3ea   :  { %v305_v53 = vsel %vm218_vm3, %v5811_v52, 0.0 }
 0x3eb   :  { %306 = vadd.xlane.f32.xlu1 %v305_v53 }
 0x3fc   :  { %386 = vrot.lane.b32.xlu1 %v6092_v40, %s5931_s21 }
 0x474   :  { %v307_v54 = vpop.xlane.xlu1 %306 }
 0x475   :  { %5812 = vrcp.f32 %v307_v54 }
 0x478   :  { %v387_v58 = vpop.permute.xlu1 %386 }
 0x482   :  { %v5813_v55 = vpop.eup %5812 }
 0x483   :  { %v309_v56 = vmul.f32 %v5813_v55, %v5811_v52 }
 0x485   :  { %5445 = vmatmul.mubr.msk.f32.vlgmr.msra.gmra.mxu1 %vm218_vm3, %v309_v56 }
 0x486   :  { %5448 = vmatpush3.xpose.msk.msra.mxu1 %vm218_vm3, %v389_v57  ;;  %5449 = vmatprep.mubr.msk.f32.mxu1 %vm5927_vm2, %v5926_v34 }
 0x487   :  { %5452 = vmatprep.subr.mxu1 %v5926_v34 }
 0x489   :  { %5450 = vmatmul.mubr.msk.f32.vlgmr.msra.gmra.mxu1 %vm218_vm3, %v387_v58 }
 0x48a   :  { %5454 = vmatprep.mubr.msk.f32.mxu1 %vm5927_vm2, %v5926_v34 }
 0x545   :  { %v382_v59 = vpop.f32.mrf.mxu1 }
 0x547   :  { %v5446_v60 = vpop.f32.mrf.mxu1 }
 0x549   :  { %v460_v61 = vpop.f32.mrf.mxu1 }
 0x54a   :  { %v464_v62 = vmul.f32 0.35355338, %v460_v61 }
 0x54b   :  { %v5451_v63 = vpop.f32.mrf.mxu1 }
 0x54c   :  { %v465_v0 = vadd.f32 %v6107_v43, %v464_v62 }
 0x54e   :  { %v466_v1 = vsel %vm218_vm3, %v465_v0, -inf }
 0x54f   :  { %467 = vmax.xlane.f32.xlu0 %v466_v1 }
 0x565   :  { %477 = vrot.lane.b32.xlu0 %v6092_v40, %s5932_s1 }
 0x569   :  { %699 = vrot.lane.b32.xlu0 %v6092_v40, %s5933_s22 }
 0x5d8   :  { %v468_v2 = vpop.xlane.xlu0 %467 }
 0x5d9   :  { %v469_v3 = vsub.f32 %v465_v0, %v468_v2  ;;  %v6230_v2 = vld [vmem:[%s6766_s6 + $0x18] sm:$0xff] }
 0x5db   :  { %v470_v4 = vmul.f32 1.442695, %v469_v3 }
 0x5dc   :  { %v478_v5 = vpop.permute.xlu0 %477 }
 0x5dd   :  { %5814 = vpow2.f32 %v470_v4  ;;  %5453 = vmatpush3.msra.mxu1 %v478_v5 }
 0x5de   :  { %5462 = vmatprep.subr.mxu1 %v5926_v34 }
 0x5e0   :  { %v700_v16 = vpop.permute.xlu0 %699 }
 0x5ea   :  { %v5815_v6 = vpop.eup %5814 }
 0x5eb   :  { %v472_v7 = vsel %vm218_vm3, %v5815_v6, 0.0 }
 0x5ec   :  { %473 = vadd.xlane.f32.xlu1 %v472_v7 }
 0x5fd   :  { %701 = vrot.lane.b32.xlu1 %v6092_v40, %s5934_s23 }
 0x675   :  { %v474_v9 = vpop.xlane.xlu1 %473 }
 0x676   :  { %5816 = vrcp.f32 %v474_v9 }
 0x679   :  { %v702_v14 = vpop.permute.xlu1 %701 }
 0x683   :  { %v5817_v10 = vpop.eup %5816 }
 0x684   :  { %v476_v11 = vmul.f32 %v5817_v10, %v5815_v6  ;;  %v6240_v6 = vld [vmem:[%s6805_s30 + $0x1] ss:$0 sm:$0xff] }
 0x686   :  { %5455 = vmatmul.mubr.msk.f32.vlgmr.msra.gmra.mxu1 %vm218_vm3, %v476_v11 }
 0x687   :  { %5463 = vmatpush3.msra.mxu1 %v6145_v12  ;;  %5464 = vmatprep.mubr.msk.f32.mxu1 %vm5927_vm2, %v5926_v34 }
 0x688   :  { %5472 = vmatprep.subr.mxu1 %v5926_v34 }
 0x68a   :  { %5465 = vmatmul.mubr.msk.f32.vlgmr.msra.gmra.mxu1 %vm218_vm3, %v382_v59 }
 0x68b   :  { %5474 = vmatprep.mubr.msk.f32.mxu1 %vm5927_vm2, %v5926_v34 }
 0x746   :  { %v549_v13 = vpop.f32.mrf.mxu1 }
 0x747   :  { %5460 = vmatmul.mubr.msk.f32.vlgmr.msra.gmra.mxu0 %vm218_vm3, %v549_v13 }
 0x748   :  { %5468 = vmatpush3.xpose.msk.msra.mxu0 %vm218_vm3, %v702_v14  ;;  %v5456_v15 = vpop.f32.mrf.mxu1  ;;  %5469 = vmatprep.mubr.msk.f32.mxu0 %vm5927_vm2, %v5926_v34 }
 0x749   :  { %5477 = vmatprep.subr.mxu0 %v5926_v34 }
 0x74a   :  { %v6160_v17 = vpop.f32.mrf.mxu1 }
 0x74b   :  { %5470 = vmatmul.mubr.msk.f32.vlgmr.msra.gmra.mxu0 %vm218_vm3, %v700_v16 }
 0x74c   :  { %v5466_v18 = vpop.f32.mrf.mxu1  ;;  %5479 = vmatprep.mubr.msk.f32.mxu0 %vm5927_vm2, %v5926_v34  ;;  %5478 = vmatpush3.msra.mxu0 %v6192_v42 }
 0x74d   :  { %5487 = vmatprep.subr.mxu0 %v5926_v34 }
 0x807   :  { %v6165_v19 = vpop.f32.mrf.mxu0 }
 0x809   :  { %v5461_v20 = vpop.f32.mrf.mxu0 }
 0x80b   :  { %v773_v21 = vpop.f32.mrf.mxu0 }
 0x80c   :  { %v777_v22 = vmul.f32 0.35355338, %v773_v21 }
 0x80d   :  { %v5471_v23 = vpop.f32.mrf.mxu0 }
 0x80e   :  { %v778_v24 = vadd.f32 %v6107_v43, %v777_v22 }
 0x810   :  { %v779_v25 = vsel %vm218_vm3, %v778_v24, -inf }
 0x811   :  { %780 = vmax.xlane.f32.xlu1 %v779_v25 }
 0x822   :  { %942 = vrot.lane.b32.xlu1 %v6092_v40, %s6790_s4 }
 0x826   :  { %940 = vrot.lane.b32.xlu1 %v6092_v40, %s6792_s29 }
 0x82a   :  { %1185 = vrot.lane.b32.xlu1 %v6173_v26, %s6786_s27 }
 0x89a   :  { %v781_v27 = vpop.xlane.xlu1 %780 }
 0x89b   :  { %v782_v28 = vsub.f32 %v778_v24, %v781_v27 }
 0x89d   :  { %v783_v29 = vmul.f32 1.442695, %v782_v28 }
 0x89e   :  { %v943_v38 = vpop.permute.xlu1 %942 }
 0x89f   :  { %5818 = vpow2.f32 %v783_v29 }
 0x8a2   :  { %v941_v41 = vpop.permute.xlu1 %940 }
 0x8a6   :  { %v1186_v60 = vpop.permute.xlu1 %1185 }
 0x8ac   :  { %v5819_v30 = vpop.eup %5818 }
 0x8ad   :  { %v785_v32 = vsel %vm218_vm3, %v5819_v30, 0.0 }
 0x8ae   :  { %786 = vadd.xlane.f32.xlu0 %v785_v32 }
 0x8c4   :  { %790 = vrot.lane.b32.xlu0 %v6092_v40, %s6794_s24 }
 0x937   :  { %v787_v35 = vpop.xlane.xlu0 %786 }
 0x938   :  { %5820 = vrcp.f32 %v787_v35 }
 0x93b   :  { %v791_v36 = vpop.permute.xlu0 %790 }
 0x93c   :  { %5473 = vmatpush3.msra.mxu1 %v791_v36 }
 0x93d   :  { %5482 = vmatprep.subr.mxu1 %v5926_v34 }
 0x945   :  { %v5821_v37 = vpop.eup %5820 }
 0x946   :  { %v789_v39 = vmul.f32 %v5821_v37, %v5819_v30 }
 0x948   :  { %5475 = vmatmul.mubr.msk.f32.vlgmr.msra.gmra.mxu1 %vm218_vm3, %v789_v39 }
 0x949   :  { %5483 = vmatpush3.xpose.msk.msra.mxu1 %vm218_vm3, %v943_v38  ;;  %5484 = vmatprep.mubr.msk.f32.mxu1 %vm5927_vm2, %v5926_v34 }
 0x94a   :  { %5492 = vmatprep.subr.mxu1 %v5926_v34 }
 0x94c   :  { %5485 = vmatmul.mubr.msk.f32.vlgmr.msra.gmra.mxu1 %vm218_vm3, %v941_v41 }
 0x94d   :  { %5494 = vmatprep.mubr.msk.f32.mxu1 %vm5927_vm2, %v5926_v34  ;;  %5493 = vmatpush3.msra.mxu1 %v6230_v2 }
 0x94e   :  { %5502 = vmatprep.subr.mxu1 %v5926_v34 }
 0xa08   :  { %v862_v44 = vpop.f32.mrf.mxu1 }
 0xa09   :  { %5480 = vmatmul.mubr.msk.f32.vlgmr.msra.gmra.mxu0 %vm218_vm3, %v862_v44 }
 0xa0a   :  { %v5476_v45 = vpop.f32.mrf.mxu1  ;;  %5489 = vmatprep.mubr.msk.f32.mxu0 %vm5927_vm2, %v5926_v34 }
 0xa0c   :  { %v1014_v46 = vpop.f32.mrf.mxu1 }
 0xa0d   :  { %v1018_v47 = vmul.f32 0.35355338, %v1014_v46 }
 0xa0e   :  { %v5486_v48 = vpop.f32.mrf.mxu1 }
 0xa0f   :  { %v1019_v49 = vadd.f32 %v6107_v43, %v1018_v47 }
 0xa11   :  { %v1020_v50 = vsel %vm218_vm3, %v1019_v49, -inf }
 0xa12   :  { %1021 = vmax.xlane.f32.xlu0 %v1020_v50 }
 0xa28   :  { %1031 = vrot.lane.b32.xlu0 %v6092_v40, %s6788_s3  ;;  %v696_v40 = vadd.f32 %v6160_v17, %v6165_v19 }
 0xa2c   :  { %1356 = vrot.lane.b32.xlu0 %v6173_v26, %s6784_s28  ;;  %s6808_s28 = smov 48  }
 0xa9b   :  { %v1022_v51 = vpop.xlane.xlu0 %1021 }
 0xa9c   :  { %v1023_v52 = vsub.f32 %v1019_v49, %v1022_v51 }
 0xa9e   :  { %v1024_v53 = vmul.f32 1.442695, %v1023_v52 }
 0xa9f   :  { %v1032_v54 = vpop.permute.xlu0 %1031 }
 0xaa0   :  { %5822 = vpow2.f32 %v1024_v53  ;;  %5488 = vmatpush3.msra.mxu0 %v1032_v54 }
 0xaa1   :  { %5497 = vmatprep.subr.mxu0 %v5926_v34 }
 0xaa3   :  { %v1357_v0 = vpop.permute.xlu0 %1356 }
 0xaad   :  { %v5823_v55 = vpop.eup %5822 }
 0xaae   :  { %v1026_v56 = vsel %vm218_vm3, %v5823_v55, 0.0 }
 0xaaf   :  { %1027 = vadd.xlane.f32.xlu1 %v1026_v56 }
 0xac0   :  { %1354 = vrot.lane.b32.xlu1 %v6173_v26, %s5931_s21 }
 0xac9   :  { %v935_v57 = vpop.f32.mrf.mxu0 }
 0xaca   :  { %v939_v58 = vadd.f32 %v935_v57, %v696_v40 }
 0xacb   :  { %v5481_v59 = vpop.f32.mrf.mxu0 }
 0xb38   :  { %v1028_v61 = vpop.xlane.xlu1 %1027 }
 0xb39   :  { %5824 = vrcp.f32 %v1028_v61 }
 0xb3c   :  { %v1355_v1 = vpop.permute.xlu1 %1354 }
 0xb46   :  { %v5825_v62 = vpop.eup %5824 }
 0xb47   :  { %v1030_v63 = vmul.f32 %v5825_v62, %v5823_v55 }
 0xb49   :  { %5490 = vmatmul.mubr.msk.f32.vlgmr.msra.gmra.mxu0 %vm218_vm3, %v1030_v63 }
 0xb4a   :  { %5498 = vmatpush3.xpose.msk.msra.mxu0 %vm218_vm3, %v1186_v60  ;;  %5499 = vmatprep.mubr.msk.f32.mxu0 %vm5927_vm2, %v5926_v34 }
 0xb4b   :  { %5507 = vmatprep.subr.mxu0 %v5926_v34 }
 0xb4d   :  { %5500 = vmatmul.mubr.msk.f32.vlgmr.msra.gmra.mxu0 %vm218_vm3, %v6173_v26 }
 0xb4e   :  { %5508 = vmatpush3.xpose.msk.msra.mxu0 %vm218_vm3, %v1357_v0  ;;  %5509 = vmatprep.mubr.msk.f32.mxu0 %vm5927_vm2, %v5926_v34 }
 0xb4f   :  { %5517 = vmatprep.subr.mxu0 %v5926_v34 }
 0xb51   :  { %5510 = vmatmul.mubr.msk.f32.vlgmr.msra.gmra.mxu0 %vm218_vm3, %v1355_v1 }
 0xb52   :  { %5518 = vmatpush3.msra.mxu0 %v6138_v8  ;;  %5519 = vmatprep.mubr.msk.f32.mxu0 %vm5927_vm2, %v5926_v34 }
 0xb53   :  { %5527 = vmatprep.subr.mxu0 %v5926_v34 }
 0xc09   :  { %v1103_v3 = vpop.f32.mrf.mxu0 }
 0xc0a   :  { %5495 = vmatmul.mubr.msk.f32.vlgmr.msra.gmra.mxu1 %vm218_vm3, %v1103_v3 }
 0xc0b   :  { %v5491_v4 = vpop.f32.mrf.mxu0  ;;  %5504 = vmatprep.mubr.msk.f32.mxu1 %vm5927_vm2, %v5926_v34 }
 0xc0d   :  { %v1257_v5 = vpop.f32.mrf.mxu0 }
 0xc0e   :  { %v1261_v7 = vmul.f32 0.35355338, %v1257_v5 }
 0xc0f   :  { %v5501_v8 = vpop.f32.mrf.mxu0 }
 0xc10   :  { %v1266_v9 = vadd.f32 %v6240_v6, %v1261_v7 }
 0xc11   :  { %v1428_v10 = vpop.f32.mrf.mxu0 }
 0xc12   :  { %v1432_v11 = vmul.f32 0.35355338, %v1428_v10  ;;  %v1267_v13 = vsel %vm218_vm3, %v1266_v9, -inf  ;;  %v5175_v10 = vld [vmem:[%s6767_s7] ss:$0 sm:$0xff] }
 0xc13   :  { %1268 = vmax.xlane.f32.xlu0 %v1267_v13  ;;  %v5511_v14 = vpop.f32.mrf.mxu0 }
 0xc14   :  { %v1433_v15 = vadd.f32 %v6240_v6, %v1432_v11 }
 0xc16   :  { %v1434_v16 = vsel %vm218_vm3, %v1433_v15, -inf }
 0xc17   :  { %1435 = vmax.xlane.f32.xlu1 %v1434_v16 }
 0xc28   :  { %1445 = vrot.lane.b32.xlu1 %v6173_v26, %s5932_s1 }
 0xc2c   :  { %1669 = vrot.lane.b32.xlu1 %v6173_v26, %s5934_s23 }
 0xc30   :  { %1667 = vrot.lane.b32.xlu1 %v6173_v26, %s5933_s22 }
 0xc9c   :  { %v1269_v17 = vpop.xlane.xlu0 %1268 }
 0xc9d   :  { %v1270_v18 = vsub.f32 %v1266_v9, %v1269_v17 }
 0xc9f   :  { %v1271_v19 = vmul.f32 1.442695, %v1270_v18 }
 0xca0   :  { %v1436_v20 = vpop.xlane.xlu1 %1435 }
 0xca1   :  { %5826 = vpow2.f32 %v1271_v19  ;;  %v1437_v21 = vsub.f32 %v1433_v15, %v1436_v20 }
 0xca3   :  { %v1438_v22 = vmul.f32 1.442695, %v1437_v21 }
 0xca4   :  { %v1446_v39 = vpop.permute.xlu1 %1445 }
 0xca5   :  { %5828 = vpow2.f32 %v1438_v22 }
 0xca8   :  { %v1670_v46 = vpop.permute.xlu1 %1669 }
 0xcae   :  { %v5827_v23 = vpop.eup %5826 }
 0xcaf   :  { %v1273_v24 = vsel %vm218_vm3, %v5827_v23, 0.0 }
 0xcb0   :  { %1274 = vadd.xlane.f32.xlu0 %v1273_v24 }
 0xcb2   :  { %v5829_v25 = vpop.eup %5828 }
 0xcb3   :  { %v1440_v27 = vsel %vm218_vm3, %v5829_v25, 0.0 }
 0xcb4   :  { %1441 = vadd.xlane.f32.xlu0 %v1440_v27 }
 0xcca   :  { %1278 = vrot.lane.b32.xlu0 %v6173_v26, %s5930_s0  ;;  %v1176_v28 = vpop.f32.mrf.mxu1 }
 0xccb   :  { %v1180_v29 = vadd.f32 %v1176_v28, %v939_v58 }
 0xccc   :  { %v5496_v30 = vpop.f32.mrf.mxu1 }
 0xccd   :  { %1181 = vst.msk [vmem:[#allocation3] sm:$0xff] %vm70_vm0, %v1180_v29 }
 0xcd4   :  { %v2150_v9 = vld [vmem:[#allocation3] sm:$0xff] }
 0xcd5   :  { %v2159_v14 = vadd.f32 %v5175_v10, %v2150_v9  ;;  %v2324_v9 = vld [vmem:[%s6772_s12 + $0x38] sm:$0xff] }
 0xcd7   :  { %v2161_v17 = vadd.f32 %v2159_v14, %v6073_v31  ;;  %v2320_v14 = vld [vmem:[%s6772_s12 + $0x18] sm:$0xff] }
 0xcd9   :  { %v2165_v18 = vsel %vm70_vm0, %v2161_v17, 0.0 }
 0xd39   :  { %v1275_v32 = vpop.xlane.xlu0 %1274 }
 0xd3a   :  { %5830 = vrcp.f32 %v1275_v32 }
 0xd3d   :  { %v1442_v35 = vpop.xlane.xlu0 %1441 }
 0xd3e   :  { %5832 = vrcp.f32 %v1442_v35 }
 0xd41   :  { %v1279_v36 = vpop.permute.xlu0 %1278 }
 0xd42   :  { %5503 = vmatpush3.msra.mxu1 %v1279_v36 }
 0xd43   :  { %5512 = vmatprep.subr.mxu1 %v5926_v34 }
 0xd47   :  { %v5831_v37 = vpop.eup %5830 }
 0xd48   :  { %v1277_v38 = vmul.f32 %v5831_v37, %v5827_v23 }
 0xd4a   :  { %5505 = vmatmul.mubr.msk.f32.vlgmr.msra.gmra.mxu1 %vm218_vm3, %v1277_v38 }
 0xd4b   :  { %v5833_v41 = vpop.eup %5832  ;;  %5513 = vmatpush3.msra.mxu1 %v1446_v39  ;;  %5514 = vmatprep.mubr.msk.f32.mxu1 %vm5927_vm2, %v5926_v34 }
 0xd4c   :  { %v1444_v44 = vmul.f32 %v5833_v41, %v5829_v25  ;;  %5522 = vmatprep.subr.mxu1 %v5926_v34 }
 0xd4e   :  { %5515 = vmatmul.mubr.msk.f32.vlgmr.msra.gmra.mxu1 %vm218_vm3, %v1444_v44 }
 0xd4f   :  { %5523 = vmatpush3.msra.mxu1 %v6145_v12  ;;  %5524 = vmatprep.mubr.msk.f32.mxu1 %vm5927_vm2, %v5926_v34  ;;  %v1668_v12 = vpop.permute.xlu1 %1667 }
 0xd50   :  { %5532 = vmatprep.subr.mxu1 %v5926_v34 }
 0xe0a   :  { %v1350_v45 = vpop.f32.mrf.mxu1 }
 0xe0b   :  { %5525 = vmatmul.mubr.msk.f32.vlgmr.msra.gmra.mxu1 %vm218_vm3, %v1350_v45 }
 0xe0c   :  { %v5506_v47 = vpop.f32.mrf.mxu1  ;;  %5534 = vmatprep.mubr.msk.f32.mxu1 %vm5927_vm2, %v5926_v34 }
 0xe0e   :  { %v1517_v48 = vpop.f32.mrf.mxu1 }
 0xe0f   :  { %5520 = vmatmul.mubr.msk.f32.vlgmr.msra.gmra.mxu0 %vm218_vm3, %v1517_v48 }
 0xe10   :  { %5528 = vmatpush3.xpose.msk.msra.mxu0 %vm218_vm3, %v1670_v46  ;;  %v5516_v49 = vpop.f32.mrf.mxu1  ;;  %5529 = vmatprep.mubr.msk.f32.mxu0 %vm5927_vm2, %v5926_v34 }
 0xe11   :  { %5537 = vmatprep.subr.mxu0 %v5926_v34 }
 0xe13   :  { %5530 = vmatmul.mubr.msk.f32.vlgmr.msra.gmra.mxu0 %vm218_vm3, %v1668_v12 }
 0xe14   :  { %5538 = vmatpush3.msra.mxu0 %v6192_v42  ;;  %5539 = vmatprep.mubr.msk.f32.mxu0 %vm5927_vm2, %v5926_v34 }
 0xe15   :  { %5547 = vmatprep.subr.mxu0 %v5926_v34 }
 0xecb   :  { %v1663_v50 = vpop.f32.mrf.mxu1 }
 0xecd   :  { %v5526_v51 = vpop.f32.mrf.mxu1 }
 0xecf   :  { %v1590_v52 = vpop.f32.mrf.mxu0 }
 0xed0   :  { %v1664_v53 = vadd.f32 %v1663_v50, %v1590_v52 }
 0xed1   :  { %v5521_v54 = vpop.f32.mrf.mxu0 }
 0xed3   :  { %v1741_v55 = vpop.f32.mrf.mxu0 }
 0xed4   :  { %v1745_v56 = vmul.f32 0.35355338, %v1741_v55 }
 0xed5   :  { %v5531_v40 = vpop.f32.mrf.mxu0 }
 0xed6   :  { %v1746_v57 = vadd.f32 %v6240_v6, %v1745_v56 }
 0xed8   :  { %v1747_v58 = vsel %vm218_vm3, %v1746_v57, -inf }
 0xed9   :  { %1748 = vmax.xlane.f32.xlu0 %v1747_v58  ;;  %v5177_v58 = vld [vmem:[%s6769_s9] ss:$0 sm:$0xff] }
 0xeef   :  { %1758 = vrot.lane.b32.xlu0 %v6173_v26, %s6794_s24  ;;  %s6807_s24 = smov 88  }
 0xef3   :  { %1908 = vrot.lane.b32.xlu0 %v6173_v26, %s6792_s29  ;;  %s6806_s29 = smov 96  }
 0xf62   :  { %v1749_v42 = vpop.xlane.xlu0 %1748 }
 0xf63   :  { %v1750_v59 = vsub.f32 %v1746_v57, %v1749_v42 }
 0xf65   :  { %v1751_v60 = vmul.f32 1.442695, %v1750_v59 }
 0xf66   :  { %v1759_v61 = vpop.permute.xlu0 %1758 }
 0xf67   :  { %5834 = vpow2.f32 %v1751_v60  ;;  %5533 = vmatpush3.msra.mxu1 %v1759_v61  ;;  %v2210_v60 = vld [vmem:[%s6770_s10 + $0x18] sm:$0xff]  ;;  %v2209_v61 = vld [vmem:[%s6770_s10 + $0x10] sm:$0xff] }
 0xf68   :  { %5542 = vmatprep.subr.mxu1 %v5926_v34 }
 0xf6a   :  { %v1909_v5 = vpop.permute.xlu0 %1908 }
 0xf74   :  { %v5835_v62 = vpop.eup %5834 }
 0xf75   :  { %v1753_v63 = vsel %vm218_vm3, %v5835_v62, 0.0 }
 0xf76   :  { %1754 = vadd.xlane.f32.xlu1 %v1753_v63  ;;  %v2207_v63 = vld [vmem:[%s6770_s10] sm:$0xff] }
 0xf87   :  { %1910 = vrot.lane.b32.xlu1 %v6173_v26, %s6790_s4  ;;  %s6809_s4 = smov 104  }
 0xfff   :  { %v1755_v0 = vpop.xlane.xlu1 %1754 }
0x1000   :  { %5836 = vrcp.f32 %v1755_v0 }
0x1003   :  { %v1911_v4 = vpop.permute.xlu1 %1910 }
0x100d   :  { %v5837_v1 = vpop.eup %5836 }
0x100e   :  { %v1757_v3 = vmul.f32 %v5837_v1, %v5835_v62  ;;  %v2208_v62 = vld [vmem:[%s6770_s10 + $0x8] sm:$0xff] }
0x1010   :  { %5535 = vmatmul.mubr.msk.f32.vlgmr.msra.gmra.mxu1 %vm218_vm3, %v1757_v3 }
0x1011   :  { %5543 = vmatpush3.xpose.msk.msra.mxu1 %vm218_vm3, %v1911_v4  ;;  %5544 = vmatprep.mubr.msk.f32.mxu1 %vm5927_vm2, %v5926_v34 }
0x1012   :  { %5552 = vmatprep.subr.mxu1 %v5926_v34 }
0x1014   :  { %5545 = vmatmul.mubr.msk.f32.vlgmr.msra.gmra.mxu1 %vm218_vm3, %v1909_v5 }
0x1015   :  { %5553 = vmatpush3.msra.mxu1 %v6230_v2  ;;  %5554 = vmatprep.mubr.msk.f32.mxu1 %vm5927_vm2, %v5926_v34 }
0x1016   :  { %5568 = vmatprep.subr.mxu1 %v2324_v9 }
0x10d0   :  { %v1830_v7 = vpop.f32.mrf.mxu1 }
0x10d1   :  { %5540 = vmatmul.mubr.msk.f32.vlgmr.msra.gmra.mxu0 %vm218_vm3, %v1830_v7 }
0x10d2   :  { %v5536_v8 = vpop.f32.mrf.mxu1  ;;  %5549 = vmatprep.mubr.msk.f32.mxu0 %vm5927_vm2, %v5926_v34 }
0x10d4   :  { %v1982_v11 = vpop.f32.mrf.mxu1 }
0x10d5   :  { %v1986_v13 = vmul.f32 0.35355338, %v1982_v11  ;;  %v2322_v11 = vld [vmem:[%s6772_s12 + $0x28] sm:$0xff] }
0x10d6   :  { %v5546_v15 = vpop.f32.mrf.mxu1 }
0x10d7   :  { %v1987_v2 = vadd.f32 %v6240_v6, %v1986_v13  ;;  %v2321_v13 = vld [vmem:[%s6772_s12 + $0x20] sm:$0xff]  ;;  %v2319_v15 = vld [vmem:[%s6772_s12 + $0x10] sm:$0xff] }
0x10d9   :  { %v1988_v16 = vsel %vm218_vm3, %v1987_v2, -inf }
0x10da   :  { %1989 = vmax.xlane.f32.xlu1 %v1988_v16  ;;  %v2317_v16 = vld [vmem:[%s6772_s12] sm:$0xff] }
0x10de   :  { %2166 = vadd.xlane.f32.xlu1 %v2165_v18 }
0x1163   :  { %v1990_v19 = vpop.xlane.xlu1 %1989 }
0x1164   :  { %v1991_v20 = vsub.f32 %v1987_v2, %v1990_v19  ;;  %v2318_v2 = vld [vmem:[%s6772_s12 + $0x8] sm:$0xff] }
0x1166   :  { %v1992_v21 = vmul.f32 1.442695, %v1991_v20 }
0x1168   :  { %5838 = vpow2.f32 %v1992_v21 }
0x1175   :  { %v5839_v22 = vpop.eup %5838 }
0x1176   :  { %v1994_v23 = vsel %vm218_vm3, %v5839_v22, 0.0 }
0x1177   :  { %1995 = vadd.xlane.f32.xlu0 %v1994_v23 }
0x118d   :  { %1999 = vrot.lane.b32.xlu0 %v6173_v26, %s6788_s3  ;;  %v2167_v26 = vpop.xlane.xlu1 %2166 }
0x118e   :  { %v2171_v39 = vmul.f32 0.03125, %v2167_v26 }
0x1190   :  { %v2173_v44 = vsub.f32 %v2161_v17, %v2171_v39  ;;  %v5178_v17 = vld [vmem:[%s6771_s11] ss:$0 sm:$0xff] }
0x1191   :  { %v1903_v24 = vpop.f32.mrf.mxu0 }
0x1192   :  { %v1907_v25 = vadd.f32 %v1903_v24, %v1664_v53  ;;  %v2175_v48 = vmul.f32 %v2173_v44, %v2173_v44 }
0x1193   :  { %v5541_v27 = vpop.f32.mrf.mxu0 }
0x1194   :  { %v2177_v49 = vsel %vm70_vm0, %v2175_v48, 0.0 }
0x1200   :  { %v1996_v28 = vpop.xlane.xlu0 %1995 }
0x1201   :  { %5840 = vrcp.f32 %v1996_v28 }
0x1204   :  { %v2000_v31 = vpop.permute.xlu0 %1999 }
0x1205   :  { %5548 = vmatpush3.msra.mxu0 %v2000_v31 }
0x1206   :  { %5557 = vmatprep.subr.mxu0 %v2210_v60 }
0x120e   :  { %v5841_v29 = vpop.eup %5840 }
0x120f   :  { %v1998_v30 = vmul.f32 %v5841_v29, %v5839_v22 }
0x1211   :  { %5550 = vmatmul.mubr.msk.f32.vlgmr.msra.gmra.mxu0 %vm218_vm3, %v1998_v30 }
0x1212   :  { %5558 = vmatpush3.msra.mxu0 %v2210_v60 }
0x1213   :  { %5559 = vmatprep.subr.mxu0 %v2209_v61 }
0x1214   :  { %5560 = vmatpush3.msra.mxu0 %v2209_v61  ;;  %v5188_v61 = vld [vmem:[%s6802_s26 + $0x30] sm:$0xff] }
0x1215   :  { %5561 = vmatprep.subr.mxu0 %v2208_v62 }
0x1216   :  { %5562 = vmatpush3.msra.mxu0 %v2208_v62  ;;  %v5187_v62 = vld [vmem:[%s6802_s26 + $0x28] sm:$0xff] }
0x1217   :  { %5563 = vmatprep.subr.mxu0 %v2207_v63 }
0x1218   :  { %5564 = vmatpush3.msra.mxu0 %v2207_v63  ;;  %v5186_v63 = vld [vmem:[%s6802_s26 + $0x20] sm:$0xff] }
0x12d1   :  { %v2071_v32 = vpop.f32.mrf.mxu0 }
0x12d2   :  { %5555 = vmatmul.mubr.msk.f32.vlgmr.msra.gmra.mxu1 %vm218_vm3, %v2071_v32 }
0x12d3   :  { %v5551_v35 = vpop.f32.mrf.mxu0  ;;  %5569 = vmatpush3.msra.mxu1 %v2324_v9  ;;  %v5184_v9 = vld [vmem:[%s6774_s14] ss:$0 sm:$0xff] }
0x1392   :  { %v2144_v36 = vpop.f32.mrf.mxu1 }
0x1393   :  { %v2148_v37 = vadd.f32 %v2144_v36, %v1907_v25 }
0x1394   :  { %v5556_v38 = vpop.f32.mrf.mxu1 }
0x1395   :  { %2149 = vst.msk [vmem:[#allocation3 + $0x8] sm:$0xff] %vm70_vm0, %v2148_v37 }
0x139c   :  { %v2151_v41 = vld [vmem:[#allocation3 + $0x8] sm:$0xff] }
0x139d   :  { %v2160_v45 = vadd.f32 %v5175_v10, %v2151_v41  ;;  %v2323_v10 = vld [vmem:[%s6772_s12 + $0x30] sm:$0xff] }
0x139e   :  { %5570 = vmatprep.subr.mxu1 %v2323_v10 }
0x139f   :  { %v2162_v46 = vadd.f32 %v2160_v45, %v6077_v33  ;;  %v5176_v33 = vld [vmem:[%s6768_s8] ss:$0 sm:$0xff]  ;;  %5571 = vmatpush3.msra.mxu1 %v2323_v10 }
0x13a0   :  { %5572 = vmatprep.subr.mxu1 %v2322_v11  ;;  %v5181_v45 = vld [vmem:[%s6773_s13] ss:$0 sm:$0xff] }
0x13a1   :  { %v2168_v47 = vsel %vm70_vm0, %v2162_v46, 0.0  ;;  %5573 = vmatpush3.msra.mxu1 %v2322_v11  ;;  %v5185_v11 = vld [vmem:[%s6775_s15] ss:$0 sm:$0xff] }
0x13a2   :  { %2169 = vadd.xlane.f32.xlu1 %v2168_v47  ;;  %5574 = vmatprep.subr.mxu1 %v2321_v13 }
0x13a3   :  { %5575 = vmatpush3.msra.mxu1 %v2321_v13 }
0x13a4   :  { %5576 = vmatprep.subr.mxu1 %v2320_v14 }
0x13a5   :  { %5577 = vmatpush3.msra.mxu1 %v2320_v14 }
0x13a6   :  { %2178 = vadd.xlane.f32.xlu1 %v2177_v49  ;;  %5578 = vmatprep.subr.mxu1 %v2319_v15 }
0x13a7   :  { %5579 = vmatpush3.msra.mxu1 %v2319_v15 }
0x13a8   :  { %5580 = vmatprep.subr.mxu1 %v2318_v2 }
0x13a9   :  { %5581 = vmatpush3.msra.mxu1 %v2318_v2 }
0x13aa   :  { %5582 = vmatprep.subr.mxu1 %v2317_v16 }
0x13ab   :  { %5583 = vmatpush3.msra.mxu1 %v2317_v16 }
0x13ac   :  { %5603 = vmatprep.subr.mxu1 %v5926_v34 }
0x142b   :  { %v2170_v12 = vpop.xlane.xlu1 %2169 }
0x142c   :  { %v2172_v50 = vmul.f32 0.03125, %v2170_v12 }
0x142e   :  { %v2174_v51 = vsub.f32 %v2162_v46, %v2172_v50 }
0x142f   :  { %v2179_v52 = vpop.xlane.xlu1 %2178 }
0x1430   :  { %v2183_v53 = vmul.f32 0.03125, %v2179_v52  ;;  %v2176_v54 = vmul.f32 %v2174_v51, %v2174_v51 }
0x1432   :  { %v2185_v55 = vadd.f32 1e-12, %v2183_v53  ;;  %v2180_v56 = vsel %vm70_vm0, %v2176_v54, 0.0 }
0x1433   :  { %2181 = vadd.xlane.f32.xlu1 %v2180_v56 }
0x1434   :  { %5842 = vrsqrt.f32 %v2185_v55 }
0x1441   :  { %v5843_v40 = vpop.eup %5842 }
0x1442   :  { %v2189_v57 = vmul.f32 %v5843_v40, %v2173_v44 }
0x1444   :  { %v2197_v42 = vmul.f32 %v5176_v33, %v2189_v57 }
0x1446   :  { %v6325_v59 = vadd.f32 %v5177_v58, %v2197_v42 }
0x1448   :  { %5565 = vmatprep.mubr.msk.f32.mxu0 %vm70_vm0, %v6325_v59 }
0x14bc   :  { %v2182_v0 = vpop.xlane.xlu1 %2181 }
0x14bd   :  { %v2184_v1 = vmul.f32 0.03125, %v2182_v0 }
0x14bf   :  { %v2186_v3 = vadd.f32 1e-12, %v2184_v1 }
0x14c1   :  { %5844 = vrsqrt.f32 %v2186_v3 }
0x14ce   :  { %v5845_v4 = vpop.eup %5844 }
0x14cf   :  { %v2190_v5 = vmul.f32 %v5845_v4, %v2174_v51 }
0x14d1   :  { %v2198_v7 = vmul.f32 %v5176_v33, %v2190_v5 }
0x14d3   :  { %v2206_v8 = vadd.f32 %v5177_v58, %v2198_v7 }
0x14d5   :  { %5566 = vmatmul.mubr.msk.f32.vlgmr.msra.gmra.mxu0 %vm70_vm0, %v2206_v8 }
0x1595   :  { %v5567_v18 = vpop.f32.mrf.mxu0 }
0x1596   :  { %v2296_v19 = vadd.f32 %v5567_v18, %v5178_v17  ;;  %v5191_v18 = vld [vmem:[%s6765_s5 + $0x1] ss:$0 sm:$0xff]  ;;  %s6810_s5 = smov 72  }
0x1597   :  { %v2290_v20 = vpop.f32.mrf.mxu0 }
0x1598   :  { %v2300_v21 = vmul.f32 %v2296_v19, %v2296_v19  ;;  %v2291_v22 = vadd.f32 %v5178_v17, %v2290_v20 }
0x159a   :  { %v2302_v23 = vmul.f32 %v2300_v21, %v2296_v19  ;;  %v2299_v24 = vmul.f32 %v2291_v22, %v2291_v22 }
0x159c   :  { %v2304_v25 = vmul.f32 0.044715, %v2302_v23  ;;  %v2301_v27 = vmul.f32 %v2299_v24, %v2291_v22 }
0x159e   :  { %v2306_v28 = vadd.f32 %v2304_v25, %v2296_v19  ;;  %v2303_v31 = vmul.f32 0.044715, %v2301_v27 }
0x15a0   :  { %v2308_v29 = vmul.f32 0.7978846, %v2306_v28  ;;  %v2305_v30 = vadd.f32 %v2303_v31, %v2291_v22 }
0x15a2   :  { %5846 = vtanh.f32 %v2308_v29  ;;  %v2307_v32 = vmul.f32 0.7978846, %v2305_v30 }
0x15a4   :  { %5848 = vtanh.f32 %v2307_v32 }
0x15af   :  { %v5847_v35 = vpop.eup %5846 }
0x15b0   :  { %v2312_v36 = vadd.f32 1.0, %v5847_v35 }
0x15b1   :  { %v5849_v37 = vpop.eup %5848 }
0x15b2   :  { %v2311_v38 = vadd.f32 1.0, %v5849_v37  ;;  %v2314_v26 = vmul.f32 0.5, %v2312_v36 }
0x15b4   :  { %v2313_v39 = vmul.f32 0.5, %v2311_v38  ;;  %v2316_v44 = vmul.f32 %v2314_v26, %v2296_v19  ;;  %v6440_v38 = vld [vmem:[%s6805_s30] ss:$0 sm:$0xff] }
0x15b6   :  { %v2315_v41 = vmul.f32 %v2313_v39, %v2291_v22 }
0x15b8   :  { %5584 = vmatprep.mubr.msk.f32.mxu1 %vm2332_vm4, %v2315_v41 }
0x15b9   :  { %5585 = vmatmul.mubr.msk.f32.vlgmr.msra.gmra.mxu1 %vm2332_vm4, %v2316_v44 }
0x15ba   :  { %5605 = vmatprep.mubr.msk.f32.mxu1 %vm5927_vm2, %v5926_v34 }
0x1679   :  { %v5586_v46 = vpop.f32.mrf.mxu1 }
0x167a   :  { %v2411_v47 = vadd.f32 %v5586_v46, %v5181_v45 }
0x167b   :  { %v2405_v48 = vpop.f32.mrf.mxu1 }
0x167c   :  { %v2406_v49 = vadd.f32 %v5181_v45, %v2405_v48  ;;  %v2415_v12 = vadd.f32 %v2411_v47, %v2206_v8 }
0x167e   :  { %v2421_v50 = vsel %vm70_vm0, %v2415_v12, 0.0  ;;  %v2414_v51 = vadd.f32 %v2406_v49, %v6325_v59  ;;  %v5189_v59 = vld [vmem:[%s6802_s26 + $0x38] sm:$0xff] }
0x167f   :  { %2422 = vadd.xlane.f32.xlu0 %v2421_v50  ;;  %5587 = vmatprep.subr.mxu0 %v5189_v59 }
0x1680   :  { %v2418_v52 = vsel %vm70_vm0, %v2414_v51, 0.0  ;;  %5588 = vmatpush3.msra.mxu0 %v5189_v59 }
0x1681   :  { %2419 = vadd.xlane.f32.xlu1 %v2418_v52  ;;  %5589 = vmatprep.subr.mxu0 %v5188_v61 }
0x1682   :  { %5590 = vmatpush3.msra.mxu0 %v5188_v61 }
0x1683   :  { %5591 = vmatprep.subr.mxu0 %v5187_v62 }
0x1684   :  { %5592 = vmatpush3.msra.mxu0 %v5187_v62 }
0x1685   :  { %5593 = vmatprep.subr.mxu0 %v5186_v63 }
0x1686   :  { %5594 = vmatpush3.msra.mxu0 %v5186_v63 }
0x1687   :  { %5598 = vmatprep.subr.mxu0 %v5926_v34 }
0x1708   :  { %v2423_v53 = vpop.xlane.xlu0 %2422 }
0x1709   :  { %v2425_v54 = vmul.f32 0.03125, %v2423_v53 }
0x170a   :  { %v2420_v55 = vpop.xlane.xlu1 %2419 }
0x170b   :  { %v2424_v56 = vmul.f32 0.03125, %v2420_v55  ;;  %v2427_v40 = vsub.f32 %v2415_v12, %v2425_v54 }
0x170d   :  { %v2426_v33 = vsub.f32 %v2414_v51, %v2424_v56  ;;  %v2429_v42 = vmul.f32 %v2427_v40, %v2427_v40 }
0x170f   :  { %v2428_v57 = vmul.f32 %v2426_v33, %v2426_v33  ;;  %v2433_v60 = vsel %vm70_vm0, %v2429_v42, 0.0 }
0x1711   :  { %v2430_v58 = vsel %vm70_vm0, %v2428_v57, 0.0  ;;  %v6465_v57 = vld [vmem:[%s6766_s6 + $0x20] sm:$0xff] }
0x1712   :  { %2431 = vadd.xlane.f32.xlu1 %v2430_v58  ;;  %v6471_v58 = vld [vmem:[%s6766_s6 + $0x28] sm:$0xff] }
0x1716   :  { %2434 = vadd.xlane.f32.xlu1 %v2433_v60 }
0x179b   :  { %v2432_v0 = vpop.xlane.xlu1 %2431 }
0x179c   :  { %v2436_v1 = vmul.f32 0.03125, %v2432_v0 }
0x179e   :  { %v2438_v3 = vadd.f32 1e-12, %v2436_v1 }
0x179f   :  { %v2435_v4 = vpop.xlane.xlu1 %2434 }
0x17a0   :  { %5850 = vrsqrt.f32 %v2438_v3  ;;  %v2437_v5 = vmul.f32 0.03125, %v2435_v4 }
0x17a2   :  { %v2439_v7 = vadd.f32 1e-12, %v2437_v5 }
0x17a4   :  { %5852 = vrsqrt.f32 %v2439_v7 }
0x17ad   :  { %v5851_v8 = vpop.eup %5850 }
0x17ae   :  { %v2442_v10 = vmul.f32 %v5851_v8, %v2426_v33 }
0x17b0   :  { %v2450_v13 = vmul.f32 %v5184_v9, %v2442_v10 }
0x17b1   :  { %v5853_v14 = vpop.eup %5852 }
0x17b2   :  { %v2443_v15 = vmul.f32 %v5853_v14, %v2427_v40  ;;  %v6401_v2 = vadd.f32 %v5185_v11, %v2450_v13 }
0x17b4   :  { %v2451_v16 = vmul.f32 %v5184_v9, %v2443_v15  ;;  %5595 = vmatprep.mubr.msk.f32.mxu0 %vm70_vm0, %v6401_v2 }
0x17b6   :  { %v6405_v17 = vadd.f32 %v5185_v11, %v2451_v16 }
0x17b8   :  { %5596 = vmatmul.mubr.msk.f32.vlgmr.msra.gmra.mxu0 %vm70_vm0, %v6405_v17 }
0x17b9   :  { %5600 = vmatprep.mubr.msk.f32.mxu0 %vm5927_vm2, %v5926_v34 }
0x1878   :  { %v5597_v19 = vpop.f32.mrf.mxu0 }
0x1879   :  { %v2551_v20 = vadd.f32 %v5597_v19, %v5191_v18 }
0x187a   :  { %v2545_v21 = vpop.f32.mrf.mxu0 }
0x187b   :  { %2555 = vst.msk [vmem:[#allocation2 + $0x8] sm:$0xff] %vm206_vm1, %v2551_v20  ;;  %v2546_v22 = vadd.f32 %v5191_v18, %v2545_v21 }
0x187d   :  { %2554 = vst.msk [vmem:[#allocation2] sm:$0xff] %vm206_vm1, %v2546_v22 }
0x1884   :  { %v6416_v23 = vld [vmem:[#allocation2] sm:$0xff] }
0x1885   :  { %2733 = vrot.lane.b32.xlu0 %v6416_v23, %s5931_s21  ;;  %2564 = vrot.lane.b32.xlu1 %v6416_v23, %s6806_s29 }
0x1889   :  { %2735 = vrot.lane.b32.xlu1 %v6416_v23, %s6807_s24 }
0x18f7   :  { %v2565_v24 = vpop.permute.xlu1 %2564  ;;  %v2734_v27 = vpop.permute.xlu0 %2733 }
0x18f8   :  { %5599 = vmatpush3.xpose.msk.msra.mxu0 %vm218_vm3, %v2565_v24 }
0x18f9   :  { %5608 = vmatprep.subr.mxu0 %v5926_v34 }
0x18fb   :  { %5601 = vmatmul.mubr.msk.f32.vlgmr.msra.gmra.mxu0 %vm218_vm3, %v6416_v23  ;;  %v2736_v25 = vpop.permute.xlu1 %2735 }
0x18fc   :  { %5609 = vmatpush3.xpose.msk.msra.mxu0 %vm218_vm3, %v2736_v25  ;;  %5610 = vmatprep.mubr.msk.f32.mxu0 %vm5927_vm2, %v5926_v34 }
0x18fd   :  { %5618 = vmatprep.subr.mxu0 %v5926_v34 }
0x18ff   :  { %5611 = vmatmul.mubr.msk.f32.vlgmr.msra.gmra.mxu0 %vm218_vm3, %v2734_v27  ;;  %v6508_v27 = vld [vmem:[%s6766_s6 + $0x30] sm:$0xff] }
0x1900   :  { %5620 = vmatprep.mubr.msk.f32.mxu0 %vm5927_vm2, %v5926_v34  ;;  %5619 = vmatpush3.msra.mxu0 %v6471_v58 }
0x1901   :  { %5628 = vmatprep.subr.mxu0 %v5926_v34 }
0x19bb   :  { %v2636_v28 = vpop.f32.mrf.mxu0 }
0x19bc   :  { %v2640_v31 = vmul.f32 0.35355338, %v2636_v28 }
0x19bd   :  { %v5602_v29 = vpop.f32.mrf.mxu0 }
0x19be   :  { %v2645_v30 = vadd.f32 %v6107_v43, %v2640_v31 }
0x19bf   :  { %v2807_v32 = vpop.f32.mrf.mxu0 }
0x19c0   :  { %v2811_v35 = vmul.f32 0.35355338, %v2807_v32  ;;  %v2646_v36 = vsel %vm218_vm3, %v2645_v30, -inf }
0x19c1   :  { %2647 = vmax.xlane.f32.xlu1 %v2646_v36  ;;  %v5612_v37 = vpop.f32.mrf.mxu0 }
0x19c2   :  { %v2812_v26 = vadd.f32 %v6440_v38, %v2811_v35  ;;  %v6517_v37 = vld [vmem:[#allocation2 + $0x8] sm:$0xff] }
0x19c4   :  { %v2813_v39 = vsel %vm218_vm3, %v2812_v26, -inf }
0x19c5   :  { %2814 = vmax.xlane.f32.xlu0 %v2813_v39 }
0x19db   :  { %2824 = vrot.lane.b32.xlu0 %v6416_v23, %s5932_s1 }
0x1a4a   :  { %v2648_v43 = vpop.xlane.xlu1 %2647 }
0x1a4b   :  { %v2649_v41 = vsub.f32 %v2645_v30, %v2648_v43 }
0x1a4d   :  { %v2650_v44 = vmul.f32 1.442695, %v2649_v41 }
0x1a4e   :  { %v2815_v45 = vpop.xlane.xlu0 %2814 }
0x1a4f   :  { %5854 = vpow2.f32 %v2650_v44  ;;  %v2816_v46 = vsub.f32 %v2812_v26, %v2815_v45 }
0x1a51   :  { %v2817_v47 = vmul.f32 1.442695, %v2816_v46 }
0x1a52   :  { %v2825_v56 = vpop.permute.xlu0 %2824 }
0x1a53   :  { %5856 = vpow2.f32 %v2817_v47 }
0x1a5c   :  { %v5855_v48 = vpop.eup %5854 }
0x1a5d   :  { %v2652_v49 = vsel %vm218_vm3, %v5855_v48, 0.0 }
0x1a5e   :  { %2653 = vadd.xlane.f32.xlu1 %v2652_v49 }
0x1a60   :  { %v5857_v12 = vpop.eup %5856 }
0x1a61   :  { %v2819_v50 = vsel %vm218_vm3, %v5857_v12, 0.0 }
0x1a62   :  { %2820 = vadd.xlane.f32.xlu1 %v2819_v50 }
0x1a73   :  { %2657 = vrot.lane.b32.xlu1 %v6416_v23, %s5930_s0 }
0x1a77   :  { %3048 = vrot.lane.b32.xlu1 %v6416_v23, %s5934_s23 }
0x1a7b   :  { %3046 = vrot.lane.b32.xlu1 %v6416_v23, %s5933_s22 }
0x1ae7   :  { %v2654_v51 = vpop.xlane.xlu1 %2653 }
0x1ae8   :  { %5858 = vrcp.f32 %v2654_v51 }
0x1aeb   :  { %v2821_v52 = vpop.xlane.xlu1 %2820 }
0x1aec   :  { %5860 = vrcp.f32 %v2821_v52  ;;  %v6548_v52 = vld [vmem:[%s6766_s6 + $0x38] sm:$0xff] }
0x1aef   :  { %v2658_v53 = vpop.permute.xlu1 %2657 }
0x1af0   :  { %5604 = vmatpush3.msra.mxu1 %v2658_v53 }
0x1af1   :  { %5613 = vmatprep.subr.mxu1 %v5926_v34 }
0x1af3   :  { %v3049_v60 = vpop.permute.xlu1 %3048 }
0x1af5   :  { %v5859_v54 = vpop.eup %5858 }
0x1af6   :  { %v2656_v55 = vmul.f32 %v5859_v54, %v5855_v48 }
0x1af7   :  { %v3047_v63 = vpop.permute.xlu1 %3046 }
0x1af8   :  { %5606 = vmatmul.mubr.msk.f32.vlgmr.msra.gmra.mxu1 %vm218_vm3, %v2656_v55 }
0x1af9   :  { %v5861_v40 = vpop.eup %5860  ;;  %5614 = vmatpush3.msra.mxu1 %v2825_v56  ;;  %5615 = vmatprep.mubr.msk.f32.mxu1 %vm5927_vm2, %v5926_v34 }
0x1afa   :  { %v2823_v33 = vmul.f32 %v5861_v40, %v5857_v12  ;;  %5623 = vmatprep.subr.mxu1 %v5926_v34 }
0x1afc   :  { %5616 = vmatmul.mubr.msk.f32.vlgmr.msra.gmra.mxu1 %vm218_vm3, %v2823_v33 }
0x1afd   :  { %5625 = vmatprep.mubr.msk.f32.mxu1 %vm5927_vm2, %v5926_v34  ;;  %5624 = vmatpush3.msra.mxu1 %v6465_v57 }
0x1afe   :  { %5633 = vmatprep.subr.mxu1 %v5926_v34 }
0x1bb8   :  { %v2729_v42 = vpop.f32.mrf.mxu1 }
0x1bb9   :  { %5626 = vmatmul.mubr.msk.f32.vlgmr.msra.gmra.mxu1 %vm218_vm3, %v2729_v42 }
0x1bba   :  { %v5607_v59 = vpop.f32.mrf.mxu1  ;;  %5635 = vmatprep.mubr.msk.f32.mxu1 %vm5927_vm2, %v5926_v34 }
0x1bbc   :  { %v2896_v61 = vpop.f32.mrf.mxu1 }
0x1bbd   :  { %5621 = vmatmul.mubr.msk.f32.vlgmr.msra.gmra.mxu0 %vm218_vm3, %v2896_v61 }
0x1bbe   :  { %5629 = vmatpush3.xpose.msk.msra.mxu0 %vm218_vm3, %v3049_v60  ;;  %v5617_v62 = vpop.f32.mrf.mxu1  ;;  %5630 = vmatprep.mubr.msk.f32.mxu0 %vm5927_vm2, %v5926_v34 }
0x1bbf   :  { %5638 = vmatprep.subr.mxu0 %v5926_v34 }
0x1bc1   :  { %5631 = vmatmul.mubr.msk.f32.vlgmr.msra.gmra.mxu0 %vm218_vm3, %v3047_v63 }
0x1bc2   :  { %5640 = vmatprep.mubr.msk.f32.mxu0 %vm5927_vm2, %v5926_v34  ;;  %5639 = vmatpush3.msra.mxu0 %v6508_v27 }
0x1bc3   :  { %5648 = vmatprep.subr.mxu0 %v5926_v34 }
0x1c79   :  { %v3042_v0 = vpop.f32.mrf.mxu1 }
0x1c7b   :  { %v5627_v1 = vpop.f32.mrf.mxu1 }
0x1c7d   :  { %v2969_v3 = vpop.f32.mrf.mxu0 }
0x1c7e   :  { %v3043_v4 = vadd.f32 %v3042_v0, %v2969_v3 }
0x1c7f   :  { %v5622_v5 = vpop.f32.mrf.mxu0 }
0x1c81   :  { %v3120_v7 = vpop.f32.mrf.mxu0 }
0x1c82   :  { %v3124_v8 = vmul.f32 0.35355338, %v3120_v7 }
0x1c83   :  { %v5632_v9 = vpop.f32.mrf.mxu0 }
0x1c84   :  { %v3125_v10 = vadd.f32 %v6440_v38, %v3124_v8 }
0x1c86   :  { %v3126_v11 = vsel %vm218_vm3, %v3125_v10, -inf }
0x1c87   :  { %3127 = vmax.xlane.f32.xlu1 %v3126_v11 }
0x1c98   :  { %3137 = vrot.lane.b32.xlu1 %v6416_v23, %s6808_s28 }
0x1c9c   :  { %3287 = vrot.lane.b32.xlu1 %v6416_v23, %s6809_s4 }
0x1d10   :  { %v3128_v13 = vpop.xlane.xlu1 %3127 }
0x1d11   :  { %v3129_v14 = vsub.f32 %v3125_v10, %v3128_v13 }
0x1d13   :  { %v3130_v15 = vmul.f32 1.442695, %v3129_v14 }
0x1d14   :  { %v3138_v16 = vpop.permute.xlu1 %3137 }
0x1d15   :  { %5862 = vpow2.f32 %v3130_v15  ;;  %5634 = vmatpush3.msra.mxu1 %v3138_v16 }
0x1d16   :  { %5643 = vmatprep.subr.mxu1 %v5926_v34 }
0x1d18   :  { %v3288_v25 = vpop.permute.xlu1 %3287 }
0x1d22   :  { %v5863_v18 = vpop.eup %5862 }
0x1d23   :  { %v3132_v19 = vsel %vm218_vm3, %v5863_v18, 0.0 }
0x1d24   :  { %3133 = vadd.xlane.f32.xlu0 %v3132_v19 }
0x1d3a   :  { %3289 = vrot.lane.b32.xlu0 %v6416_v23, %s6810_s5 }
0x1dad   :  { %v3134_v20 = vpop.xlane.xlu0 %3133 }
0x1dae   :  { %5864 = vrcp.f32 %v3134_v20 }
0x1db1   :  { %v3290_v24 = vpop.permute.xlu0 %3289 }
0x1dbb   :  { %v5865_v21 = vpop.eup %5864 }
0x1dbc   :  { %v3136_v22 = vmul.f32 %v5865_v21, %v5863_v18 }
0x1dbe   :  { %5636 = vmatmul.mubr.msk.f32.vlgmr.msra.gmra.mxu1 %vm218_vm3, %v3136_v22 }
0x1dbf   :  { %5644 = vmatpush3.xpose.msk.msra.mxu1 %vm218_vm3, %v3290_v24  ;;  %5645 = vmatprep.mubr.msk.f32.mxu1 %vm5927_vm2, %v5926_v34 }
0x1dc0   :  { %5653 = vmatprep.subr.mxu1 %v5926_v34 }
0x1dc2   :  { %5646 = vmatmul.mubr.msk.f32.vlgmr.msra.gmra.mxu1 %vm218_vm3, %v3288_v25 }
0x1dc3   :  { %5655 = vmatprep.mubr.msk.f32.mxu1 %vm5927_vm2, %v5926_v34  ;;  %5654 = vmatpush3.msra.mxu1 %v6548_v52 }
0x1dc4   :  { %5663 = vmatprep.subr.mxu1 %v5926_v34 }
0x1e7e   :  { %v3209_v28 = vpop.f32.mrf.mxu1 }
0x1e7f   :  { %5641 = vmatmul.mubr.msk.f32.vlgmr.msra.gmra.mxu0 %vm218_vm3, %v3209_v28 }
0x1e80   :  { %v5637_v31 = vpop.f32.mrf.mxu1  ;;  %5650 = vmatprep.mubr.msk.f32.mxu0 %vm5927_vm2, %v5926_v34 }
0x1e82   :  { %v3361_v29 = vpop.f32.mrf.mxu1 }
0x1e83   :  { %v3365_v30 = vmul.f32 0.35355338, %v3361_v29 }
0x1e84   :  { %v5647_v32 = vpop.f32.mrf.mxu1 }
0x1e85   :  { %v3366_v35 = vadd.f32 %v6440_v38, %v3365_v30 }
0x1e87   :  { %v3367_v36 = vsel %vm218_vm3, %v3366_v35, -inf }
0x1e88   :  { %3368 = vmax.xlane.f32.xlu1 %v3367_v36 }
0x1e99   :  { %3532 = vrot.lane.b32.xlu1 %v6517_v37, %s6806_s29 }
0x1e9d   :  { %3703 = vrot.lane.b32.xlu1 %v6517_v37, %s6807_s24 }
0x1f11   :  { %v3369_v26 = vpop.xlane.xlu1 %3368 }
0x1f12   :  { %v3370_v39 = vsub.f32 %v3366_v35, %v3369_v26 }
0x1f14   :  { %v3371_v43 = vmul.f32 1.442695, %v3370_v39 }
0x1f15   :  { %v3533_v12 = vpop.permute.xlu1 %3532 }
0x1f16   :  { %5866 = vpow2.f32 %v3371_v43 }
0x1f23   :  { %v5867_v41 = vpop.eup %5866 }
0x1f24   :  { %v3373_v44 = vsel %vm218_vm3, %v5867_v41, 0.0 }
0x1f25   :  { %3374 = vadd.xlane.f32.xlu0 %v3373_v44  ;;  %v5903_v44 = vld [vmem:[%s6805_s30 + $0x1] ss:$0 sm:$0xff] }
0x1f3b   :  { %3378 = vrot.lane.b32.xlu0 %v6416_v23, %s6811_s25  ;;  %v3704_v23 = vpop.permute.xlu1 %3703 }
0x1f3f   :  { %3701 = vrot.lane.b32.xlu0 %v6517_v37, %s5931_s21  ;;  %v3282_v38 = vpop.f32.mrf.mxu0 }
0x1f40   :  { %v3286_v45 = vadd.f32 %v3282_v38, %v3043_v4 }
0x1f41   :  { %v5642_v46 = vpop.f32.mrf.mxu0 }
0x1fae   :  { %v3375_v47 = vpop.xlane.xlu0 %3374 }
0x1faf   :  { %5868 = vrcp.f32 %v3375_v47 }
0x1fb2   :  { %v3379_v48 = vpop.permute.xlu0 %3378 }
0x1fb3   :  { %5649 = vmatpush3.msra.mxu0 %v3379_v48 }
0x1fb4   :  { %5658 = vmatprep.subr.mxu0 %v5926_v34 }
0x1fb6   :  { %v3702_v51 = vpop.permute.xlu0 %3701 }
0x1fbc   :  { %v5869_v49 = vpop.eup %5868 }
0x1fbd   :  { %v3377_v50 = vmul.f32 %v5869_v49, %v5867_v41 }
0x1fbf   :  { %5651 = vmatmul.mubr.msk.f32.vlgmr.msra.gmra.mxu0 %vm218_vm3, %v3377_v50 }
0x1fc0   :  { %5659 = vmatpush3.xpose.msk.msra.mxu0 %vm218_vm3, %v3533_v12  ;;  %5660 = vmatprep.mubr.msk.f32.mxu0 %vm5927_vm2, %v5926_v34 }
0x1fc1   :  { %5668 = vmatprep.subr.mxu0 %v5926_v34 }
0x1fc3   :  { %5661 = vmatmul.mubr.msk.f32.vlgmr.msra.gmra.mxu0 %vm218_vm3, %v6517_v37 }
0x1fc4   :  { %5669 = vmatpush3.xpose.msk.msra.mxu0 %vm218_vm3, %v3704_v23  ;;  %5670 = vmatprep.mubr.msk.f32.mxu0 %vm5927_vm2, %v5926_v34 }
0x1fc5   :  { %5678 = vmatprep.subr.mxu0 %v5926_v34 }
0x1fc7   :  { %5671 = vmatmul.mubr.msk.f32.vlgmr.msra.gmra.mxu0 %vm218_vm3, %v3702_v51 }
0x1fc8   :  { %5679 = vmatpush3.msra.mxu0 %v6471_v58  ;;  %5680 = vmatprep.mubr.msk.f32.mxu0 %vm5927_vm2, %v5926_v34 }
0x1fc9   :  { %5688 = vmatprep.subr.mxu0 %v5926_v34 }
0x207f   :  { %v3450_v53 = vpop.f32.mrf.mxu0 }
0x2080   :  { %5656 = vmatmul.mubr.msk.f32.vlgmr.msra.gmra.mxu1 %vm218_vm3, %v3450_v53 }
0x2081   :  { %v5652_v54 = vpop.f32.mrf.mxu0  ;;  %5665 = vmatprep.mubr.msk.f32.mxu1 %vm5927_vm2, %v5926_v34 }
0x2083   :  { %v3604_v55 = vpop.f32.mrf.mxu0 }
0x2084   :  { %v3608_v56 = vmul.f32 0.35355338, %v3604_v55 }
0x2085   :  { %v5662_v40 = vpop.f32.mrf.mxu0 }
0x2086   :  { %v3613_v33 = vadd.f32 %v6240_v6, %v3608_v56 }
0x2087   :  { %v3775_v58 = vpop.f32.mrf.mxu0 }
0x2088   :  { %v3779_v42 = vmul.f32 0.35355338, %v3775_v58  ;;  %v3614_v60 = vsel %vm218_vm3, %v3613_v33, -inf }
0x2089   :  { %3615 = vmax.xlane.f32.xlu1 %v3614_v60  ;;  %v5672_v59 = vpop.f32.mrf.mxu0 }
0x208a   :  { %v3780_v61 = vadd.f32 %v6240_v6, %v3779_v42 }
0x208c   :  { %v3781_v62 = vsel %vm218_vm3, %v3780_v61, -inf }
0x208d   :  { %3782 = vmax.xlane.f32.xlu0 %v3781_v62 }
0x2112   :  { %v3616_v63 = vpop.xlane.xlu1 %3615 }
0x2113   :  { %v3617_v0 = vsub.f32 %v3613_v33, %v3616_v63 }
0x2115   :  { %v3618_v1 = vmul.f32 1.442695, %v3617_v0  ;;  %v5233_v0 = vld [vmem:[%s6767_s7 + $0x1] ss:$0 sm:$0xff] }
0x2116   :  { %v3783_v3 = vpop.xlane.xlu0 %3782 }
0x2117   :  { %5870 = vpow2.f32 %v3618_v1  ;;  %v3784_v4 = vsub.f32 %v3780_v61, %v3783_v3 }
0x2119   :  { %v3785_v5 = vmul.f32 1.442695, %v3784_v4 }
0x211b   :  { %5872 = vpow2.f32 %v3785_v5 }
0x2124   :  { %v5871_v7 = vpop.eup %5870 }
0x2125   :  { %v3620_v8 = vsel %vm218_vm3, %v5871_v7, 0.0 }
0x2126   :  { %3621 = vadd.xlane.f32.xlu0 %v3620_v8 }
0x2128   :  { %v5873_v9 = vpop.eup %5872 }
0x2129   :  { %v3787_v10 = vsel %vm218_vm3, %v5873_v9, 0.0 }
0x212a   :  { %3788 = vadd.xlane.f32.xlu1 %v3787_v10 }
0x213b   :  { %3792 = vrot.lane.b32.xlu1 %v6517_v37, %s5932_s1 }
0x213c   :  { %3625 = vrot.lane.b32.xlu0 %v6517_v37, %s5930_s0 }
0x213f   :  { %4016 = vrot.lane.b32.xlu1 %v6517_v37, %s5934_s23 }
0x2140   :  { %v3523_v6 = vpop.f32.mrf.mxu1  ;;  %4014 = vrot.lane.b32.xlu0 %v6517_v37, %s5933_s22 }
0x2141   :  { %v3527_v11 = vadd.f32 %v3523_v6, %v3286_v45 }
0x2142   :  { %v5657_v13 = vpop.f32.mrf.mxu1 }
0x2143   :  { %3528 = vst.msk [vmem:[#allocation3] sm:$0xff] %vm70_vm0, %v3527_v11 }
0x214a   :  { %v4497_v63 = vld [vmem:[#allocation3] sm:$0xff] }
0x214b   :  { %v4507_v1 = vadd.f32 %v5233_v0, %v4497_v63 }
0x214d   :  { %v4509_v5 = vadd.f32 %v4507_v1, %v6401_v2 }
0x21af   :  { %v3622_v14 = vpop.xlane.xlu0 %3621 }
0x21b0   :  { %5874 = vrcp.f32 %v3622_v14 }
0x21b3   :  { %v3789_v15 = vpop.xlane.xlu1 %3788  ;;  %v3626_v16 = vpop.permute.xlu0 %3625 }
0x21b4   :  { %5876 = vrcp.f32 %v3789_v15  ;;  %5664 = vmatpush3.msra.mxu1 %v3626_v16 }
0x21b5   :  { %5673 = vmatprep.subr.mxu1 %v5926_v34 }
0x21b7   :  { %v3793_v20 = vpop.permute.xlu1 %3792 }
0x21bb   :  { %v4017_v31 = vpop.permute.xlu1 %4016 }
0x21bd   :  { %v5875_v18 = vpop.eup %5874 }
0x21be   :  { %v3624_v19 = vmul.f32 %v5875_v18, %v5871_v7 }
0x21c0   :  { %5666 = vmatmul.mubr.msk.f32.vlgmr.msra.gmra.mxu1 %vm218_vm3, %v3624_v19 }
0x21c1   :  { %v5877_v21 = vpop.eup %5876  ;;  %5674 = vmatpush3.msra.mxu1 %v3793_v20  ;;  %5675 = vmatprep.mubr.msk.f32.mxu1 %vm5927_vm2, %v5926_v34 }
0x21c2   :  { %v3791_v22 = vmul.f32 %v5877_v21, %v5873_v9  ;;  %5683 = vmatprep.subr.mxu1 %v5926_v34 }
0x21c4   :  { %5676 = vmatmul.mubr.msk.f32.vlgmr.msra.gmra.mxu1 %vm218_vm3, %v3791_v22 }
0x21c5   :  { %5684 = vmatpush3.msra.mxu1 %v6465_v57  ;;  %5685 = vmatprep.mubr.msk.f32.mxu1 %vm5927_vm2, %v5926_v34  ;;  %v4015_v57 = vpop.permute.xlu0 %4014 }
0x21c6   :  { %5693 = vmatprep.subr.mxu1 %v5926_v34 }
0x2280   :  { %v3697_v24 = vpop.f32.mrf.mxu1 }
0x2281   :  { %5686 = vmatmul.mubr.msk.f32.vlgmr.msra.gmra.mxu1 %vm218_vm3, %v3697_v24 }
0x2282   :  { %v5667_v25 = vpop.f32.mrf.mxu1  ;;  %5695 = vmatprep.mubr.msk.f32.mxu1 %vm5927_vm2, %v5926_v34 }
0x2284   :  { %v3864_v28 = vpop.f32.mrf.mxu1 }
0x2285   :  { %5681 = vmatmul.mubr.msk.f32.vlgmr.msra.gmra.mxu0 %vm218_vm3, %v3864_v28 }
0x2286   :  { %5689 = vmatpush3.xpose.msk.msra.mxu0 %vm218_vm3, %v4017_v31  ;;  %v5677_v29 = vpop.f32.mrf.mxu1  ;;  %5690 = vmatprep.mubr.msk.f32.mxu0 %vm5927_vm2, %v5926_v34 }
0x2287   :  { %5698 = vmatprep.subr.mxu0 %v5926_v34 }
0x2289   :  { %5691 = vmatmul.mubr.msk.f32.vlgmr.msra.gmra.mxu0 %vm218_vm3, %v4015_v57 }
0x228a   :  { %5699 = vmatpush3.msra.mxu0 %v6508_v27  ;;  %5700 = vmatprep.mubr.msk.f32.mxu0 %vm5927_vm2, %v5926_v34 }
0x228b   :  { %5708 = vmatprep.subr.mxu0 %v5926_v34 }
0x2341   :  { %v4010_v30 = vpop.f32.mrf.mxu1 }
0x2343   :  { %v5687_v32 = vpop.f32.mrf.mxu1 }
0x2345   :  { %v3937_v35 = vpop.f32.mrf.mxu0 }
0x2346   :  { %v4011_v36 = vadd.f32 %v4010_v30, %v3937_v35 }
0x2347   :  { %v5682_v26 = vpop.f32.mrf.mxu0 }
0x2349   :  { %v4088_v39 = vpop.f32.mrf.mxu0 }
0x234a   :  { %v4092_v43 = vmul.f32 0.35355338, %v4088_v39 }
0x234b   :  { %v5692_v41 = vpop.f32.mrf.mxu0 }
0x234c   :  { %v4093_v38 = vadd.f32 %v5903_v44, %v4092_v43 }
0x234e   :  { %v4094_v27 = vsel %vm218_vm3, %v4093_v38, -inf }
0x234f   :  { %4095 = vmax.xlane.f32.xlu1 %v4094_v27 }
0x2360   :  { %4257 = vrot.lane.b32.xlu1 %v6517_v37, %s6810_s5 }
0x2364   :  { %4255 = vrot.lane.b32.xlu1 %v6517_v37, %s6809_s4 }
0x23d8   :  { %v4096_v45 = vpop.xlane.xlu1 %4095 }
0x23d9   :  { %v4097_v46 = vsub.f32 %v4093_v38, %v4096_v45  ;;  %v5241_v45 = vld [vmem:[%s6770_s10 + $0x38] sm:$0xff] }
0x23db   :  { %v4098_v47 = vmul.f32 1.442695, %v4097_v46  ;;  %v5240_v46 = vld [vmem:[%s6770_s10 + $0x30] sm:$0xff] }
0x23dc   :  { %v4258_v51 = vpop.permute.xlu1 %4257 }
0x23dd   :  { %5878 = vpow2.f32 %v4098_v47  ;;  %v5239_v47 = vld [vmem:[%s6770_s10 + $0x28] sm:$0xff] }
0x23e0   :  { %v4256_v54 = vpop.permute.xlu1 %4255 }
0x23ea   :  { %v5879_v48 = vpop.eup %5878 }
0x23eb   :  { %v4100_v49 = vsel %vm218_vm3, %v5879_v48, 0.0 }
0x23ec   :  { %4101 = vadd.xlane.f32.xlu0 %v4100_v49 }
0x2402   :  { %4105 = vrot.lane.b32.xlu0 %v6517_v37, %s6808_s28  ;;  %s5939_s28 = smov [#allocation4]  }
0x2403   :  { %s5128_s4 = sshll.u32 %s5939_s28, 4  ;;  %s5129_s4 = int_to_ptr.vmem [resolvable:$true] %s5128_s4 }
0x2404   :  { %p5909_p1 = scmp.lt.s32.totalorder %s5129_s4, %s5129_s4 }
0x2475   :  { %v4102_v12 = vpop.xlane.xlu0 %4101 }
0x2476   :  { %5880 = vrcp.f32 %v4102_v12 }
0x2479   :  { %v4106_v50 = vpop.permute.xlu0 %4105 }
0x247a   :  { %5694 = vmatpush3.msra.mxu1 %v4106_v50 }
0x247b   :  { %5703 = vmatprep.subr.mxu1 %v5926_v34 }
0x2483   :  { %v5881_v23 = vpop.eup %5880 }
0x2484   :  { %v4104_v53 = vmul.f32 %v5881_v23, %v5879_v48  ;;  %v5238_v48 = vld [vmem:[%s6770_s10 + $0x20] sm:$0xff] }
0x2486   :  { %5696 = vmatmul.mubr.msk.f32.vlgmr.msra.gmra.mxu1 %vm218_vm3, %v4104_v53 }
0x2487   :  { %5704 = vmatpush3.xpose.msk.msra.mxu1 %vm218_vm3, %v4258_v51  ;;  %5705 = vmatprep.mubr.msk.f32.mxu1 %vm5927_vm2, %v5926_v34 }
0x2488   :  { %5713 = vmatprep.subr.mxu1 %v5926_v34 }
0x248a   :  { %5706 = vmatmul.mubr.msk.f32.vlgmr.msra.gmra.mxu1 %vm218_vm3, %v4256_v54 }
0x248b   :  { %5714 = vmatpush3.msra.mxu1 %v6548_v52  ;;  %5715 = vmatprep.mubr.msk.f32.mxu1 %vm5927_vm2, %v5926_v34 }
0x2546   :  { %v4177_v55 = vpop.f32.mrf.mxu1 }
0x2547   :  { %5701 = vmatmul.mubr.msk.f32.vlgmr.msra.gmra.mxu0 %vm218_vm3, %v4177_v55  ;;  %v5253_v55 = vld [vmem:[%s6772_s12 + $0x78] sm:$0xff] }
0x2548   :  { %v5697_v56 = vpop.f32.mrf.mxu1  ;;  %5710 = vmatprep.mubr.msk.f32.mxu0 %vm5927_vm2, %v5926_v34  ;;  %5729 = vmatprep.subr.mxu1 %v5253_v55 }
0x2549   :  { %v5252_v56 = vld [vmem:[%s6772_s12 + $0x70] sm:$0xff] }
0x254a   :  { %v4329_v40 = vpop.f32.mrf.mxu1 }
0x254b   :  { %v4333_v33 = vmul.f32 0.35355338, %v4329_v40  ;;  %v5251_v40 = vld [vmem:[%s6772_s12 + $0x68] sm:$0xff] }
0x254c   :  { %v5707_v58 = vpop.f32.mrf.mxu1 }
0x254d   :  { %v4334_v42 = vadd.f32 %v5903_v44, %v4333_v33  ;;  %v5237_v44 = vld [vmem:[%s6769_s9 + $0x1] ss:$0 sm:$0xff]  ;;  %v5249_v58 = vld [vmem:[%s6772_s12 + $0x58] sm:$0xff] }
0x254e   :  { %v5250_v33 = vld [vmem:[%s6772_s12 + $0x60] sm:$0xff] }
0x254f   :  { %v4335_v60 = vsel %vm218_vm3, %v4334_v42, -inf }
0x2550   :  { %4336 = vmax.xlane.f32.xlu0 %v4335_v60  ;;  %v5247_v60 = vld [vmem:[%s6772_s12 + $0x48] sm:$0xff] }
0x2566   :  { %4346 = vrot.lane.b32.xlu0 %v6517_v37, %s6811_s25  ;;  %v4515_v37 = vsel %vm70_vm0, %v4509_v5, 0.0 }
0x25d9   :  { %v4337_v52 = vpop.xlane.xlu0 %4336 }
0x25da   :  { %v4338_v59 = vsub.f32 %v4334_v42, %v4337_v52  ;;  %v5248_v42 = vld [vmem:[%s6772_s12 + $0x50] sm:$0xff]  ;;  %v5246_v52 = vld [vmem:[%s6772_s12 + $0x40] sm:$0xff] }
0x25dc   :  { %v4339_v61 = vmul.f32 1.442695, %v4338_v59  ;;  %v5243_v59 = vld [vmem:[%s6771_s11 + $0x1] ss:$0 sm:$0xff] }
0x25dd   :  { %v4347_v62 = vpop.permute.xlu0 %4346 }
0x25de   :  { %5882 = vpow2.f32 %v4339_v61  ;;  %5709 = vmatpush3.msra.mxu0 %v4347_v62 }
0x25df   :  { %5718 = vmatprep.subr.mxu0 %v5241_v45 }
0x25eb   :  { %v5883_v3 = vpop.eup %5882 }
0x25ec   :  { %v4341_v4 = vsel %vm218_vm3, %v5883_v3, 0.0 }
0x25ed   :  { %4342 = vadd.xlane.f32.xlu1 %v4341_v4 }
0x25f1   :  { %4516 = vadd.xlane.f32.xlu1 %v4515_v37 }
0x2607   :  { %v4250_v7 = vpop.f32.mrf.mxu0 }
0x2608   :  { %v4254_v8 = vadd.f32 %v4250_v7, %v4011_v36 }
0x2609   :  { %v5702_v9 = vpop.f32.mrf.mxu0 }
0x2676   :  { %v4343_v10 = vpop.xlane.xlu1 %4342 }
0x2677   :  { %5884 = vrcp.f32 %v4343_v10 }
0x267a   :  { %v4517_v18 = vpop.xlane.xlu1 %4516 }
0x267b   :  { %v4521_v19 = vmul.f32 0.03125, %v4517_v18 }
0x267d   :  { %v4523_v21 = vsub.f32 %v4509_v5, %v4521_v19 }
0x267f   :  { %v4525_v28 = vmul.f32 %v4523_v21, %v4523_v21 }
0x2681   :  { %v4527_v31 = vsel %vm70_vm0, %v4525_v28, 0.0 }
0x2684   :  { %v5885_v6 = vpop.eup %5884 }
0x2685   :  { %v4345_v11 = vmul.f32 %v5885_v6, %v5883_v3 }
0x2687   :  { %5711 = vmatmul.mubr.msk.f32.vlgmr.msra.gmra.mxu0 %vm218_vm3, %v4345_v11 }
0x2688   :  { %5719 = vmatpush3.msra.mxu0 %v5241_v45  ;;  %v4816_v45 = vld [vmem:[%s6776_s16 + $0x8] sm:$0xff] }
0x2689   :  { %5720 = vmatprep.subr.mxu0 %v5240_v46 }
0x268a   :  { %5721 = vmatpush3.msra.mxu0 %v5240_v46  ;;  %v4815_v46 = vld [vmem:[%s6776_s16] sm:$0xff] }
0x268b   :  { %5722 = vmatprep.subr.mxu0 %v5239_v47 }
0x268c   :  { %5723 = vmatpush3.msra.mxu0 %v5239_v47 }
0x268d   :  { %5724 = vmatprep.subr.mxu0 %v5238_v48 }
0x268e   :  { %5725 = vmatpush3.msra.mxu0 %v5238_v48 }
0x268f   :  { %5748 = vmatprep.subr.mxu0 %v5926_v34 }
0x2747   :  { %v4418_v13 = vpop.f32.mrf.mxu0 }
0x2748   :  { %5716 = vmatmul.mubr.msk.f32.vlgmr.msra.gmra.mxu1 %vm218_vm3, %v4418_v13 }
0x2749   :  { %v5712_v14 = vpop.f32.mrf.mxu0  ;;  %5730 = vmatpush3.msra.mxu1 %v5253_v55  ;;  %v5261_v55 = vld [vmem:[%s6775_s15 + $0x1] ss:$0 sm:$0xff] }
0x274a   :  { %5731 = vmatprep.subr.mxu1 %v5252_v56 }
0x274b   :  { %5732 = vmatpush3.msra.mxu1 %v5252_v56 }
0x274c   :  { %5733 = vmatprep.subr.mxu1 %v5251_v40 }
0x274d   :  { %5734 = vmatpush3.msra.mxu1 %v5251_v40 }
0x274e   :  { %5735 = vmatprep.subr.mxu1 %v5250_v33 }
0x274f   :  { %5736 = vmatpush3.msra.mxu1 %v5250_v33 }
0x2750   :  { %5737 = vmatprep.subr.mxu1 %v5249_v58 }
0x2751   :  { %5738 = vmatpush3.msra.mxu1 %v5249_v58 }
0x2752   :  { %5739 = vmatprep.subr.mxu1 %v5248_v42 }
0x2753   :  { %5740 = vmatpush3.msra.mxu1 %v5248_v42 }
0x2754   :  { %5741 = vmatprep.subr.mxu1 %v5247_v60 }
0x2755   :  { %5742 = vmatpush3.msra.mxu1 %v5247_v60 }
0x2756   :  { %5743 = vmatprep.subr.mxu1 %v5246_v52 }
0x2757   :  { %5744 = vmatpush3.msra.mxu1 %v5246_v52  ;;  %v4823_v52 = vld [vmem:[%s6778_s18 + $0x18] sm:$0xff] }
0x2758   :  { %5770 = vmatprep.subr.mxu1 %v5926_v34 }
0x2808   :  { %v4491_v15 = vpop.f32.mrf.mxu1 }
0x2809   :  { %v4495_v16 = vadd.f32 %v4491_v15, %v4254_v8 }
0x280a   :  { %v5717_v2 = vpop.f32.mrf.mxu1 }
0x280b   :  { %4496 = vst.msk [vmem:[#allocation3 + $0x8] sm:$0xff] %vm70_vm0, %v4495_v16 }
0x2812   :  { %v4498_v20 = vld [vmem:[#allocation3 + $0x8] sm:$0xff] }
0x2813   :  { %v4508_v22 = vadd.f32 %v5233_v0, %v4498_v20  ;;  %v5255_v20 = vld [vmem:[%s6773_s13 + $0x1] ss:$0 sm:$0xff] }
0x2815   :  { %v4510_v24 = vadd.f32 %v4508_v22, %v6405_v17  ;;  %v5236_v17 = vld [vmem:[%s6768_s8 + $0x1] ss:$0 sm:$0xff]  ;;  %s5904_s8 = scalar_lea.vmem %s5129_s4, 32 }
0x2816   :  { %p5905_p0 = scmp.ne.s32.totalorder %s5129_s4, %s5904_s8  ;;  %p5910_p2 = scmp.lt.s32.totalorder %s5904_s8, %s5904_s8 }
0x2817   :  { %v4518_v25 = vsel %vm70_vm0, %v4510_v24, 0.0 }
0x2818   :  { %4519 = vadd.xlane.f32.xlu1 %v4518_v25  ;;  %p5911_p3 = por %p5910_p2, %p5909_p1 }
0x281a   :  { %p5912_p4 = pnand %p5911_p3, %p5905_p0 }
0x281c   :  { %4528 = vadd.xlane.f32.xlu1 %v4527_v31 }
0x28a1   :  { %v4520_v29 = vpop.xlane.xlu1 %4519 }
0x28a2   :  { %v4522_v57 = vmul.f32 0.03125, %v4520_v29 }
0x28a4   :  { %v4524_v30 = vsub.f32 %v4510_v24, %v4522_v57 }
0x28a5   :  { %v4529_v32 = vpop.xlane.xlu1 %4528 }
0x28a6   :  { %v4533_v35 = vmul.f32 0.03125, %v4529_v32  ;;  %v4526_v36 = vmul.f32 %v4524_v30, %v4524_v30 }
0x28a8   :  { %v4535_v26 = vadd.f32 1e-12, %v4533_v35  ;;  %v4530_v39 = vsel %vm70_vm0, %v4526_v36, 0.0 }
0x28a9   :  { %4531 = vadd.xlane.f32.xlu1 %v4530_v39 }
0x28aa   :  { %5886 = vrsqrt.f32 %v4535_v26 }
0x28b7   :  { %v5887_v43 = vpop.eup %5886 }
0x28b8   :  { %v4539_v41 = vmul.f32 %v5887_v43, %v4523_v21 }
0x28ba   :  { %v4547_v38 = vmul.f32 %v5236_v17, %v4539_v41 }
0x28bc   :  { %v6639_v27 = vadd.f32 %v5237_v44, %v4547_v38  ;;  %v4818_v38 = vld [vmem:[%s6776_s16 + $0x18] sm:$0xff] }
0x28be   :  { %5726 = vmatprep.mubr.msk.f32.mxu0 %vm70_vm0, %v6639_v27 }
0x2932   :  { %v4532_v49 = vpop.xlane.xlu1 %4531 }
0x2933   :  { %v4534_v12 = vmul.f32 0.03125, %v4532_v49 }
0x2935   :  { %v4536_v50 = vadd.f32 1e-12, %v4534_v12 }
0x2937   :  { %5888 = vrsqrt.f32 %v4536_v50 }
0x2944   :  { %v5889_v23 = vpop.eup %5888 }
0x2945   :  { %v4540_v51 = vmul.f32 %v5889_v23, %v4524_v30 }
0x2947   :  { %v4548_v53 = vmul.f32 %v5236_v17, %v4540_v51 }
0x2949   :  { %v4556_v54 = vadd.f32 %v5237_v44, %v4548_v53  ;;  %v5260_v53 = vld [vmem:[%s6774_s14 + $0x1] ss:$0 sm:$0xff] }
0x294b   :  { %5727 = vmatmul.mubr.msk.f32.vlgmr.msra.gmra.mxu0 %vm70_vm0, %v4556_v54 }
0x294c   :  { %5756 = vmatprep.mubr.msk.f32.mxu0 %vm5927_vm2, %v5926_v34  ;;  %5749 = vmatpush3.msra.mxu0 %v4818_v38 }
0x294d   :  { %5750 = vmatprep.subr.mxu0 %v5926_v34 }
0x2a0b   :  { %v5728_v61 = vpop.f32.mrf.mxu0 }
0x2a0c   :  { %v4648_v62 = vadd.f32 %v5728_v61, %v5243_v59  ;;  %v4821_v61 = vld [vmem:[%s6778_s18 + $0x8] sm:$0xff] }
0x2a0d   :  { %v4642_v63 = vpop.f32.mrf.mxu0 }
0x2a0e   :  { %v4652_v0 = vmul.f32 %v4648_v62, %v4648_v62  ;;  %v4643_v1 = vadd.f32 %v5243_v59, %v4642_v63  ;;  %v4822_v59 = vld [vmem:[%s6778_s18 + $0x10] sm:$0xff]  ;;  %v4819_v63 = vld [vmem:[%s6777_s17] sm:$0x1] }
0x2a10   :  { %v4654_v3 = vmul.f32 %v4652_v0, %v4648_v62  ;;  %v4651_v4 = vmul.f32 %v4643_v1, %v4643_v1 }
0x2a12   :  { %v4656_v5 = vmul.f32 0.044715, %v4654_v3  ;;  %v4653_v37 = vmul.f32 %v4651_v4, %v4643_v1 }
0x2a14   :  { %v4658_v7 = vadd.f32 %v4656_v5, %v4648_v62  ;;  %v4655_v8 = vmul.f32 0.044715, %v4653_v37 }
0x2a16   :  { %v4660_v9 = vmul.f32 0.7978846, %v4658_v7  ;;  %v4657_v10 = vadd.f32 %v4655_v8, %v4643_v1 }
0x2a18   :  { %5890 = vtanh.f32 %v4660_v9  ;;  %v4659_v6 = vmul.f32 0.7978846, %v4657_v10  ;;  %v4824_v9 = vld [vmem:[%s6779_s19] sm:$0x1] }
0x2a1a   :  { %5892 = vtanh.f32 %v4659_v6 }
0x2a25   :  { %v5891_v11 = vpop.eup %5890 }
0x2a26   :  { %v4664_v13 = vadd.f32 1.0, %v5891_v11 }
0x2a27   :  { %v5893_v14 = vpop.eup %5892 }
0x2a28   :  { %v4663_v15 = vadd.f32 1.0, %v5893_v14  ;;  %v4666_v16 = vmul.f32 0.5, %v4664_v13 }
0x2a2a   :  { %v4665_v2 = vmul.f32 0.5, %v4663_v15  ;;  %v4668_v19 = vmul.f32 %v4666_v16, %v4648_v62  ;;  %v4820_v62 = vld [vmem:[%s6778_s18] sm:$0xff] }
0x2a2c   :  { %v4667_v18 = vmul.f32 %v4665_v2, %v4643_v1 }
0x2a2e   :  { %5745 = vmatprep.mubr.msk.f32.mxu1 %vm2332_vm4, %v4667_v18 }
0x2a2f   :  { %5746 = vmatmul.mubr.msk.f32.vlgmr.msra.gmra.mxu1 %vm2332_vm4, %v4668_v19 }
0x2a30   :  { %5778 = vmatprep.mubr.msk.f32.mxu1 %vm5927_vm2, %v5926_v34  ;;  %5771 = vmatpush3.msra.mxu1 %v4818_v38 }
0x2a31   :  { %5772 = vmatprep.subr.mxu1 %v5926_v34 }
0x2aef   :  { %v5747_v21 = vpop.f32.mrf.mxu1 }
0x2af0   :  { %v4764_v22 = vadd.f32 %v5747_v21, %v5255_v20 }
0x2af1   :  { %v4758_v24 = vpop.f32.mrf.mxu1 }
0x2af2   :  { %v4768_v25 = vadd.f32 %v4764_v22, %v4556_v54  ;;  %v4759_v28 = vadd.f32 %v5255_v20, %v4758_v24 }
0x2af4   :  { %v4776_v31 = vsel %vm70_vm0, %v4768_v25, 0.0  ;;  %v4767_v29 = vadd.f32 %v4759_v28, %v6639_v27  ;;  %v4817_v27 = vld [vmem:[%s6776_s16 + $0x10] sm:$0xff] }
0x2af5   :  { %4777 = vadd.xlane.f32.xlu1 %v4776_v31  ;;  %5751 = vmatpush3.msra.mxu0 %v4817_v27 }
0x2af6   :  { %v4773_v57 = vsel %vm70_vm0, %v4767_v29, 0.0  ;;  %5773 = vmatpush3.msra.mxu1 %v4817_v27  ;;  %5752 = vmatprep.subr.mxu0 %v5926_v34 }
0x2af7   :  { %4774 = vadd.xlane.f32.xlu0 %v4773_v57  ;;  %5774 = vmatprep.subr.mxu1 %v5926_v34 }
0x2af8   :  { %5753 = vmatpush3.msra.mxu0 %v4816_v45  ;;  %5775 = vmatpush3.msra.mxu1 %v4816_v45 }
0x2af9   :  { %5754 = vmatprep.subr.mxu0 %v5926_v34  ;;  %5776 = vmatprep.subr.mxu1 %v5926_v34 }
0x2afa   :  { %5755 = vmatpush3.msra.mxu0 %v4815_v46  ;;  %5777 = vmatpush3.msra.mxu1 %v4815_v46 }
0x2afb   :  { %5759 = vmatprep.subr.mxu0 %v5926_v34 }
0x2b7e   :  { %v4778_v30 = vpop.xlane.xlu1 %4777 }
0x2b7f   :  { %v4780_v32 = vmul.f32 0.03125, %v4778_v30 }
0x2b80   :  { %v4775_v35 = vpop.xlane.xlu0 %4774 }
0x2b81   :  { %v4779_v36 = vmul.f32 0.03125, %v4775_v35  ;;  %v4782_v26 = vsub.f32 %v4768_v25, %v4780_v32 }
0x2b83   :  { %v4781_v39 = vsub.f32 %v4767_v29, %v4779_v36  ;;  %v4784_v41 = vmul.f32 %v4782_v26, %v4782_v26 }
0x2b85   :  { %v4783_v43 = vmul.f32 %v4781_v39, %v4781_v39  ;;  %v4788_v44 = vsel %vm70_vm0, %v4784_v41, 0.0 }
0x2b87   :  { %v4785_v17 = vsel %vm70_vm0, %v4783_v43, 0.0 }
0x2b88   :  { %4786 = vadd.xlane.f32.xlu1 %v4785_v17 }
0x2b8c   :  { %4789 = vadd.xlane.f32.xlu1 %v4788_v44 }
0x2c11   :  { %v4787_v47 = vpop.xlane.xlu1 %4786 }
0x2c12   :  { %v4791_v48 = vmul.f32 0.03125, %v4787_v47 }
0x2c14   :  { %v4793_v49 = vadd.f32 1e-12, %v4791_v48 }
0x2c15   :  { %v4790_v12 = vpop.xlane.xlu1 %4789 }
0x2c16   :  { %5894 = vrsqrt.f32 %v4793_v49  ;;  %v4792_v50 = vmul.f32 0.03125, %v4790_v12 }
0x2c18   :  { %v4794_v23 = vadd.f32 1e-12, %v4792_v50 }
0x2c1a   :  { %5896 = vrsqrt.f32 %v4794_v23 }
0x2c23   :  { %v5895_v51 = vpop.eup %5894 }
0x2c24   :  { %v4797_v54 = vmul.f32 %v5895_v51, %v4781_v39 }
0x2c26   :  { %v4805_v56 = vmul.f32 %v5260_v53, %v4797_v54 }
0x2c27   :  { %v5897_v40 = vpop.eup %5896 }
0x2c28   :  { %v4798_v33 = vmul.f32 %v5897_v40, %v4782_v26  ;;  %v4813_v58 = vadd.f32 %v5261_v55, %v4805_v56 }
0x2c2a   :  { %5757 = vmatmul.mubr.msk.f32.vlgmr.msra.gmra.mxu0 %vm70_vm0, %v4813_v58  ;;  %v4806_v42 = vmul.f32 %v5260_v53, %v4798_v33 }
0x2c2b   :  { %5767 = vmatprep.mubr.msk.f32.mxu0 %vm5927_vm2, %v5926_v34  ;;  %5760 = vmatpush3.msra.mxu0 %v4823_v52 }
0x2c2c   :  { %v4814_v60 = vadd.f32 %v5261_v55, %v4806_v42  ;;  %5761 = vmatprep.subr.mxu0 %v5926_v34 }
0x2c2d   :  { %5762 = vmatpush3.msra.mxu0 %v4822_v59 }
0x2c2e   :  { %5779 = vmatmul.mubr.msk.f32.vlgmr.msra.gmra.mxu1 %vm70_vm0, %v4814_v60  ;;  %5763 = vmatprep.subr.mxu0 %v5926_v34 }
0x2c2f   :  { %5764 = vmatpush3.msra.mxu0 %v4821_v61 }
0x2c30   :  { %5765 = vmatprep.subr.mxu0 %v5926_v34 }
0x2c31   :  { %5766 = vmatpush3.msra.mxu0 %v4820_v62 }
0x2c32   :  { %5781 = vmatprep.subr.mxu0 %v5926_v34 }
0x2cea   :  { %v4894_v0 = vpop.f32.mrf.mxu0 }
0x2ceb   :  { %v4895_v1 = vadd.f32 %v4894_v0, %v4819_v63 }
0x2cec   :  { %v5758_v3 = vpop.f32.mrf.mxu0 }
0x2ced   :  { %5898 = vtanh.f32 %v4895_v1 }
0x2cee   :  { %v5043_v4 = vpop.f32.mrf.mxu1 }
0x2cef   :  { %v5044_v37 = vadd.f32 %v5043_v4, %v4819_v63 }
0x2cf0   :  { %v5780_v5 = vpop.f32.mrf.mxu1 }
0x2cf1   :  { %5900 = vtanh.f32 %v5044_v37 }
0x2cfa   :  { %v5899_v7 = vpop.eup %5898 }
0x2cfb   :  { %5768 = vmatmul.mubr.msk.f32.vlgmr.msra.gmra.mxu0 %vm70_vm0, %v5899_v7 }
0x2cfc   :  { %5782 = vmatpush3.msra.mxu0 %v4823_v52  ;;  %5789 = vmatprep.mubr.msk.f32.mxu0 %vm5927_vm2, %v5926_v34 }
0x2cfd   :  { %5783 = vmatprep.subr.mxu0 %v5926_v34 }
0x2cfe   :  { %5784 = vmatpush3.msra.mxu0 %v4822_v59  ;;  %v5901_v8 = vpop.eup %5900 }
0x2cff   :  { %5785 = vmatprep.subr.mxu0 %v5926_v34 }
0x2d00   :  { %5786 = vmatpush3.msra.mxu0 %v4821_v61 }
0x2d01   :  { %5787 = vmatprep.subr.mxu0 %v5926_v34 }
0x2d02   :  { %5788 = vmatpush3.msra.mxu0 %v4820_v62 }
0x2d03   :  { %5790 = vmatmul.mubr.msk.f32.vlgmr.msra.gmra.mxu0 %vm70_vm0, %v5901_v8 }
0x2dbb   :  { %v4968_v10 = vpop.f32.mrf.mxu0 }
0x2dbc   :  { %v4969_v6 = vadd.f32 %v4968_v10, %v4824_v9 }
0x2dbd   :  { %v5769_v11 = vpop.f32.mrf.mxu0 }
0x2dbe   :  { %4973 = vst.msk [vmem:[#allocation4] sm:$0x1] %vm4972_vm5, %v4969_v6 }
0x2dc3   :  { %v5117_v13 = vpop.f32.mrf.mxu0 }
0x2dc4   :  { %v5118_v14 = vadd.f32 %v5117_v13, %v4824_v9 }
0x2dc5   :  { %v5791_v15 = vpop.f32.mrf.mxu0 }
0x2dc6   :  { %5121 = vst.msk [vmem:[#allocation4 + $0x1] sm:$0x1] %vm4972_vm5, %v5118_v14 }
0x2dc7   :  { %5915 = shalt.err (!%p5912_p4)
}
0x2dc8   :  { %5131 = dma.vmem_to_hbm [thread:$0]  %s5129_s4, 32, %s6780_s20, [#allocation5]  }
0x2dc9   :  { %5924 = dma.done.wait [#allocation5], 32  }
0x2dca   :  { %5925 = vsyncadd [#allocation5], 4294967264 }
0x2dcb   :  { %5135 = vsyncpa [#allocation5], 1 }

</bundles_post_ra>
